<compile_context>
chip_gen: v7x
topology: tpu7x:2x2x1
jax: 0.10.0
libtpu: 0.0.40
codegen_flags: <defaults>
</compile_context>

<pallas_src>
import functools
import math

import jax
import jax.numpy as jnp
from jax.experimental import pallas as pl
from jax.experimental.pallas import tpu as pltpu

BN_EPS = 1e-5
ACT_DTYPE = jnp.bfloat16      # inter-layer activation / matmul operand dtype


# ----------------------------------------------------------------------------
# Hardware queries / generation-gated budgets
# ----------------------------------------------------------------------------
def _round_up(x, m):
    return ((x + m - 1) // m) * m


@functools.lru_cache(maxsize=None)
def _vmem_phys_bytes():
    try:
        info = pltpu.get_tpu_info()
        v = getattr(info, "vmem_capacity_bytes", None)
        if v:
            return int(v)
    except Exception:
        pass
    return 64 << 20     # conservative default (v7x-class)


def _is_small_vmem():
    # 64 MiB-class VMEM => v7x-class chip (also the only multi-TensorCore case).
    return _vmem_phys_bytes() < (100 << 20)


def _vmem_budget():
    return (40 << 20) if _is_small_vmem() else (96 << 20)


def _vmem_cap():
    return (48 << 20) if _is_small_vmem() else (112 << 20)


def _pick_tn(cout):
    """Cout tile matched to the MXU (256x256 on v6e/v7x)."""
    if cout % 256 == 0:
        return 256
    if cout % 128 == 0:
        return 128
    return cout


def _conv_tile_bytes(tm, K, tn, n_w_bufs):
    """Approximate VMEM footprint of one im2col-matmul grid step."""
    return (2 * tm * K * 2            # patch tile, bf16, double-buffered
            + n_w_bufs * K * tn * 2   # weight tile, bf16
            + 2 * tn * 4              # bias, f32
            + 2 * tm * tn * 2         # residual tile (worst case), bf16
            + 2 * tm * tn * 2         # output tile, bf16
            + tm * tn * 4)            # f32 accumulator value


def _choose_tm(M, K, tn, n_j):
    """Largest M-tile fitting the VMEM budget, preferring exact divisors of M
    (no jnp.pad of the patch matrix) and a minimum of 16 rows."""
    budget = _vmem_budget()
    cands = [c for c in (2048, 1024, 512, 256, 128, 64, 32, 16) if c <= M]
    if not cands:
        cands = [max(8, _round_up(M, 8))]
    divisors = [c for c in cands if M % c == 0 and _conv_tile_bytes(c, K, tn, 2) <= budget]
    if divisors:
        tm = divisors[0]
    else:
        fitting = [c for c in cands if _conv_tile_bytes(c, K, tn, 2) <= budget]
        tm = fitting[0] if fitting else cands[-1]
    # Only v7x has 2 TensorCores to shard "parallel" grid axes across; on v5e/v6e
    # the grid is a serial loop so splitting just adds per-step overhead.
    if _is_small_vmem():
        while tm > 16 and n_j * ((M + tm - 1) // tm) < 2:
            tm //= 2
    return tm


# ----------------------------------------------------------------------------
# pipeline_mode=pl.Buffered(1) feature probe (single-buffer constant-index blocks)
# ----------------------------------------------------------------------------
def _copy_kernel(x_ref, o_ref):
    o_ref[...] = x_ref[...]


@functools.lru_cache(maxsize=None)
def _buffered1_supported():
    try:
        spec = pl.BlockSpec((8, 128), lambda i: (0, 0), pipeline_mode=pl.Buffered(1))
        out = pl.pallas_call(
            _copy_kernel,
            out_shape=jax.ShapeDtypeStruct((8, 128), jnp.float32),
            grid=(1,),
            in_specs=[spec],
            out_specs=pl.BlockSpec((8, 128), lambda i: (0, 0)),
        )(jnp.zeros((8, 128), jnp.float32))
        jax.block_until_ready(out)
        return True
    except Exception:
        return False


def _const_spec(block_shape, index_map):
    """BlockSpec for a block whose index is constant over the whole grid:
    single-buffer it (saves VMEM) when the installed jax supports it."""
    if _buffered1_supported():
        return pl.BlockSpec(block_shape, index_map, pipeline_mode=pl.Buffered(1))
    return pl.BlockSpec(block_shape, index_map)


# ----------------------------------------------------------------------------
# Pallas kernels
# ----------------------------------------------------------------------------
def _conv_mm_kernel(*refs, relu, has_res):
    """Fused (patches @ W_scaled) + bias [+ residual] [+ ReLU], f32 epilogue."""
    if has_res:
        p_ref, w_ref, b_ref, r_ref, o_ref = refs
    else:
        p_ref, w_ref, b_ref, o_ref = refs
        r_ref = None
    y = jnp.dot(p_ref[...], w_ref[...], preferred_element_type=jnp.float32)
    y = y + b_ref[...]
    if r_ref is not None:
        y = y + r_ref[...].astype(jnp.float32)
    if relu:
        y = jnp.maximum(y, 0.0)
    o_ref[...] = y.astype(o_ref.dtype)


def _conv_mm_pool_kernel(*refs, relu, has_res, n_imgs, rows_per_img):
    """Same as _conv_mm_kernel but with the per-image global average pool fused
    into the epilogue (used for the network's final conv)."""
    if has_res:
        p_ref, w_ref, b_ref, r_ref, o_ref = refs
    else:
        p_ref, w_ref, b_ref, o_ref = refs
        r_ref = None
    y = jnp.dot(p_ref[...], w_ref[...], preferred_element_type=jnp.float32)
    y = y + b_ref[...]
    if r_ref is not None:
        y = y + r_ref[...].astype(jnp.float32)
    if relu:
        y = jnp.maximum(y, 0.0)
    means = [jnp.mean(y[n * rows_per_img:(n + 1) * rows_per_img, :],
                      axis=0, keepdims=True) for n in range(n_imgs)]
    o_ref[...] = jnp.concatenate(means, axis=0).astype(o_ref.dtype)


def _conv3x3_fused_kernel(x_ref, w_ref, b_ref, *rest, Cin, Ho, Wo, relu, has_res, fold):
    """Fused stride-1 3x3 conv for one (Cout-tile, image) grid step.

    The 9 (kh,kw) taps are sliced directly from the padded NHWC activation block
    held in VMEM (no im2col patch matrix in HBM) and accumulated in f32."""
    if has_res:
        r_ref, o_ref = rest
    else:
        (o_ref,) = rest
        r_ref = None
    M = Ho * Wo
    tn = w_ref.shape[1]
    acc = jnp.zeros((M, tn), jnp.float32)
    for kh in range(3):
        for kw in range(3):
            t = kh * 3 + kw
            # f32 detour keeps the (Ho, Wo, C) -> (Ho*Wo, C) collapse on a 32-bit
            # (8,128) layout; with Wo % 8 == 0 it is a pure tile renumbering.
            tap = x_ref[kh:kh + Ho, kw:kw + Wo, :].astype(jnp.float32)
            tap = tap.reshape(M, Cin).astype(ACT_DTYPE)
            acc = acc + jnp.dot(tap, w_ref[t * Cin:(t + 1) * Cin, :],
                                preferred_element_type=jnp.float32)
    y = acc + b_ref[...]
    if r_ref is not None:
        y = y + r_ref[...].astype(jnp.float32)
    if relu:
        y = jnp.maximum(y, 0.0)
    if fold:
        y = y.reshape(M // 2, 2 * tn)     # lane-dense store for Cout=64
    o_ref[...] = y.astype(o_ref.dtype)


def _avgpool_kernel(x_ref, o_ref):
    """Mean over the flattened spatial axis: (N, H*W, Ct) -> (N, Ct), f32."""
    o_ref[...] = jnp.mean(x_ref[...].astype(jnp.float32), axis=1)


# ----------------------------------------------------------------------------
# Pallas wrappers
# ----------------------------------------------------------------------------
def conv_mm_pallas(patches, w_mat, bias, res_flat, relu):
    """patches: (M, K), w_mat: (K, Cout) (BN-scale folded), bias: (Cout,),
    res_flat: (M, Cout) | None. Returns (M, Cout) in ACT_DTYPE."""
    M, K = patches.shape
    Cout = w_mat.shape[1]
    tn = _pick_tn(Cout)
    n_j = Cout // tn
    tm = _choose_tm(M, K, tn, n_j)
    M_pad = _round_up(M, tm)
    if M_pad != M:   # only hit when no divisor-of-M tile fits the budget
        patches = jnp.pad(patches, ((0, M_pad - M), (0, 0)))
        if res_flat is not None:
            res_flat = jnp.pad(res_flat, ((0, M_pad - M), (0, 0)))
    n_i = M_pad // tm

    wspec = _const_spec if n_j == 1 else pl.BlockSpec
    in_specs = [
        pl.BlockSpec((tm, K), lambda j, i: (i, 0)),
        wspec((K, tn), lambda j, i: (0, j)),
        wspec((1, tn), lambda j, i: (0, j)),
    ]
    args = [patches.astype(ACT_DTYPE), w_mat.astype(ACT_DTYPE),
            bias.reshape(1, Cout).astype(jnp.float32)]
    has_res = res_flat is not None
    if has_res:
        in_specs.append(pl.BlockSpec((tm, tn), lambda j, i: (i, j)))
        args.append(res_flat.astype(ACT_DTYPE))

    vmem_limit = int(min(max(2 * _conv_tile_bytes(tm, K, tn, 2), 32 << 20), _vmem_cap()))
    kernel = functools.partial(_conv_mm_kernel, relu=relu, has_res=has_res)
    out = pl.pallas_call(
        kernel,
        out_shape=jax.ShapeDtypeStruct((M_pad, Cout), ACT_DTYPE),
        grid=(n_j, n_i),
        in_specs=in_specs,
        out_specs=pl.BlockSpec((tm, tn), lambda j, i: (i, j)),
        compiler_params=pltpu.CompilerParams(
            dimension_semantics=("parallel", "parallel"),
            vmem_limit_bytes=vmem_limit),
    )(*args)
    return out[:M] if M_pad != M else out


def conv_mm_pool_pallas(patches, w_mat, bias, res_flat, relu, n_imgs):
    """Matmul + BN/residual/ReLU epilogue with the adaptive avg-pool fused in.
    Requires the whole M axis in a single block (final layer M is small)."""
    M, K = patches.shape
    Cout = w_mat.shape[1]
    tn = _pick_tn(Cout)
    n_j = Cout // tn
    rows = M // n_imgs
    wspec = _const_spec if n_j == 1 else pl.BlockSpec
    in_specs = [
        _const_spec((M, K), lambda j: (0, 0)),       # constant over the grid
        wspec((K, tn), lambda j: (0, j)),
        wspec((1, tn), lambda j: (0, j)),
    ]
    args = [patches.astype(ACT_DTYPE), w_mat.astype(ACT_DTYPE),
            bias.reshape(1, Cout).astype(jnp.float32)]
    has_res = res_flat is not None
    if has_res:
        in_specs.append(pl.BlockSpec((M, tn), lambda j: (0, j)))
        args.append(res_flat.astype(ACT_DTYPE))
    vmem_limit = int(min(max(2 * _conv_tile_bytes(M, K, tn, 2), 32 << 20), _vmem_cap()))
    kernel = functools.partial(_conv_mm_pool_kernel, relu=relu, has_res=has_res,
                               n_imgs=n_imgs, rows_per_img=rows)
    out = pl.pallas_call(
        kernel,
        out_shape=jax.ShapeDtypeStruct((n_imgs, Cout), jnp.float32),
        grid=(n_j,),
        in_specs=in_specs,
        out_specs=pl.BlockSpec((n_imgs, tn), lambda j: (0, j)),
        compiler_params=pltpu.CompilerParams(
            dimension_semantics=("parallel",),
            vmem_limit_bytes=vmem_limit),
    )(*args)
    return jax.block_until_ready(out)


_FUSED_ENABLED = True   # flipped off on first lowering failure of the fused path
_FOLD_ENABLED = True    # flipped off on first lowering failure of the folded store


def conv3x3_fused(xp, w_mat, bias, residual_nhwc, relu):
    """Fused stride-1 3x3 conv + BN(folded) [+ residual] [+ ReLU] without im2col.

    xp: (N, Hp, Wp, Cin) zero-padded NHWC bf16; w_mat: (9*Cin, Cout); bias: (Cout,)
    residual_nhwc: (N, Ho, Wo, Cout) | None.
    Returns (N, Ho, Wo, Cout) bf16, or None to fall back to the im2col path."""
    global _FUSED_ENABLED, _FOLD_ENABLED
    if not _FUSED_ENABLED:
        return None
    N, Hp, Wp, Cin = xp.shape
    Ho, Wo = Hp - 2, Wp - 2
    M = Ho * Wo
    Cout = w_mat.shape[1]
    tn = _pick_tn(Cout)
    n_j = Cout // tn

    step_bytes = (2 * Hp * Wp * Cin * 2      # activation block, double-buffered
                  + 2 * 9 * Cin * tn * 2     # weight tile
                  + 4 * M * tn * 2           # residual + output tiles
                  + M * tn * 4               # f32 accumulator
                  + M * max(Cin, 128) * 4)   # tap temporaries
    if step_bytes > _vmem_budget():
        return None                          # full-image block too big -> im2col path
    vmem_limit = int(min(max(2 * step_bytes, 32 << 20), _vmem_cap()))

    has_res = residual_nhwc is not None
    wspec = _const_spec if n_j == 1 else pl.BlockSpec
    args = [xp.astype(ACT_DTYPE), w_mat.astype(ACT_DTYPE),
            bias.reshape(1, Cout).astype(jnp.float32)]
    if has_res:
        args.append(residual_nhwc.reshape(N, M, Cout).astype(ACT_DTYPE))

    def _call(fold):
        in_specs = [
            pl.BlockSpec((None, Hp, Wp, Cin), lambda j, n: (n, 0, 0, 0)),
            wspec((9 * Cin, tn), lambda j, n: (0, j)),
            wspec((1, tn), lambda j, n: (0, j)),
        ]
        if has_res:
            in_specs.append(pl.BlockSpec((None, M, tn), lambda j, n: (n, 0, j)))
        if fold:   # (M, 64) stored lane-dense as (M/2, 128): identical bytes
            out_shape = jax.ShapeDtypeStruct((N, M // 2, 2 * Cout), ACT_DTYPE)
            out_spec = pl.BlockSpec((None, M // 2, 2 * Cout), lambda j, n: (n, 0, 0))
        else:
            out_shape = jax.ShapeDtypeStruct((N, M, Cout), ACT_DTYPE)
            out_spec = pl.BlockSpec((None, M, tn), lambda j, n: (n, 0, j))
        kernel = functools.partial(_conv3x3_fused_kernel, Cin=Cin, Ho=Ho, Wo=Wo,
                                   relu=relu, has_res=has_res, fold=fold)
        out = pl.pallas_call(
            kernel,
            out_shape=out_shape,
            grid=(n_j, N),
            in_specs=in_specs,
            out_specs=out_spec,
            compiler_params=pltpu.CompilerParams(
                dimension_semantics=("parallel", "parallel"),
                vmem_limit_bytes=vmem_limit),
        )(*args)
        return jax.block_until_ready(out)

    if _FOLD_ENABLED and Cout == 64 and M % 2 == 0 and n_j == 1:
        try:
            return _call(True).reshape(N, Ho, Wo, Cout)
        except Exception:
            _FOLD_ENABLED = False
    try:
        return _call(False).reshape(N, Ho, Wo, Cout)
    except Exception:
        _FUSED_ENABLED = False
        return None


def avgpool_pallas(x_nhwc):
    """AdaptiveAvgPool2d((1,1)) + flatten: (N, H, W, C) -> (N, C), f32. (Fallback
    path; normally the pool is fused into the final conv's epilogue.)"""
    N, H, W, C = x_nhwc.shape
    xf = x_nhwc.reshape(N, H * W, C)
    tc = 128 if C % 128 == 0 else C
    return pl.pallas_call(
        _avgpool_kernel,
        out_shape=jax.ShapeDtypeStruct((N, C), jnp.float32),
        grid=(C // tc,),
        in_specs=[pl.BlockSpec((N, H * W, tc), lambda c: (0, 0, c))],
        out_specs=pl.BlockSpec((N, tc), lambda c: (0, c)),
        compiler_params=pltpu.CompilerParams(dimension_semantics=("parallel",)),
    )(xf)


# ----------------------------------------------------------------------------
# Conv glue
# ----------------------------------------------------------------------------
def _extract_patches(x_padded, k, stride):
    """im2col: x_padded (N, Hp, Wp, C) -> (N*Ho*Wo, k*k*C).  Used only for
    stride-2 3x3 convs and 1x1 shortcut convs (low patch inflation)."""
    N, Hp, Wp, C = x_padded.shape
    Ho = (Hp - k) // stride + 1
    Wo = (Wp - k) // stride + 1
    taps = []
    for kh in range(k):
        for kw in range(k):
            taps.append(
                x_padded[:, kh:kh + stride * (Ho - 1) + 1:stride,
                            kw:kw + stride * (Wo - 1) + 1:stride, :]
            )
    p = jnp.concatenate(taps, axis=-1)  # (N, Ho, Wo, k*k*C)  kh-major, kw, Cin
    return p.reshape(N * Ho * Wo, k * k * C), (N, Ho, Wo)


def conv_bn(x_nhwc, w, bn_scale, bn_bias, stride, relu, residual_nhwc=None):
    """Conv2d(bias=False, padding=1 for k=3 / 0 for k=1) + BN(eval) [+res] [+ReLU]."""
    k = w.shape[0]
    Cout = w.shape[-1]
    N = x_nhwc.shape[0]
    xp = jnp.pad(x_nhwc, ((0, 0), (1, 1), (1, 1), (0, 0))) if k == 3 else x_nhwc
    Hp, Wp = xp.shape[1], xp.shape[2]
    Ho = (Hp - k) // stride + 1
    Wo = (Wp - k) // stride + 1
    # Fold eval-mode BN scale into the weights: (x@W)*s + b == x@(W*s) + b.
    w_mat = w.reshape(-1, Cout) * bn_scale.reshape(1, Cout)

    if k == 3 and stride == 1 and Wo % 8 == 0:
        out = conv3x3_fused(xp, w_mat, bn_bias, residual_nhwc, relu)
        if out is not None:
            return out

    patches, _ = _extract_patches(xp, k, stride)
    res_flat = (residual_nhwc.reshape(N * Ho * Wo, Cout)
                if residual_nhwc is not None else None)
    out = conv_mm_pallas(patches, w_mat, bn_bias, res_flat, relu)
    return out.reshape(N, Ho, Wo, Cout)


def conv_bn_pool(x_nhwc, w, bn_scale, bn_bias, residual_nhwc, n_imgs):
    """Final conv of the network (3x3, stride 1) + BN + residual + ReLU with
    AdaptiveAvgPool2d((1,1)) fused into the epilogue -> (N, Cout) f32."""
    Cout = w.shape[-1]
    xp = jnp.pad(x_nhwc, ((0, 0), (1, 1), (1, 1), (0, 0)))
    patches, _ = _extract_patches(xp, 3, 1)
    M, K = patches.shape
    w_mat = w.reshape(-1, Cout) * bn_scale.reshape(1, Cout)
    res_flat = residual_nhwc.reshape(M, Cout)
    tn = _pick_tn(Cout)
    if M % n_imgs == 0 and _conv_tile_bytes(M, K, tn, 2) <= _vmem_budget():
        try:
            return conv_mm_pool_pallas(patches, w_mat, bn_bias, res_flat, True, n_imgs)
        except Exception:
            pass
    # Fallback: unfused conv (+res+ReLU) then a standalone Pallas avg-pool.
    out = conv_bn(x_nhwc, w, bn_scale, bn_bias, 1, True, residual_nhwc)
    return avgpool_pallas(out)


# ----------------------------------------------------------------------------
# Parameter construction (ResNet-18: BasicBlock, num_blocks=[2,2,2,2])
# ----------------------------------------------------------------------------
def _kaiming_conv(key, kh, kw, cin, cout):
    # kaiming_normal_(mode='fan_out', nonlinearity='relu'): std = sqrt(2/(kh*kw*cout))
    std = math.sqrt(2.0 / (kh * kw * cout))
    return std * jax.random.normal(key, (kh, kw, cin, cout), jnp.float32)


def _bn_params(c):
    # eval-mode BN with weight=1, bias=0, running_mean=0, running_var=1
    scale = jnp.full((c,), 1.0 / math.sqrt(1.0 + BN_EPS), jnp.float32)
    bias = jnp.zeros((c,), jnp.float32)
    return scale, bias


def make_resnet18_params(key, in_channel=3):
    keys = iter(jax.random.split(key, 64))
    params = {}
    params["conv1_w"] = _kaiming_conv(next(keys), 3, 3, in_channel, 64)
    params["bn1_s"], params["bn1_b"] = _bn_params(64)

    in_planes = 64
    num_blocks = [2, 2, 2, 2]
    planes_list = [64, 128, 256, 512]
    strides_list = [1, 2, 2, 2]
    for li, (planes, lstride, nb) in enumerate(zip(planes_list, strides_list, num_blocks)):
        blocks = []
        strides = [lstride] + [1] * (nb - 1)
        for s in strides:
            blk = {"stride": s}
            blk["conv1_w"] = _kaiming_conv(next(keys), 3, 3, in_planes, planes)
            blk["bn1_s"], blk["bn1_b"] = _bn_params(planes)
            blk["conv2_w"] = _kaiming_conv(next(keys), 3, 3, planes, planes)
            blk["bn2_s"], blk["bn2_b"] = _bn_params(planes)
            if s != 1 or in_planes != planes:
                blk["sc_w"] = _kaiming_conv(next(keys), 1, 1, in_planes, planes)
                blk["sc_s"], blk["sc_b"] = _bn_params(planes)
            blocks.append(blk)
            in_planes = planes
        params[f"layer{li + 1}"] = blocks
    return params


# ----------------------------------------------------------------------------
# Forward pass
# ----------------------------------------------------------------------------
def basic_block_forward(x, blk, pool_output=False, n_imgs=None):
    stride = blk["stride"]
    out = conv_bn(x, blk["conv1_w"], blk["bn1_s"], blk["bn1_b"], stride, relu=True)
    if "sc_w" in blk:
        shortcut = conv_bn(x, blk["sc_w"], blk["sc_s"], blk["sc_b"], stride, relu=False)
    else:
        shortcut = x
    if pool_output:
        # conv2 + bn2 + residual + relu + global-avg-pool fused in one kernel
        return conv_bn_pool(out, blk["conv2_w"], blk["bn2_s"], blk["bn2_b"],
                            residual_nhwc=shortcut, n_imgs=n_imgs)
    return conv_bn(out, blk["conv2_w"], blk["bn2_s"], blk["bn2_b"], 1, relu=True,
                   residual_nhwc=shortcut)


def resnet18_forward(x_nchw, params):
    # layout: NCHW (PyTorch) -> NHWC internal, bf16 activations
    x = jnp.transpose(x_nchw, (0, 2, 3, 1)).astype(ACT_DTYPE)
    N = x.shape[0]
    x = conv_bn(x, params["conv1_w"], params["bn1_s"], params["bn1_b"], 1, relu=True)
    layers = ("layer1", "layer2", "layer3", "layer4")
    for li, lname in enumerate(layers):
        blocks = params[lname]
        for bi, blk in enumerate(blocks):
            is_final = (li == len(layers) - 1) and (bi == len(blocks) - 1)
            x = basic_block_forward(x, blk, pool_output=is_final, n_imgs=N)
    return x   # (N, 512), f32 (avgpool fused into the last conv)


# ----------------------------------------------------------------------------
# Plain-JAX f32 reference (for a tolerance check on the bf16 kernel pipeline)
# ----------------------------------------------------------------------------
def _conv_bn_ref(x, w, s, b, stride, relu, res=None):
    pad = 1 if w.shape[0] == 3 else 0
    y = jax.lax.conv_general_dilated(
        x, w, window_strides=(stride, stride),
        padding=((pad, pad), (pad, pad)),
        dimension_numbers=("NHWC", "HWIO", "NHWC"))
    y = y * s.reshape(1, 1, 1, -1) + b.reshape(1, 1, 1, -1)
    if res is not None:
        y = y + res
    if relu:
        y = jnp.maximum(y, 0.0)
    return y


def resnet18_forward_ref(x_nchw, params):
    x = jnp.transpose(x_nchw, (0, 2, 3, 1)).astype(jnp.float32)
    x = _conv_bn_ref(x, params["conv1_w"], params["bn1_s"], params["bn1_b"], 1, True)
    for lname in ("layer1", "layer2", "layer3", "layer4"):
        for blk in params[lname]:
            s = blk["stride"]
            out = _conv_bn_ref(x, blk["conv1_w"], blk["bn1_s"], blk["bn1_b"], s, True)
            if "sc_w" in blk:
                sc = _conv_bn_ref(x, blk["sc_w"], blk["sc_s"], blk["sc_b"], s, False)
            else:
                sc = x
            x = _conv_bn_ref(out, blk["conv2_w"], blk["bn2_s"], blk["bn2_b"], 1, True, res=sc)
    return jnp.mean(x, axis=(1, 2))


# ----------------------------------------------------------------------------
# Main
# ----------------------------------------------------------------------------
if __name__ == "__main__":
    key = jax.random.PRNGKey(0)
    kp, kx = jax.random.split(key)

    params = make_resnet18_params(kp, in_channel=3)

    # Small input consistent with the module: batch=2, in_channel=3, spatial=16
    x = jax.random.normal(kx, (2, 3, 16, 16), jnp.float32)  # NCHW, like PyTorch

    out = resnet18_forward(x, params)
    out = jax.block_until_ready(out)

    assert out.shape == (2, 512), out.shape
    assert out.dtype == jnp.float32
    assert bool(jnp.all(jnp.isfinite(out)))

    # bf16 operands with f32 accumulation across 18 conv layers: compare against a
    # plain-JAX f32 reference with a tolerance relative to the output scale.
    ref = jax.block_until_ready(resnet18_forward_ref(x, params))
    err = float(jnp.max(jnp.abs(out - ref)) / (jnp.max(jnp.abs(ref)) + 1e-6))
    assert err < 0.25, err

    print("KERNEL_OK")
</pallas_src>

<mosaic_0001>
module attributes {stable_mosaic.version = 11 : i64} {
  func.func @_copy_kernel(%arg0: i32, %arg1: memref<8x128xf32, #tpu.memory_space<vmem>>, %arg2: memref<8x128xf32, #tpu.memory_space<vmem>>) attributes {dimension_semantics = [#tpu.dimension_semantics<arbitrary>], iteration_bounds = array<i64: 1>, scalar_prefetch = 0 : i64, scratch_operands = 0 : i64, tpu.core_type = #tpu.core_type<tc>, window_params = [{pipeline_mode = #tpu.pipeline_mode<synchronous>, transform_indices = @transform_0, window_bounds = array<i64: 8, 128>}, {pipeline_mode = #tpu.pipeline_mode<synchronous>, transform_indices = @transform_1, window_bounds = array<i64: 8, 128>}]} {
    %c0 = arith.constant 0 : index
    %c0_0 = arith.constant 0 : index
    %0 = vector.load %arg1[%c0, %c0_0] : memref<8x128xf32, #tpu.memory_space<vmem>>, vector<8x128xf32>
    %c0_1 = arith.constant 0 : index
    %c0_2 = arith.constant 0 : index
    %1 = vector.load %arg2[%c0_1, %c0_2] : memref<8x128xf32, #tpu.memory_space<vmem>>, vector<8x128xf32>
    tpu.vector_store %arg2[%c0_1, %c0_2], %0 {strides = array<i32>} : memref<8x128xf32, #tpu.memory_space<vmem>>, vector<8x128xf32>,
    return
  }
  func.func @transform_0(%arg0: i32) -> (i32, i32) {
    %c0_i32 = arith.constant 0 : i32
    %c0_i32_0 = arith.constant 0 : i32
    %c0_i32_1 = arith.constant 0 : i32
    return %c0_i32, %c0_i32_0 : i32, i32
  }
  func.func @transform_1(%arg0: i32) -> (i32, i32) {
    %c0_i32 = arith.constant 0 : i32
    %c0_i32_0 = arith.constant 0 : i32
    %c0_i32_1 = arith.constant 0 : i32
    return %c0_i32, %c0_i32_0 : i32, i32
  }
}

module attributes {stable_mosaic.version = 11 : i64} {
  func.func @_conv3x3_fused_kernel(%arg0: i32, %arg1: i32, %arg2: memref<1x18x18x3xbf16, #tpu.memory_space<vmem>>, %arg3: memref<27x64xbf16, #tpu.memory_space<vmem>>, %arg4: memref<1x64xf32, #tpu.memory_space<vmem>>, %arg5: memref<1x128x128xbf16, #tpu.memory_space<vmem>>) attributes {dimension_semantics = [#tpu.dimension_semantics<parallel>, #tpu.dimension_semantics<parallel>], iteration_bounds = array<i64: 1, 2>, scalar_prefetch = 0 : i64, scratch_operands = 0 : i64, tpu.core_type = #tpu.core_type<tc>, window_params = [{transform_indices = @transform_0, window_bounds = array<i64: 1, 18, 18, 3>}, {transform_indices = @transform_1, window_bounds = array<i64: 27, 64>}, {transform_indices = @transform_2, window_bounds = array<i64: 1, 64>}, {transform_indices = @transform_3, window_bounds = array<i64: 1, 128, 128>}]} {
    %cst = arith.constant 0.000000e+00 : f32
    %0 = vector.broadcast %cst : f32 to vector<256x64xf32>
    %c0 = arith.constant 0 : index
    %c0_0 = arith.constant 0 : index
    %c0_1 = arith.constant 0 : index
    %c0_2 = arith.constant 0 : index
    %1 = vector.load %arg2[%c0, %c0_0, %c0_1, %c0_2] : memref<1x18x18x3xbf16, #tpu.memory_space<vmem>>, vector<1x16x16x3xbf16>
    %2 = vector.shape_cast %1 : vector<1x16x16x3xbf16> to vector<16x16x3xbf16>
    %3 = arith.extf %2 : vector<16x16x3xbf16> to vector<16x16x3xf32>
    %4 = vector.shape_cast %3 : vector<16x16x3xf32> to vector<256x3xf32>
    %5 = arith.truncf %4 : vector<256x3xf32> to vector<256x3xbf16>
    %c0_3 = arith.constant 0 : index
    %c0_4 = arith.constant 0 : index
    %6 = vector.load %arg3[%c0_3, %c0_4] : memref<27x64xbf16, #tpu.memory_space<vmem>>, vector<3x64xbf16>
    %cst_5 = arith.constant dense<0.000000e+00> : vector<256x64xf32>
    %7 = tpu.matmul %5, %6, %cst_5 {dimension_numbers = #tpu.dot_dimension_numbers<[1], [0], [0], [1], [0, 0, 1, 1], [], []>} : vector<256x3xbf16>, vector<3x64xbf16>, vector<256x64xf32> -> vector<256x64xf32>
    %8 = arith.addf %0, %7 : vector<256x64xf32>
    %c0_6 = arith.constant 0 : index
    %c0_7 = arith.constant 0 : index
    %c1 = arith.constant 1 : index
    %c0_8 = arith.constant 0 : index
    %9 = vector.load %arg2[%c0_6, %c0_7, %c1, %c0_8] : memref<1x18x18x3xbf16, #tpu.memory_space<vmem>>, vector<1x16x16x3xbf16>
    %10 = vector.shape_cast %9 : vector<1x16x16x3xbf16> to vector<16x16x3xbf16>
    %11 = arith.extf %10 : vector<16x16x3xbf16> to vector<16x16x3xf32>
    %12 = vector.shape_cast %11 : vector<16x16x3xf32> to vector<256x3xf32>
    %13 = arith.truncf %12 : vector<256x3xf32> to vector<256x3xbf16>
    %c3 = arith.constant 3 : index
    %c0_9 = arith.constant 0 : index
    %14 = vector.load %arg3[%c3, %c0_9] : memref<27x64xbf16, #tpu.memory_space<vmem>>, vector<3x64xbf16>
    %cst_10 = arith.constant dense<0.000000e+00> : vector<256x64xf32>
    %15 = tpu.matmul %13, %14, %cst_10 {dimension_numbers = #tpu.dot_dimension_numbers<[1], [0], [0], [1], [0, 0, 1, 1], [], []>} : vector<256x3xbf16>, vector<3x64xbf16>, vector<256x64xf32> -> vector<256x64xf32>
    %16 = arith.addf %8, %15 : vector<256x64xf32>
    %c0_11 = arith.constant 0 : index
    %c0_12 = arith.constant 0 : index
    %c2 = arith.constant 2 : index
    %c0_13 = arith.constant 0 : index
    %17 = vector.load %arg2[%c0_11, %c0_12, %c2, %c0_13] : memref<1x18x18x3xbf16, #tpu.memory_space<vmem>>, vector<1x16x16x3xbf16>
    %18 = vector.shape_cast %17 : vector<1x16x16x3xbf16> to vector<16x16x3xbf16>
    %19 = arith.extf %18 : vector<16x16x3xbf16> to vector<16x16x3xf32>
    %20 = vector.shape_cast %19 : vector<16x16x3xf32> to vector<256x3xf32>
    %21 = arith.truncf %20 : vector<256x3xf32> to vector<256x3xbf16>
    %c6 = arith.constant 6 : index
    %c0_14 = arith.constant 0 : index
    %22 = vector.load %arg3[%c6, %c0_14] : memref<27x64xbf16, #tpu.memory_space<vmem>>, vector<3x64xbf16>
    %cst_15 = arith.constant dense<0.000000e+00> : vector<256x64xf32>
    %23 = tpu.matmul %21, %22, %cst_15 {dimension_numbers = #tpu.dot_dimension_numbers<[1], [0], [0], [1], [0, 0, 1, 1], [], []>} : vector<256x3xbf16>, vector<3x64xbf16>, vector<256x64xf32> -> vector<256x64xf32>
    %24 = arith.addf %16, %23 : vector<256x64xf32>
    %c0_16 = arith.constant 0 : index
    %c1_17 = arith.constant 1 : index
    %c0_18 = arith.constant 0 : index
    %c0_19 = arith.constant 0 : index
    %25 = vector.load %arg2[%c0_16, %c1_17, %c0_18, %c0_19] : memref<1x18x18x3xbf16, #tpu.memory_space<vmem>>, vector<1x16x16x3xbf16>
    %26 = vector.shape_cast %25 : vector<1x16x16x3xbf16> to vector<16x16x3xbf16>
    %27 = arith.extf %26 : vector<16x16x3xbf16> to vector<16x16x3xf32>
    %28 = vector.shape_cast %27 : vector<16x16x3xf32> to vector<256x3xf32>
    %29 = arith.truncf %28 : vector<256x3xf32> to vector<256x3xbf16>
    %c9 = arith.constant 9 : index
    %c0_20 = arith.constant 0 : index
    %30 = vector.load %arg3[%c9, %c0_20] : memref<27x64xbf16, #tpu.memory_space<vmem>>, vector<3x64xbf16>
    %cst_21 = arith.constant dense<0.000000e+00> : vector<256x64xf32>
    %31 = tpu.matmul %29, %30, %cst_21 {dimension_numbers = #tpu.dot_dimension_numbers<[1], [0], [0], [1], [0, 0, 1, 1], [], []>} : vector<256x3xbf16>, vector<3x64xbf16>, vector<256x64xf32> -> vector<256x64xf32>
    %32 = arith.addf %24, %31 : vector<256x64xf32>
    %c0_22 = arith.constant 0 : index
    %c1_23 = arith.constant 1 : index
    %c1_24 = arith.constant 1 : index
    %c0_25 = arith.constant 0 : index
    %33 = vector.load %arg2[%c0_22, %c1_23, %c1_24, %c0_25] : memref<1x18x18x3xbf16, #tpu.memory_space<vmem>>, vector<1x16x16x3xbf16>
    %34 = vector.shape_cast %33 : vector<1x16x16x3xbf16> to vector<16x16x3xbf16>
    %35 = arith.extf %34 : vector<16x16x3xbf16> to vector<16x16x3xf32>
    %36 = vector.shape_cast %35 : vector<16x16x3xf32> to vector<256x3xf32>
    %37 = arith.truncf %36 : vector<256x3xf32> to vector<256x3xbf16>
    %c12 = arith.constant 12 : index
    %c0_26 = arith.constant 0 : index
    %38 = vector.load %arg3[%c12, %c0_26] : memref<27x64xbf16, #tpu.memory_space<vmem>>, vector<3x64xbf16>
    %cst_27 = arith.constant dense<0.000000e+00> : vector<256x64xf32>
    %39 = tpu.matmul %37, %38, %cst_27 {dimension_numbers = #tpu.dot_dimension_numbers<[1], [0], [0], [1], [0, 0, 1, 1], [], []>} : vector<256x3xbf16>, vector<3x64xbf16>, vector<256x64xf32> -> vector<256x64xf32>
    %40 = arith.addf %32, %39 : vector<256x64xf32>
    %c0_28 = arith.constant 0 : index
    %c1_29 = arith.constant 1 : index
    %c2_30 = arith.constant 2 : index
    %c0_31 = arith.constant 0 : index
    %41 = vector.load %arg2[%c0_28, %c1_29, %c2_30, %c0_31] : memref<1x18x18x3xbf16, #tpu.memory_space<vmem>>, vector<1x16x16x3xbf16>
    %42 = vector.shape_cast %41 : vector<1x16x16x3xbf16> to vector<16x16x3xbf16>
    %43 = arith.extf %42 : vector<16x16x3xbf16> to vector<16x16x3xf32>
    %44 = vector.shape_cast %43 : vector<16x16x3xf32> to vector<256x3xf32>
    %45 = arith.truncf %44 : vector<256x3xf32> to vector<256x3xbf16>
    %c15 = arith.constant 15 : index
    %c0_32 = arith.constant 0 : index
    %46 = vector.load %arg3[%c15, %c0_32] : memref<27x64xbf16, #tpu.memory_space<vmem>>, vector<3x64xbf16>
    %cst_33 = arith.constant dense<0.000000e+00> : vector<256x64xf32>
    %47 = tpu.matmul %45, %46, %cst_33 {dimension_numbers = #tpu.dot_dimension_numbers<[1], [0], [0], [1], [0, 0, 1, 1], [], []>} : vector<256x3xbf16>, vector<3x64xbf16>, vector<256x64xf32> -> vector<256x64xf32>
    %48 = arith.addf %40, %47 : vector<256x64xf32>
    %c0_34 = arith.constant 0 : index
    %c2_35 = arith.constant 2 : index
    %c0_36 = arith.constant 0 : index
    %c0_37 = arith.constant 0 : index
    %49 = vector.load %arg2[%c0_34, %c2_35, %c0_36, %c0_37] : memref<1x18x18x3xbf16, #tpu.memory_space<vmem>>, vector<1x16x16x3xbf16>
    %50 = vector.shape_cast %49 : vector<1x16x16x3xbf16> to vector<16x16x3xbf16>
    %51 = arith.extf %50 : vector<16x16x3xbf16> to vector<16x16x3xf32>
    %52 = vector.shape_cast %51 : vector<16x16x3xf32> to vector<256x3xf32>
    %53 = arith.truncf %52 : vector<256x3xf32> to vector<256x3xbf16>
    %c18 = arith.constant 18 : index
    %c0_38 = arith.constant 0 : index
    %54 = vector.load %arg3[%c18, %c0_38] : memref<27x64xbf16, #tpu.memory_space<vmem>>, vector<3x64xbf16>
    %cst_39 = arith.constant dense<0.000000e+00> : vector<256x64xf32>
    %55 = tpu.matmul %53, %54, %cst_39 {dimension_numbers = #tpu.dot_dimension_numbers<[1], [0], [0], [1], [0, 0, 1, 1], [], []>} : vector<256x3xbf16>, vector<3x64xbf16>, vector<256x64xf32> -> vector<256x64xf32>
    %56 = arith.addf %48, %55 : vector<256x64xf32>
    %c0_40 = arith.constant 0 : index
    %c2_41 = arith.constant 2 : index
    %c1_42 = arith.constant 1 : index
    %c0_43 = arith.constant 0 : index
    %57 = vector.load %arg2[%c0_40, %c2_41, %c1_42, %c0_43] : memref<1x18x18x3xbf16, #tpu.memory_space<vmem>>, vector<1x16x16x3xbf16>
    %58 = vector.shape_cast %57 : vector<1x16x16x3xbf16> to vector<16x16x3xbf16>
    %59 = arith.extf %58 : vector<16x16x3xbf16> to vector<16x16x3xf32>
    %60 = vector.shape_cast %59 : vector<16x16x3xf32> to vector<256x3xf32>
    %61 = arith.truncf %60 : vector<256x3xf32> to vector<256x3xbf16>
    %c21 = arith.constant 21 : index
    %c0_44 = arith.constant 0 : index
    %62 = vector.load %arg3[%c21, %c0_44] : memref<27x64xbf16, #tpu.memory_space<vmem>>, vector<3x64xbf16>
    %cst_45 = arith.constant dense<0.000000e+00> : vector<256x64xf32>
    %63 = tpu.matmul %61, %62, %cst_45 {dimension_numbers = #tpu.dot_dimension_numbers<[1], [0], [0], [1], [0, 0, 1, 1], [], []>} : vector<256x3xbf16>, vector<3x64xbf16>, vector<256x64xf32> -> vector<256x64xf32>
    %64 = arith.addf %56, %63 : vector<256x64xf32>
    %c0_46 = arith.constant 0 : index
    %c2_47 = arith.constant 2 : index
    %c2_48 = arith.constant 2 : index
    %c0_49 = arith.constant 0 : index
    %65 = vector.load %arg2[%c0_46, %c2_47, %c2_48, %c0_49] : memref<1x18x18x3xbf16, #tpu.memory_space<vmem>>, vector<1x16x16x3xbf16>
    %66 = vector.shape_cast %65 : vector<1x16x16x3xbf16> to vector<16x16x3xbf16>
    %67 = arith.extf %66 : vector<16x16x3xbf16> to vector<16x16x3xf32>
    %68 = vector.shape_cast %67 : vector<16x16x3xf32> to vector<256x3xf32>
    %69 = arith.truncf %68 : vector<256x3xf32> to vector<256x3xbf16>
    %c24 = arith.constant 24 : index
    %c0_50 = arith.constant 0 : index
    %70 = vector.load %arg3[%c24, %c0_50] : memref<27x64xbf16, #tpu.memory_space<vmem>>, vector<3x64xbf16>
    %cst_51 = arith.constant dense<0.000000e+00> : vector<256x64xf32>
    %71 = tpu.matmul %69, %70, %cst_51 {dimension_numbers = #tpu.dot_dimension_numbers<[1], [0], [0], [1], [0, 0, 1, 1], [], []>} : vector<256x3xbf16>, vector<3x64xbf16>, vector<256x64xf32> -> vector<256x64xf32>
    %72 = arith.addf %64, %71 : vector<256x64xf32>
    %c0_52 = arith.constant 0 : index
    %c0_53 = arith.constant 0 : index
    %73 = vector.load %arg4[%c0_52, %c0_53] : memref<1x64xf32, #tpu.memory_space<vmem>>, vector<1x64xf32>
    %74 = vector.broadcast %73 : vector<1x64xf32> to vector<256x64xf32>
    %75 = arith.addf %72, %74 : vector<256x64xf32>
    %cst_54 = arith.constant 0.000000e+00 : f32
    %76 = vector.broadcast %cst_54 : f32 to vector<256x64xf32>
    %77 = arith.maximumf %75, %76 : vector<256x64xf32>
    %78 = vector.shape_cast %77 : vector<256x64xf32> to vector<128x128xf32>
    %79 = arith.truncf %78 : vector<128x128xf32> to vector<128x128xbf16>
    %c0_55 = arith.constant 0 : index
    %c0_56 = arith.constant 0 : index
    %c0_57 = arith.constant 0 : index
    %80 = vector.load %arg5[%c0_55, %c0_56, %c0_57] : memref<1x128x128xbf16, #tpu.memory_space<vmem>>, vector<1x128x128xbf16>
    %81 = vector.shape_cast %80 : vector<1x128x128xbf16> to vector<128x128xbf16>
    %82 = vector.shape_cast %79 : vector<128x128xbf16> to vector<1x128x128xbf16>
    tpu.vector_store %arg5[%c0_55, %c0_56, %c0_57], %82 {strides = array<i32>} : memref<1x128x128xbf16, #tpu.memory_space<vmem>>, vector<1x128x128xbf16>,
    return
  }
  func.func @transform_0(%arg0: i32, %arg1: i32) -> (i32, i32, i32, i32) {
    %c0_i32 = arith.constant 0 : i32
    %c0_i32_0 = arith.constant 0 : i32
    %c0_i32_1 = arith.constant 0 : i32
    %c0_i32_2 = arith.constant 0 : i32
    return %arg1, %c0_i32, %c0_i32_0, %c0_i32_1 : i32, i32, i32, i32
  }
  func.func @transform_1(%arg0: i32, %arg1: i32) -> (i32, i32) {
    %c0_i32 = arith.constant 0 : i32
    %c0_i32_0 = arith.constant 0 : i32
    return %c0_i32, %arg0 : i32, i32
  }
  func.func @transform_2(%arg0: i32, %arg1: i32) -> (i32, i32) {
    %c0_i32 = arith.constant 0 : i32
    %c0_i32_0 = arith.constant 0 : i32
    return %c0_i32, %arg0 : i32, i32
  }
  func.func @transform_3(%arg0: i32, %arg1: i32) -> (i32, i32, i32) {
    %c0_i32 = arith.constant 0 : i32
    %c0_i32_0 = arith.constant 0 : i32
    %c0_i32_1 = arith.constant 0 : i32
    return %arg1, %c0_i32, %c0_i32_0 : i32, i32, i32
  }
}

module attributes {stable_mosaic.version = 11 : i64} {
  func.func @_conv3x3_fused_kernel(%arg0: i32, %arg1: i32, %arg2: memref<1x18x18x3xbf16, #tpu.memory_space<vmem>>, %arg3: memref<27x64xbf16, #tpu.memory_space<vmem>>, %arg4: memref<1x64xf32, #tpu.memory_space<vmem>>, %arg5: memref<1x256x64xbf16, #tpu.memory_space<vmem>>) attributes {dimension_semantics = [#tpu.dimension_semantics<parallel>, #tpu.dimension_semantics<parallel>], iteration_bounds = array<i64: 1, 2>, scalar_prefetch = 0 : i64, scratch_operands = 0 : i64, tpu.core_type = #tpu.core_type<tc>, window_params = [{transform_indices = @transform_0, window_bounds = array<i64: 1, 18, 18, 3>}, {transform_indices = @transform_1, window_bounds = array<i64: 27, 64>}, {transform_indices = @transform_2, window_bounds = array<i64: 1, 64>}, {transform_indices = @transform_3, window_bounds = array<i64: 1, 256, 64>}]} {
    %cst = arith.constant 0.000000e+00 : f32
    %0 = vector.broadcast %cst : f32 to vector<256x64xf32>
    %c0 = arith.constant 0 : index
    %c0_0 = arith.constant 0 : index
    %c0_1 = arith.constant 0 : index
    %c0_2 = arith.constant 0 : index
    %1 = vector.load %arg2[%c0, %c0_0, %c0_1, %c0_2] : memref<1x18x18x3xbf16, #tpu.memory_space<vmem>>, vector<1x16x16x3xbf16>
    %2 = vector.shape_cast %1 : vector<1x16x16x3xbf16> to vector<16x16x3xbf16>
    %3 = arith.extf %2 : vector<16x16x3xbf16> to vector<16x16x3xf32>
    %4 = vector.shape_cast %3 : vector<16x16x3xf32> to vector<256x3xf32>
    %5 = arith.truncf %4 : vector<256x3xf32> to vector<256x3xbf16>
    %c0_3 = arith.constant 0 : index
    %c0_4 = arith.constant 0 : index
    %6 = vector.load %arg3[%c0_3, %c0_4] : memref<27x64xbf16, #tpu.memory_space<vmem>>, vector<3x64xbf16>
    %cst_5 = arith.constant dense<0.000000e+00> : vector<256x64xf32>
    %7 = tpu.matmul %5, %6, %cst_5 {dimension_numbers = #tpu.dot_dimension_numbers<[1], [0], [0], [1], [0, 0, 1, 1], [], []>} : vector<256x3xbf16>, vector<3x64xbf16>, vector<256x64xf32> -> vector<256x64xf32>
    %8 = arith.addf %0, %7 : vector<256x64xf32>
    %c0_6 = arith.constant 0 : index
    %c0_7 = arith.constant 0 : index
    %c1 = arith.constant 1 : index
    %c0_8 = arith.constant 0 : index
    %9 = vector.load %arg2[%c0_6, %c0_7, %c1, %c0_8] : memref<1x18x18x3xbf16, #tpu.memory_space<vmem>>, vector<1x16x16x3xbf16>
    %10 = vector.shape_cast %9 : vector<1x16x16x3xbf16> to vector<16x16x3xbf16>
    %11 = arith.extf %10 : vector<16x16x3xbf16> to vector<16x16x3xf32>
    %12 = vector.shape_cast %11 : vector<16x16x3xf32> to vector<256x3xf32>
    %13 = arith.truncf %12 : vector<256x3xf32> to vector<256x3xbf16>
    %c3 = arith.constant 3 : index
    %c0_9 = arith.constant 0 : index
    %14 = vector.load %arg3[%c3, %c0_9] : memref<27x64xbf16, #tpu.memory_space<vmem>>, vector<3x64xbf16>
    %cst_10 = arith.constant dense<0.000000e+00> : vector<256x64xf32>
    %15 = tpu.matmul %13, %14, %cst_10 {dimension_numbers = #tpu.dot_dimension_numbers<[1], [0], [0], [1], [0, 0, 1, 1], [], []>} : vector<256x3xbf16>, vector<3x64xbf16>, vector<256x64xf32> -> vector<256x64xf32>
    %16 = arith.addf %8, %15 : vector<256x64xf32>
    %c0_11 = arith.constant 0 : index
    %c0_12 = arith.constant 0 : index
    %c2 = arith.constant 2 : index
    %c0_13 = arith.constant 0 : index
    %17 = vector.load %arg2[%c0_11, %c0_12, %c2, %c0_13] : memref<1x18x18x3xbf16, #tpu.memory_space<vmem>>, vector<1x16x16x3xbf16>
    %18 = vector.shape_cast %17 : vector<1x16x16x3xbf16> to vector<16x16x3xbf16>
    %19 = arith.extf %18 : vector<16x16x3xbf16> to vector<16x16x3xf32>
    %20 = vector.shape_cast %19 : vector<16x16x3xf32> to vector<256x3xf32>
    %21 = arith.truncf %20 : vector<256x3xf32> to vector<256x3xbf16>
    %c6 = arith.constant 6 : index
    %c0_14 = arith.constant 0 : index
    %22 = vector.load %arg3[%c6, %c0_14] : memref<27x64xbf16, #tpu.memory_space<vmem>>, vector<3x64xbf16>
    %cst_15 = arith.constant dense<0.000000e+00> : vector<256x64xf32>
    %23 = tpu.matmul %21, %22, %cst_15 {dimension_numbers = #tpu.dot_dimension_numbers<[1], [0], [0], [1], [0, 0, 1, 1], [], []>} : vector<256x3xbf16>, vector<3x64xbf16>, vector<256x64xf32> -> vector<256x64xf32>
    %24 = arith.addf %16, %23 : vector<256x64xf32>
    %c0_16 = arith.constant 0 : index
    %c1_17 = arith.constant 1 : index
    %c0_18 = arith.constant 0 : index
    %c0_19 = arith.constant 0 : index
    %25 = vector.load %arg2[%c0_16, %c1_17, %c0_18, %c0_19] : memref<1x18x18x3xbf16, #tpu.memory_space<vmem>>, vector<1x16x16x3xbf16>
    %26 = vector.shape_cast %25 : vector<1x16x16x3xbf16> to vector<16x16x3xbf16>
    %27 = arith.extf %26 : vector<16x16x3xbf16> to vector<16x16x3xf32>
    %28 = vector.shape_cast %27 : vector<16x16x3xf32> to vector<256x3xf32>
    %29 = arith.truncf %28 : vector<256x3xf32> to vector<256x3xbf16>
    %c9 = arith.constant 9 : index
    %c0_20 = arith.constant 0 : index
    %30 = vector.load %arg3[%c9, %c0_20] : memref<27x64xbf16, #tpu.memory_space<vmem>>, vector<3x64xbf16>
    %cst_21 = arith.constant dense<0.000000e+00> : vector<256x64xf32>
    %31 = tpu.matmul %29, %30, %cst_21 {dimension_numbers = #tpu.dot_dimension_numbers<[1], [0], [0], [1], [0, 0, 1, 1], [], []>} : vector<256x3xbf16>, vector<3x64xbf16>, vector<256x64xf32> -> vector<256x64xf32>
    %32 = arith.addf %24, %31 : vector<256x64xf32>
    %c0_22 = arith.constant 0 : index
    %c1_23 = arith.constant 1 : index
    %c1_24 = arith.constant 1 : index
    %c0_25 = arith.constant 0 : index
    %33 = vector.load %arg2[%c0_22, %c1_23, %c1_24, %c0_25] : memref<1x18x18x3xbf16, #tpu.memory_space<vmem>>, vector<1x16x16x3xbf16>
    %34 = vector.shape_cast %33 : vector<1x16x16x3xbf16> to vector<16x16x3xbf16>
    %35 = arith.extf %34 : vector<16x16x3xbf16> to vector<16x16x3xf32>
    %36 = vector.shape_cast %35 : vector<16x16x3xf32> to vector<256x3xf32>
    %37 = arith.truncf %36 : vector<256x3xf32> to vector<256x3xbf16>
    %c12 = arith.constant 12 : index
    %c0_26 = arith.constant 0 : index
    %38 = vector.load %arg3[%c12, %c0_26] : memref<27x64xbf16, #tpu.memory_space<vmem>>, vector<3x64xbf16>
    %cst_27 = arith.constant dense<0.000000e+00> : vector<256x64xf32>
    %39 = tpu.matmul %37, %38, %cst_27 {dimension_numbers = #tpu.dot_dimension_numbers<[1], [0], [0], [1], [0, 0, 1, 1], [], []>} : vector<256x3xbf16>, vector<3x64xbf16>, vector<256x64xf32> -> vector<256x64xf32>
    %40 = arith.addf %32, %39 : vector<256x64xf32>
    %c0_28 = arith.constant 0 : index
    %c1_29 = arith.constant 1 : index
    %c2_30 = arith.constant 2 : index
    %c0_31 = arith.constant 0 : index
    %41 = vector.load %arg2[%c0_28, %c1_29, %c2_30, %c0_31] : memref<1x18x18x3xbf16, #tpu.memory_space<vmem>>, vector<1x16x16x3xbf16>
    %42 = vector.shape_cast %41 : vector<1x16x16x3xbf16> to vector<16x16x3xbf16>
    %43 = arith.extf %42 : vector<16x16x3xbf16> to vector<16x16x3xf32>
    %44 = vector.shape_cast %43 : vector<16x16x3xf32> to vector<256x3xf32>
    %45 = arith.truncf %44 : vector<256x3xf32> to vector<256x3xbf16>
    %c15 = arith.constant 15 : index
    %c0_32 = arith.constant 0 : index
    %46 = vector.load %arg3[%c15, %c0_32] : memref<27x64xbf16, #tpu.memory_space<vmem>>, vector<3x64xbf16>
    %cst_33 = arith.constant dense<0.000000e+00> : vector<256x64xf32>
    %47 = tpu.matmul %45, %46, %cst_33 {dimension_numbers = #tpu.dot_dimension_numbers<[1], [0], [0], [1], [0, 0, 1, 1], [], []>} : vector<256x3xbf16>, vector<3x64xbf16>, vector<256x64xf32> -> vector<256x64xf32>
    %48 = arith.addf %40, %47 : vector<256x64xf32>
    %c0_34 = arith.constant 0 : index
    %c2_35 = arith.constant 2 : index
    %c0_36 = arith.constant 0 : index
    %c0_37 = arith.constant 0 : index
    %49 = vector.load %arg2[%c0_34, %c2_35, %c0_36, %c0_37] : memref<1x18x18x3xbf16, #tpu.memory_space<vmem>>, vector<1x16x16x3xbf16>
    %50 = vector.shape_cast %49 : vector<1x16x16x3xbf16> to vector<16x16x3xbf16>
    %51 = arith.extf %50 : vector<16x16x3xbf16> to vector<16x16x3xf32>
    %52 = vector.shape_cast %51 : vector<16x16x3xf32> to vector<256x3xf32>
    %53 = arith.truncf %52 : vector<256x3xf32> to vector<256x3xbf16>
    %c18 = arith.constant 18 : index
    %c0_38 = arith.constant 0 : index
    %54 = vector.load %arg3[%c18, %c0_38] : memref<27x64xbf16, #tpu.memory_space<vmem>>, vector<3x64xbf16>
    %cst_39 = arith.constant dense<0.000000e+00> : vector<256x64xf32>
    %55 = tpu.matmul %53, %54, %cst_39 {dimension_numbers = #tpu.dot_dimension_numbers<[1], [0], [0], [1], [0, 0, 1, 1], [], []>} : vector<256x3xbf16>, vector<3x64xbf16>, vector<256x64xf32> -> vector<256x64xf32>
    %56 = arith.addf %48, %55 : vector<256x64xf32>
    %c0_40 = arith.constant 0 : index
    %c2_41 = arith.constant 2 : index
    %c1_42 = arith.constant 1 : index
    %c0_43 = arith.constant 0 : index
    %57 = vector.load %arg2[%c0_40, %c2_41, %c1_42, %c0_43] : memref<1x18x18x3xbf16, #tpu.memory_space<vmem>>, vector<1x16x16x3xbf16>
    %58 = vector.shape_cast %57 : vector<1x16x16x3xbf16> to vector<16x16x3xbf16>
    %59 = arith.extf %58 : vector<16x16x3xbf16> to vector<16x16x3xf32>
    %60 = vector.shape_cast %59 : vector<16x16x3xf32> to vector<256x3xf32>
    %61 = arith.truncf %60 : vector<256x3xf32> to vector<256x3xbf16>
    %c21 = arith.constant 21 : index
    %c0_44 = arith.constant 0 : index
    %62 = vector.load %arg3[%c21, %c0_44] : memref<27x64xbf16, #tpu.memory_space<vmem>>, vector<3x64xbf16>
    %cst_45 = arith.constant dense<0.000000e+00> : vector<256x64xf32>
    %63 = tpu.matmul %61, %62, %cst_45 {dimension_numbers = #tpu.dot_dimension_numbers<[1], [0], [0], [1], [0, 0, 1, 1], [], []>} : vector<256x3xbf16>, vector<3x64xbf16>, vector<256x64xf32> -> vector<256x64xf32>
    %64 = arith.addf %56, %63 : vector<256x64xf32>
    %c0_46 = arith.constant 0 : index
    %c2_47 = arith.constant 2 : index
    %c2_48 = arith.constant 2 : index
    %c0_49 = arith.constant 0 : index
    %65 = vector.load %arg2[%c0_46, %c2_47, %c2_48, %c0_49] : memref<1x18x18x3xbf16, #tpu.memory_space<vmem>>, vector<1x16x16x3xbf16>
    %66 = vector.shape_cast %65 : vector<1x16x16x3xbf16> to vector<16x16x3xbf16>
    %67 = arith.extf %66 : vector<16x16x3xbf16> to vector<16x16x3xf32>
    %68 = vector.shape_cast %67 : vector<16x16x3xf32> to vector<256x3xf32>
    %69 = arith.truncf %68 : vector<256x3xf32> to vector<256x3xbf16>
    %c24 = arith.constant 24 : index
    %c0_50 = arith.constant 0 : index
    %70 = vector.load %arg3[%c24, %c0_50] : memref<27x64xbf16, #tpu.memory_space<vmem>>, vector<3x64xbf16>
    %cst_51 = arith.constant dense<0.000000e+00> : vector<256x64xf32>
    %71 = tpu.matmul %69, %70, %cst_51 {dimension_numbers = #tpu.dot_dimension_numbers<[1], [0], [0], [1], [0, 0, 1, 1], [], []>} : vector<256x3xbf16>, vector<3x64xbf16>, vector<256x64xf32> -> vector<256x64xf32>
    %72 = arith.addf %64, %71 : vector<256x64xf32>
    %c0_52 = arith.constant 0 : index
    %c0_53 = arith.constant 0 : index
    %73 = vector.load %arg4[%c0_52, %c0_53] : memref<1x64xf32, #tpu.memory_space<vmem>>, vector<1x64xf32>
    %74 = vector.broadcast %73 : vector<1x64xf32> to vector<256x64xf32>
    %75 = arith.addf %72, %74 : vector<256x64xf32>
    %cst_54 = arith.constant 0.000000e+00 : f32
    %76 = vector.broadcast %cst_54 : f32 to vector<256x64xf32>
    %77 = arith.maximumf %75, %76 : vector<256x64xf32>
    %78 = arith.truncf %77 : vector<256x64xf32> to vector<256x64xbf16>
    %c0_55 = arith.constant 0 : index
    %c0_56 = arith.constant 0 : index
    %c0_57 = arith.constant 0 : index
    %79 = vector.load %arg5[%c0_55, %c0_56, %c0_57] : memref<1x256x64xbf16, #tpu.memory_space<vmem>>, vector<1x256x64xbf16>
    %80 = vector.shape_cast %79 : vector<1x256x64xbf16> to vector<256x64xbf16>
    %81 = vector.shape_cast %78 : vector<256x64xbf16> to vector<1x256x64xbf16>
    tpu.vector_store %arg5[%c0_55, %c0_56, %c0_57], %81 {strides = array<i32>} : memref<1x256x64xbf16, #tpu.memory_space<vmem>>, vector<1x256x64xbf16>,
    return
  }
  func.func @transform_0(%arg0: i32, %arg1: i32) -> (i32, i32, i32, i32) {
    %c0_i32 = arith.constant 0 : i32
    %c0_i32_0 = arith.constant 0 : i32
    %c0_i32_1 = arith.constant 0 : i32
    %c0_i32_2 = arith.constant 0 : i32
    return %arg1, %c0_i32, %c0_i32_0, %c0_i32_1 : i32, i32, i32, i32
  }
  func.func @transform_1(%arg0: i32, %arg1: i32) -> (i32, i32) {
    %c0_i32 = arith.constant 0 : i32
    %c0_i32_0 = arith.constant 0 : i32
    return %c0_i32, %arg0 : i32, i32
  }
  func.func @transform_2(%arg0: i32, %arg1: i32) -> (i32, i32) {
    %c0_i32 = arith.constant 0 : i32
    %c0_i32_0 = arith.constant 0 : i32
    return %c0_i32, %arg0 : i32, i32
  }
  func.func @transform_3(%arg0: i32, %arg1: i32) -> (i32, i32, i32) {
    %c0_i32 = arith.constant 0 : i32
    %c0_i32_0 = arith.constant 0 : i32
    return %arg1, %c0_i32, %arg0 : i32, i32, i32
  }
}

module attributes {stable_mosaic.version = 11 : i64} {
  func.func @_conv_mm_kernel(%arg0: i32, %arg1: i32, %arg2: memref<256x27xbf16, #tpu.memory_space<vmem>>, %arg3: memref<27x64xbf16, #tpu.memory_space<vmem>>, %arg4: memref<1x64xf32, #tpu.memory_space<vmem>>, %arg5: memref<256x64xbf16, #tpu.memory_space<vmem>>) attributes {dimension_semantics = [#tpu.dimension_semantics<parallel>, #tpu.dimension_semantics<parallel>], iteration_bounds = array<i64: 1, 2>, scalar_prefetch = 0 : i64, scratch_operands = 0 : i64, tpu.core_type = #tpu.core_type<tc>, window_params = [{transform_indices = @transform_0, window_bounds = array<i64: 256, 27>}, {transform_indices = @transform_1, window_bounds = array<i64: 27, 64>}, {transform_indices = @transform_2, window_bounds = array<i64: 1, 64>}, {transform_indices = @transform_3, window_bounds = array<i64: 256, 64>}]} {
    %c0 = arith.constant 0 : index
    %c0_0 = arith.constant 0 : index
    %0 = vector.load %arg2[%c0, %c0_0] : memref<256x27xbf16, #tpu.memory_space<vmem>>, vector<256x27xbf16>
    %c0_1 = arith.constant 0 : index
    %c0_2 = arith.constant 0 : index
    %1 = vector.load %arg3[%c0_1, %c0_2] : memref<27x64xbf16, #tpu.memory_space<vmem>>, vector<27x64xbf16>
    %cst = arith.constant dense<0.000000e+00> : vector<256x64xf32>
    %2 = tpu.matmul %0, %1, %cst {dimension_numbers = #tpu.dot_dimension_numbers<[1], [0], [0], [1], [0, 0, 1, 1], [], []>} : vector<256x27xbf16>, vector<27x64xbf16>, vector<256x64xf32> -> vector<256x64xf32>
    %c0_3 = arith.constant 0 : index
    %c0_4 = arith.constant 0 : index
    %3 = vector.load %arg4[%c0_3, %c0_4] : memref<1x64xf32, #tpu.memory_space<vmem>>, vector<1x64xf32>
    %4 = vector.broadcast %3 : vector<1x64xf32> to vector<256x64xf32>
    %5 = arith.addf %2, %4 : vector<256x64xf32>
    %cst_5 = arith.constant 0.000000e+00 : f32
    %6 = vector.broadcast %cst_5 : f32 to vector<256x64xf32>
    %7 = arith.maximumf %5, %6 : vector<256x64xf32>
    %8 = arith.truncf %7 : vector<256x64xf32> to vector<256x64xbf16>
    %c0_6 = arith.constant 0 : index
    %c0_7 = arith.constant 0 : index
    %9 = vector.load %arg5[%c0_6, %c0_7] : memref<256x64xbf16, #tpu.memory_space<vmem>>, vector<256x64xbf16>
    tpu.vector_store %arg5[%c0_6, %c0_7], %8 {strides = array<i32>} : memref<256x64xbf16, #tpu.memory_space<vmem>>, vector<256x64xbf16>,
    return
  }
  func.func @transform_0(%arg0: i32, %arg1: i32) -> (i32, i32) {
    %c0_i32 = arith.constant 0 : i32
    %c0_i32_0 = arith.constant 0 : i32
    return %arg1, %c0_i32 : i32, i32
  }
  func.func @transform_1(%arg0: i32, %arg1: i32) -> (i32, i32) {
    %c0_i32 = arith.constant 0 : i32
    %c0_i32_0 = arith.constant 0 : i32
    return %c0_i32, %arg0 : i32, i32
  }
  func.func @transform_2(%arg0: i32, %arg1: i32) -> (i32, i32) {
    %c0_i32 = arith.constant 0 : i32
    %c0_i32_0 = arith.constant 0 : i32
    return %c0_i32, %arg0 : i32, i32
  }
  func.func @transform_3(%arg0: i32, %arg1: i32) -> (i32, i32) {
    %c0_i32 = arith.constant 0 : i32
    return %arg1, %arg0 : i32, i32
  }
}

</mosaic_0001>

<bundles_post_ra>
// kernel: tpu_custom_call.1
= control target key start
LH: loop header
LB: loop body
LE: loop exit
PB: predicated region body
PF: predicated region fallthrough
CT: control target
= control target key end

     0   :  { %6 = vsyncpa [#allocation3], 0  ;;  %s124_s0 = inlined_call_operand.hbm [shape: f32[8,128], index: 0, kind: input, shape index: {}]   ;;  %s125_s1 = inlined_call_operand.hbm [shape: f32[8,128], index: 1, kind: output, shape index: {}]  }
   0x1   :  { %7 = vsyncpa [#allocation4], 0  ;;  %s88_s6 = smov [#allocation2]   ;;  %s40_s10 = scalar_lea.hbm %s124_s0, 128 }
   0x2   :  { %s14_s7 = sshll.u32 %s88_s6, 4  ;;  %p41_p0 = scmp.ne.s32.totalorder %s124_s0, %s40_s10  ;;  %s15_s7 = int_to_ptr.vmem [resolvable:$true] %s14_s7 }
   0x3   :  { %p44_p1 = scmp.lt.u32.totalorder %s40_s10, %s124_s0 }
   0x5   :  { %p46_p2 = pnand %p44_p1, %p41_p0 }
   0x7   :  { %49 = shalt.err (!%p46_p2)
}
   0x8   :  { %s50_s15 = scalar_lea.vmem %s15_s7, 128  ;;  %p55_p4 = scmp.lt.s32.totalorder %s15_s7, %s15_s7 }
   0x9   :  { %p51_p3 = scmp.ne.s32.totalorder %s15_s7, %s50_s15  ;;  %p56_p5 = scmp.lt.s32.totalorder %s50_s15, %s50_s15 }
   0xb   :  { %p57_p6 = por %p56_p5, %p55_p4 }
   0xd   :  { %p58_p7 = pnand %p57_p6, %p51_p3 }
   0xf   :  { %61 = shalt.err (!%p58_p7)
}
  0x10   :  { %17 = dma.hbm_to_vmem [thread:$0]  %s124_s0, 128, %s15_s7, [#allocation3]  }
  0x11   :  { %84 = dma.done.wait [#allocation3], 128  }
  0x12   :  { %85 = vsyncadd [#allocation3], 4294967168  ;;  %s89_s18 = smov [#allocation5]   ;;  %v21_v0 = vld [vmem:[#allocation2] sm:$0xff] }
  0x13   :  { %s29_s19 = sshll.u32 %s89_s18, 4  ;;  %22 = vst [vmem:[#allocation5] sm:$0xff] %v21_v0  ;;  %s30_s19 = int_to_ptr.vmem [resolvable:$true] %s29_s19 }
  0x14   :  { %s62_s20 = scalar_lea.vmem %s30_s19, 128  ;;  %p67_p9 = scmp.lt.s32.totalorder %s30_s19, %s30_s19 }
  0x15   :  { %p63_p8 = scmp.ne.s32.totalorder %s30_s19, %s62_s20  ;;  %p68_p10 = scmp.lt.s32.totalorder %s62_s20, %s62_s20 }
  0x17   :  { %p69_p11 = por %p68_p10, %p67_p9 }
  0x19   :  { %p70_p12 = pnand %p69_p11, %p63_p8 }
  0x1b   :  { %73 = shalt.err (!%p70_p12)
}
  0x1c   :  { %s74_s23 = scalar_lea.hbm %s125_s1, 128 }
  0x1d   :  { %p75_p13 = scmp.ne.s32.totalorder %s125_s1, %s74_s23  ;;  %p78_p0 = scmp.lt.u32.totalorder %s74_s23, %s125_s1 }
  0x1f   :  { %p80_p1 = pnand %p78_p0, %p75_p13 }
  0x21   :  { %83 = shalt.err (!%p80_p1)
}
  0x22   :  { %32 = dma.vmem_to_hbm [thread:$0]  %s30_s19, 128, %s125_s1, [#allocation4]  }
  0x23   :  { %86 = dma.done.wait [#allocation4], 128  }
  0x24   :  { %87 = vsyncadd [#allocation4], 4294967168 }
  0x25   :  { %36 = vsyncpa [#allocation3], 1 }
  0x26   :  { %37 = vsyncpa [#allocation4], 1 }

// kernel: tpu_custom_call.1
= control target key start
LH: loop header
LB: loop body
LE: loop exit
PB: predicated region body
PF: predicated region fallthrough
CT: control target
= control target key end

     0   :  { %s5701_s12 = smov 0   ;;  %s5703_s13 = smov 0   ;;  %s7446_s0 = inlined_call_operand.vmem [shape: bf16[2,18,18,3], index: 0, kind: input, shape index: {}]   ;;  %s7447_s1 = inlined_call_operand.vmem [shape: bf16[27,64], index: 1, kind: input, shape index: {}]   ;;  %s7448_s2 = inlined_call_operand.vmem [shape: f32[1,64], index: 2, kind: input, shape index: {}]   ;;  %s7449_s3 = inlined_call_operand.vmem [shape: bf16[2,256,64], index: 3, kind: output, shape index: {}]  }
   0x1   :  { %s5705_s14 = smov 0  }
   0x2 LB: > { %s22_s15 = sadd.s32 1, %s5674_s13  ;;  %p4297_p0 = scmp.ge.s32.totalorder %s5678_s14, 1  ;;  %s5678_s14 = sphi %s5705_s14, %s13_s14   ;;  %s5674_s13 = sphi %s5703_s13, %s7687_s13   ;;  %s5670_s12 = sphi %s5701_s12, %s7686_s12  }
   0x3   : > { %p23_p1 = scmp.ge.s32.totalorder %s22_s15, 2  ;;  %p168_p2 = scmp.lt.s32.totalorder %s5678_s14, 3 }
   0x5   : > { %s7689_s15 = smov (%p23_p1, %s22_s15), 0  ;;  %p169_p3 = pnand %p4297_p0, %p168_p2 }
   0x7   : > { %172 = sbr.rel (%p169_p3) target bundleno = 546 (0x222), region = 32 }
   0xe   : > { %v5583_v0 = vld [vmem:[%s7447_s1] ss:$0 sps:$4 sm:$0x66]   ;;  %vm574_vm0 = vcmask 1040384   ;;  %vm575_vm1 = vcmask 1041408   ;;  %p202_p4 = scmp.lt.s32.totalorder %s5670_s12, 1 }
   0xf   : > { %v518_v1 = vshrl.u32 %v5583_v0, 16  ;;  %v521_v2 = vshll.u32 %v5583_v0, 16  ;;  %v5680_v3 = vmov 65535   ;;  %v5584_v5 = vld [vmem:[%s7447_s1 + $0x4] ss:$0 sps:$4 sm:$0xcc]  }
  0x10   : > { %v576_v4 = vsel %vm574_vm0, 4294967295, %v5680_v3  ;;  %s7691_s12 = smov (!%p202_p4, %s5670_s12), 1  ;;  %v303_v7 = vld [vmem:[%s7447_s1] sm:$0x3]  ;;  %v1995_v10 = vrot.slane %v5584_v5, 2  ;;  %vm384_vm2 = vcmask 1046528  }
  0x11   : > { %v5725_v6 = vsel %vm575_vm1, %v576_v4, 0  ;;  %v520_v8 = vrot.slane %v518_v1, 1  ;;  %v523_v9 = vrot.slane %v521_v2, 2  ;;  %s5557_s22 = smul.u32 216, %s7691_s12  ;;  %v5585_v11 = vld [vmem:[%s7447_s1 + $0x4] sm:$0x18]  }
  0x12   : > { %v5737_v13 = vand.u32 %v1995_v10, %v5725_v6  ;;  %v2424_v14 = vshrl.u32 %v5585_v11, 16  ;;  %v2427_v15 = vshll.u32 %v5585_v11, 16  ;;  %v5753_v19 = vand.u32 %v5725_v6, %v303_v7  ;;  %v5768_v33 = vld [vmem:[%s7447_s1 + $0x8] ss:$0 sps:$4 sm:$0x66]   ;;  %s4727_s17 = sshll.u32 %s7691_s12, 7 }
  0x13   : > { %v524_v12 = vor.u32 %v523_v9, %v520_v8  ;;  %s5742_s27 = scalar_lea.vmem %s7446_s0, %s5557_s22  ;;  %vm525_vm3 = vcmask 23552   ;;  %v2760_v50 = vrot.slane %v5768_v33, 1  ;;  %vm1002_vm4 = vcmask 1045504   ;;  %s7336_s20 = scalar_lea.vmem %s7449_s3, %s4727_s17 }
  0x14   : > { %7535 = vst [vmem:[#allocation2_spill] sm:$0xff] %v5737_v13  ;;  %5129 = vmatprep.subr.bf16.mxu0 %v5737_v13  ;;  %v5747_v17 = vld [vmem:[%s5742_s27] sm:$0xff]   ;;  %v5750_v18 = vld [vmem:[%s5742_s27 + $0x8] sm:$0x1]  ;;  %v4432_v20 = vld [vmem:[%s5742_s27 + $0xc] sm:$0xff]   ;;  %v2426_v28 = vrot.slane %v2424_v14, 3 }
  0x15   : > { %v579_v16 = vand.u32 %v5725_v6, %v524_v12  ;;  %5130 = vmatpush3.bf16.msra.mxu0 %v5737_v13  ;;  %v255_v21 = vunpack.c.l.bf16 %v5747_v17  ;;  %v7463_v22 = vunpack.c.h.bf16 %v5747_v17  ;;  %v7462_v23 = vunpack.c.l.bf16 %v5750_v18  ;;  %v4434_v24 = vld [vmem:[%s5742_s27 + $0x14] sm:$0x1]  ;;  %v5772_v37 = vld [vmem:[%s5742_s27 + $0xc] sm:$0xff]   ;;  %v4824_v41 = vld [vmem:[%s5742_s27 + $0x18] sm:$0xff]  }
  0x16   : > { %v1767_v25 = vunpack.c.l.bf16 %v4432_v20  ;;  %v1768_v26 = vunpack.c.h.bf16 %v4432_v20  ;;  %v1769_v27 = vunpack.c.l.bf16 %v4434_v24  ;;  %v2429_v29 = vrot.slane %v2427_v15, 4  ;;  %v5777_v40 = vld [vmem:[%s5742_s27 + $0x14] sm:$0x1]  ;;  %v4437_v46 = vld [vmem:[%s5742_s27 + $0x20] sm:$0x1]  ;;  %v5795_v59 = vld [vmem:[%s5742_s27 + $0x18] sm:$0xff]  }
  0x17   : > { %4993 = vmatprep.subr.bf16.mxu1 %v579_v16  ;;  %v385_v30 = vrot.slane %v255_v21, 1  ;;  %v386_v31 = vrot.slane %v7463_v22, 1  ;;  %v388_v32 = vrot.slane %v7462_v23, 1  ;;  %v257_v48 = vunpack.c.l.bf16 %v5772_v37  ;;  %v5798_v60 = vld [vmem:[%s5742_s27 + $0x20] sm:$0x1]  ;;  %v5805_v1 = vld [vmem:[%s5742_s27 + $0x24] sm:$0xff]  }
  0x18   : > { %4994 = vmatpush3.bf16.msra.mxu1 %v579_v16  ;;  %v1863_v34 = vrot.slane %v1767_v25, 1  ;;  %v1864_v35 = vrot.slane %v1768_v26, 1  ;;  %v1866_v36 = vrot.slane %v1769_v27, 1  ;;  %v2430_v45 = vor.u32 %v2429_v29, %v2426_v28  ;;  %v5817_v11 = vld [vmem:[%s5742_s27 + $0x2c] sm:$0x1]  ;;  %v5820_v12 = vld [vmem:[%s5742_s27 + $0x24] sm:$0xff]  }
  0x19   : > { %5027 = vmatprep.subr.bf16.mxu1 %v5753_v19  ;;  %v387_v38 = vsel %vm384_vm2, %v385_v30, %v386_v31  ;;  %v389_v39 = vsel %vm384_vm2, %v386_v31, %v388_v32  ;;  %v7461_v49 = vunpack.c.h.bf16 %v5772_v37  ;;  %v7460_v52 = vunpack.c.l.bf16 %v5777_v40  ;;  %v5826_v21 = vld [vmem:[%s5742_s27 + $0x2c] sm:$0x1]  ;;  %v5832_v28 = vld [vmem:[%s5742_s27 + $0x30] sm:$0xff]  }
  0x1a   : > { %v497_v42 = vpack.c.bf16 %v389_v39, %v387_v38  ;;  %v1865_v43 = vsel %vm384_vm2, %v1863_v34, %v1864_v35  ;;  %v1867_v44 = vsel %vm384_vm2, %v1864_v35, %v1866_v36  ;;  %v2480_v51 = vand.u32 %v2430_v45, %v5725_v6  ;;  %v5847_v39 = vld [vmem:[%s5742_s27 + $0x38] sm:$0x1] }
  0x1b   : > { %v1975_v47 = vpack.c.bf16 %v1867_v44, %v1865_v43  ;;  %v4762_v53 = vunpack.c.l.bf16 %v4824_v41  ;;  %v4763_v54 = vunpack.c.h.bf16 %v4824_v41  ;;  %v5790_v55 = vrot.slane %v1768_v26, 2  ;;  %v5854_v44 = vld [vmem:[%s5742_s27 + $0x30] sm:$0xff]  }
  0x1c   : > { %4995 = vmatprep.mubr.msk.bf16.mxu1 %vm525_vm3, %v497_v42  ;;  %v390_v56 = vrot.slane %v257_v48, 1  ;;  %v391_v57 = vrot.slane %v7461_v49, 1  ;;  %v1772_v58 = vunpack.c.l.bf16 %v4437_v46  ;;  %v5800_v61 = vrot.slane %v1769_v27, 2  ;;  %5163 = vmatprep.subr.bf16.mxu0 %v2480_v51 }
  0x1d   : > { %5131 = vmatprep.mubr.msk.bf16.mxu0 %vm525_vm3, %v1975_v47  ;;  %v393_v62 = vrot.slane %v7460_v52, 1  ;;  %v1868_v63 = vrot.slane %v4762_v53, 1  ;;  %v1869_v0 = vrot.slane %v4763_v54, 1  ;;  %v5808_v4 = vrot.slane %v4763_v54, 2 }
  0x1e   : > { %v392_v2 = vsel %vm384_vm2, %v390_v56, %v391_v57  ;;  %v1871_v3 = vrot.slane %v1772_v58, 1  ;;  %v5810_v5 = vrot.slane %v1772_v58, 2  ;;  %v259_v9 = vunpack.c.l.bf16 %v5795_v59  ;;  %v5868_v58 = vld [vmem:[%s5742_s27 + $0x3c] sm:$0xff]  }
  0x1f   : > { %v394_v7 = vsel %vm384_vm2, %v391_v57, %v393_v62  ;;  %v1870_v8 = vsel %vm384_vm2, %v1868_v63, %v1869_v0  ;;  %v7459_v10 = vunpack.c.h.bf16 %v5795_v59  ;;  %v7457_v16 = vunpack.c.l.bf16 %v5798_v60  ;;  %v5865_v57 = vld [vmem:[%s5742_s27 + $0x38] sm:$0x1] }
  0x20   : > { %v498_v14 = vpack.c.bf16 %v394_v7, %v392_v2  ;;  %v1872_v15 = vsel %vm384_vm2, %v1869_v0, %v1871_v3  ;;  %v1773_v20 = vunpack.c.l.bf16 %v5805_v1  ;;  %v395_v25 = vrot.slane %v259_v9, 1  ;;  %v5875_v3 = vld [vmem:[%s5742_s27 + $0x44] sm:$0x1] }
  0x21   : > { %v1976_v24 = vpack.c.bf16 %v1872_v15, %v1870_v8  ;;  %v396_v26 = vrot.slane %v7459_v10, 1  ;;  %v1774_v27 = vunpack.c.h.bf16 %v5805_v1  ;;  %v398_v29 = vrot.slane %v7457_v16, 1 }
  0x22   : > { %4996 = vmatmul.mubr.msk.bf16.vlgmr.msra.gmra.mrb[0].mxu1 %vm525_vm3, %v498_v14  ;;  %v1775_v30 = vunpack.c.l.bf16 %v5817_v11  ;;  %v1873_v31 = vrot.slane %v1773_v20, 1  ;;  %v261_v32 = vunpack.c.l.bf16 %v5820_v12  ;;  %v7456_v36 = vunpack.c.h.bf16 %v5820_v12 }
  0x23   : > { %5028 = vmatpush3.bf16.msra.mxu1 %v5753_v19  ;;  %5132 = vmatmul.mubr.msk.bf16.vlgmr.msra.gmra.mrb[0].mxu0 %vm525_vm3, %v1976_v24  ;;  %v397_v34 = vsel %vm384_vm2, %v395_v25, %v396_v26  ;;  %v1874_v35 = vrot.slane %v1774_v27, 1  ;;  %v7454_v38 = vunpack.c.l.bf16 %v5826_v21  ;;  %v399_v41 = vsel %vm384_vm2, %v396_v26, %v398_v29  ;;  %v5887_v26 = vld [vmem:[%s5742_s27 + $0x3c] sm:$0xff]  }
  0x24   : > { %5164 = vmatpush3.bf16.msra.mxu0 %v2480_v51  ;;  %v1876_v19 = vrot.slane %v1775_v30, 1  ;;  %v400_v42 = vrot.slane %v261_v32, 1  ;;  %v4766_v43 = vunpack.c.l.bf16 %v5832_v28  ;;  %v499_v45 = vpack.c.bf16 %v399_v41, %v397_v34  ;;  %v5899_v41 = vld [vmem:[%s5742_s27 + $0x48] sm:$0xff]  }
  0x25   : > { %v1875_v46 = vsel %vm384_vm2, %v1873_v31, %v1874_v35  ;;  %v401_v47 = vrot.slane %v7456_v36, 1  ;;  %v403_v48 = vrot.slane %v7454_v38, 1  ;;  %v4767_v53 = vunpack.c.h.bf16 %v5832_v28 }
  0x26   : > { %v1877_v51 = vsel %vm384_vm2, %v1874_v35, %v1876_v19  ;;  %v1778_v54 = vunpack.c.l.bf16 %v5847_v39  ;;  %v1878_v56 = vrot.slane %v4766_v43, 1  ;;  %4999 = vmatprep.mubr.msk.bf16.mxu1 %vm525_vm3, %v499_v45  ;;  %v263_v2 = vunpack.c.l.bf16 %v5854_v44  ;;  %v5896_v35 = vld [vmem:[%s5742_s27 + $0x44] sm:$0x1] }
  0x27   : > { %v1977_v62 = vpack.c.bf16 %v1877_v51, %v1875_v46  ;;  %v402_v63 = vsel %vm384_vm2, %v400_v42, %v401_v47  ;;  %v404_v0 = vsel %vm384_vm2, %v401_v47, %v403_v48  ;;  %v1879_v8 = vrot.slane %v4767_v53, 1 }
  0x28   : > { %v500_v7 = vpack.c.bf16 %v404_v0, %v402_v63  ;;  %v1881_v9 = vrot.slane %v1778_v54, 1  ;;  %v7453_v14 = vunpack.c.h.bf16 %v5854_v44  ;;  %v7452_v15 = vunpack.c.l.bf16 %v5865_v57 }
  0x29   : > { %5135 = vmatprep.mubr.msk.bf16.mxu0 %vm525_vm3, %v1977_v62  ;;  %v405_v20 = vrot.slane %v263_v2, 1  ;;  %v1779_v24 = vunpack.c.l.bf16 %v5868_v58  ;;  %v1780_v25 = vunpack.c.h.bf16 %v5868_v58  ;;  %v1880_v29 = vsel %vm384_vm2, %v1878_v56, %v1879_v8  ;;  %v5911_v56 = vld [vmem:[%s5742_s27 + $0x50] sm:$0x1] }
  0x2a   : > { %5000 = vmatmul.mubr.msk.bf16.gmra.mrb[4].mxu1 %vm525_vm3, %v500_v7  ;;  %v1882_v31 = vsel %vm384_vm2, %v1879_v8, %v1881_v9  ;;  %v406_v32 = vrot.slane %v7453_v14, 1  ;;  %v7472_v34 = vunpack.c.l.bf16 %v5875_v3  ;;  %v408_v42 = vrot.slane %v7452_v15, 1  ;;  %v5919_v7 = vld [vmem:[%s5742_s27 + $0x48] sm:$0xff]  }
  0x2b   : > { %v1978_v19 = vpack.c.bf16 %v1882_v31, %v1880_v29  ;;  %v1883_v43 = vrot.slane %v1779_v24, 1  ;;  %v1884_v45 = vrot.slane %v1780_v25, 1  ;;  %v265_v48 = vunpack.c.l.bf16 %v5887_v26  ;;  %v5925_v29 = vld [vmem:[%s5742_s27 + $0x50] sm:$0x1] }
  0x2c   : > { %v407_v46 = vsel %vm384_vm2, %v405_v20, %v406_v32  ;;  %v1886_v47 = vrot.slane %v7472_v34, 1  ;;  %v7451_v51 = vunpack.c.h.bf16 %v5887_v26  ;;  %v409_v62 = vsel %vm384_vm2, %v406_v32, %v408_v42  ;;  %v4498_v34 = vld [vmem:[%s5742_s27 + $0x18] sm:$0xe] }
  0x2d   : > { %5136 = vmatmul.mubr.msk.bf16.gmra.mrb[4].mxu0 %vm525_vm3, %v1978_v19  ;;  %v1885_v63 = vsel %vm384_vm2, %v1883_v43, %v1884_v45  ;;  %v7450_v0 = vunpack.c.l.bf16 %v5896_v35  ;;  %v4770_v2 = vunpack.c.l.bf16 %v5899_v41  ;;  %v501_v8 = vpack.c.bf16 %v409_v62, %v407_v46  ;;  %v5932_v43 = vld [vmem:[%s5742_s27 + $0x54] sm:$0xff]  }
  0x2e   : > { %v1887_v9 = vsel %vm384_vm2, %v1884_v45, %v1886_v47  ;;  %v410_v20 = vrot.slane %v265_v48, 1  ;;  %v411_v24 = vrot.slane %v7451_v51, 1  ;;  %v7471_v19 = vunpack.c.h.bf16 %v5899_v41  ;;  %v5955_v51 = vld [vmem:[%s5742_s27 + $0x5c] sm:$0x1] }
  0x2f   : > { %v1979_v31 = vpack.c.bf16 %v1887_v9, %v1885_v63  ;;  %v413_v32 = vrot.slane %v7450_v0, 1  ;;  %v7467_v42 = vunpack.c.l.bf16 %v5911_v56  ;;  %5003 = vmatprep.mubr.msk.bf16.mxu1 %vm525_vm3, %v501_v8  ;;  %v1888_v46 = vrot.slane %v4770_v2, 1 }
  0x30   : > { %v412_v45 = vsel %vm384_vm2, %v410_v20, %v411_v24  ;;  %v267_v47 = vunpack.c.l.bf16 %v5919_v7  ;;  %v7455_v48 = vunpack.c.h.bf16 %v5919_v7  ;;  %v1889_v63 = vrot.slane %v7471_v19, 1  ;;  %v5946_v20 = vld [vmem:[%s5742_s27 + $0x5c] sm:$0x1] }
  0x31   : > { %5139 = vmatprep.mubr.msk.bf16.mxu0 %vm525_vm3, %v1979_v31  ;;  %v414_v62 = vsel %vm384_vm2, %v411_v24, %v413_v32  ;;  %v1891_v8 = vrot.slane %v7467_v42, 1  ;;  %v7458_v9 = vunpack.c.l.bf16 %v5925_v29  ;;  %v1785_v24 = vunpack.c.l.bf16 %v5932_v43  ;;  %v5952_v32 = vld [vmem:[%s5742_s27 + $0x54] sm:$0xff]  }
  0x32   : > { %v502_v2 = vpack.c.bf16 %v414_v62, %v412_v45  ;;  %v415_v0 = vrot.slane %v267_v47, 1  ;;  %v416_v31 = vrot.slane %v7455_v48, 1  ;;  %v1890_v15 = vsel %vm384_vm2, %v1888_v46, %v1889_v63  ;;  %v5963_v47 = vld [vmem:[%s5742_s27 + $0x60] sm:$0xff]   ;;  %v5969_v46 = vld [vmem:[%s5742_s27 + $0x68] sm:$0x1] }
  0x33   : > { %v1892_v14 = vsel %vm384_vm2, %v1889_v63, %v1891_v8  ;;  %v418_v38 = vrot.slane %v7458_v9, 1  ;;  %v7465_v45 = vunpack.c.h.bf16 %v5932_v43  ;;  %v7464_v36 = vunpack.c.l.bf16 %v5946_v20  ;;  %v6002_v42 = vld [vmem:[%s5742_s27 + $0x74] sm:$0x1] }
  0x34   : > { %5004 = vmatmul.mubr.msk.bf16.gmra.mrb[8].mxu1 %vm525_vm3, %v502_v2  ;;  %v1980_v62 = vpack.c.bf16 %v1892_v14, %v1890_v15  ;;  %v417_v48 = vsel %vm384_vm2, %v415_v0, %v416_v31  ;;  %v1893_v16 = vrot.slane %v1785_v24, 1  ;;  %v269_v9 = vunpack.c.l.bf16 %v5952_v32  ;;  %v5977_v2 = vld [vmem:[%s5742_s27 + $0x68] sm:$0x1] }
  0x35   : > { %v419_v63 = vsel %vm384_vm2, %v416_v31, %v418_v38  ;;  %v1894_v8 = vrot.slane %v7465_v45, 1  ;;  %v7466_v10 = vunpack.c.h.bf16 %v5952_v32  ;;  %v1896_v15 = vrot.slane %v7464_v36, 1  ;;  %v5985_v38 = vld [vmem:[%s5742_s27 + $0x60] sm:$0xff]   ;;  %v4497_v31 = vld [vmem:[%s5742_s27 + $0xc] sm:$0xe] }
  0x36   : > { %5140 = vmatmul.mubr.msk.bf16.gmra.mrb[8].mxu0 %vm525_vm3, %v1980_v62  ;;  %v503_v14 = vpack.c.bf16 %v419_v63, %v417_v48  ;;  %v7468_v0 = vunpack.c.l.bf16 %v5955_v51  ;;  %v4774_v24 = vunpack.c.l.bf16 %v5963_v47  ;;  %v420_v49 = vrot.slane %v269_v9, 1 }
  0x37   : > { %v1895_v52 = vsel %vm384_vm2, %v1893_v16, %v1894_v8  ;;  %v421_v23 = vrot.slane %v7466_v10, 1  ;;  %v7469_v48 = vunpack.c.h.bf16 %v5963_v47  ;;  %v1897_v62 = vsel %vm384_vm2, %v1894_v8, %v1896_v15 }
  0x38   : > { %5007 = vmatprep.mubr.msk.bf16.mxu1 %vm525_vm3, %v503_v14  ;;  %v423_v63 = vrot.slane %v7468_v0, 1  ;;  %v7470_v22 = vunpack.c.l.bf16 %v5969_v46  ;;  %v1898_v36 = vrot.slane %v4774_v24, 1  ;;  %v1981_v45 = vpack.c.bf16 %v1897_v62, %v1895_v52  ;;  %v6010_v52 = vld [vmem:[%s5742_s27 + $0x6c] sm:$0xff]  }
  0x39   : > { %v422_v16 = vsel %vm384_vm2, %v420_v49, %v421_v23  ;;  %v1899_v9 = vrot.slane %v7469_v48, 1  ;;  %v271_v10 = vunpack.c.l.bf16 %v5985_v38  ;;  %v7490_v15 = vunpack.c.h.bf16 %v5985_v38 }
  0x3a   : > { %v424_v14 = vsel %vm384_vm2, %v421_v23, %v423_v63  ;;  %v1901_v8 = vrot.slane %v7470_v22, 1  ;;  %v7475_v24 = vunpack.c.l.bf16 %v5977_v2  ;;  %5143 = vmatprep.mubr.msk.bf16.mxu0 %vm525_vm3, %v1981_v45  ;;  %v2256_v48 = vunpack.c.l.bf16 %v4497_v31 }
  0x3b   : > { %v504_v49 = vpack.c.bf16 %v424_v14, %v422_v16  ;;  %v1900_v62 = vsel %vm384_vm2, %v1898_v36, %v1899_v9  ;;  %v425_v0 = vrot.slane %v271_v10, 1  ;;  %v426_v63 = vrot.slane %v7490_v15, 1  ;;  %v6029_v16 = vld [vmem:[%s5742_s27 + $0x78] sm:$0xff]  }
  0x3c   : > { %v1902_v23 = vsel %vm384_vm2, %v1899_v9, %v1901_v8  ;;  %v428_v22 = vrot.slane %v7475_v24, 1  ;;  %v2292_v19 = vsel %vm1002_vm4, %v5790_v55, %v5800_v61  ;;  %v2288_v10 = vrot.slane %v2256_v48, 2 }
  0x3d   : > { %5008 = vmatmul.mubr.msk.bf16.gmra.mrb[12].mxu1 %vm525_vm3, %v504_v49  ;;  %v1982_v45 = vpack.c.bf16 %v1902_v23, %v1900_v62  ;;  %v2810_v36 = vand.u32 %v2760_v50, %v5725_v6  ;;  %v273_v31 = vunpack.c.l.bf16 %v6010_v52  ;;  %v427_v9 = vsel %vm384_vm2, %v425_v0, %v426_v63  ;;  %v6036_v49 = vld [vmem:[%s5742_s27 + $0x80] sm:$0x1]  ;;  %v4499_v23 = vld [vmem:[%s5742_s27 + $0x24] sm:$0xe] }
  0x3e   : > { %v429_v14 = vsel %vm384_vm2, %v426_v63, %v428_v22  ;;  %v7474_v61 = vunpack.c.h.bf16 %v6010_v52  ;;  %v7473_v8 = vunpack.c.l.bf16 %v6002_v42  ;;  %v2290_v33 = vsel %vm1002_vm4, %v2288_v10, %v5790_v55 }
  0x3f   : > { %5144 = vmatmul.mubr.msk.bf16.gmra.mrb[12].mxu0 %vm525_vm3, %v1982_v45  ;;  %v505_v48 = vpack.c.bf16 %v429_v14, %v427_v9  ;;  %5197 = vmatprep.subr.bf16.mxu0 %v2810_v36  ;;  %v430_v50 = vrot.slane %v273_v31, 1  ;;  %v2257_v62 = vunpack.c.l.bf16 %v4498_v34  ;;  %v2400_v0 = vpack.c.bf16 %v2292_v19, %v2290_v33  ;;  %v6054_v31 = vld [vmem:[%s5742_s27 + $0x8c] sm:$0x1] }
  0x40   : > { %v431_v22 = vrot.slane %v7474_v61, 1  ;;  %v433_v63 = vrot.slane %v7473_v8, 1  ;;  %v2297_v45 = vsel %vm1002_vm4, %v5808_v4, %v5810_v5  ;;  %v275_v10 = vunpack.c.l.bf16 %v6029_v16 }
  0x41   : > { %5011 = vmatprep.mubr.msk.bf16.mxu1 %vm525_vm3, %v505_v48  ;;  %v2293_v55 = vrot.slane %v2257_v62, 2  ;;  %v7489_v34 = vunpack.c.h.bf16 %v6029_v16  ;;  %v7476_v19 = vunpack.c.l.bf16 %v6036_v49  ;;  %5165 = vmatprep.mubr.msk.bf16.mxu0 %vm525_vm3, %v2400_v0  ;;  %v2258_v33 = vunpack.c.l.bf16 %v4499_v23  ;;  %v6062_v48 = vld [vmem:[%s5742_s27 + $0x84] sm:$0xff]   ;;  %v4500_v62 = vld [vmem:[%s5742_s27 + $0x30] sm:$0xe] }
  0x42   : > { %v432_v9 = vsel %vm384_vm2, %v430_v50, %v431_v22  ;;  %v434_v14 = vsel %vm384_vm2, %v431_v22, %v433_v63  ;;  %v2299_v5 = vrot.slane %v1774_v27, 2  ;;  %v435_v24 = vrot.slane %v275_v10, 1  ;;  %v6079_v10 = vld [vmem:[%s5742_s27 + $0x90] sm:$0xff]  }
  0x43   : > { %v506_v8 = vpack.c.bf16 %v434_v14, %v432_v9  ;;  %v2295_v61 = vsel %vm1002_vm4, %v2293_v55, %v5808_v4  ;;  %v436_v0 = vrot.slane %v7489_v34, 1  ;;  %v438_v23 = vrot.slane %v7476_v19, 1  ;;  %v6085_v9 = vld [vmem:[%s5742_s27 + $0x98] sm:$0x1]  ;;  %v4501_v19 = vld [vmem:[%s5742_s27 + $0x3c] sm:$0xe] }
  0x44   : > { %v2401_v50 = vpack.c.bf16 %v2297_v45, %v2295_v61  ;;  %v2298_v22 = vrot.slane %v2258_v33, 2  ;;  %v2301_v1 = vrot.slane %v1775_v30, 2  ;;  %v277_v4 = vunpack.c.l.bf16 %v6062_v48 }
  0x45   : > { %5012 = vmatmul.mubr.msk.bf16.gmra.mrb[16].mxu1 %vm525_vm3, %v506_v8  ;;  %v437_v27 = vsel %vm384_vm2, %v435_v24, %v436_v0  ;;  %v7488_v63 = vunpack.c.h.bf16 %v6062_v48  ;;  %v7487_v55 = vunpack.c.l.bf16 %v6054_v31  ;;  %v439_v61 = vsel %vm384_vm2, %v436_v0, %v438_v23 }
  0x46   : > { %v2300_v45 = vsel %vm1002_vm4, %v2298_v22, %v2299_v5  ;;  %v2302_v11 = vsel %vm1002_vm4, %v2299_v5, %v2301_v1  ;;  %v2259_v30 = vunpack.c.l.bf16 %v4500_v62  ;;  %v507_v24 = vpack.c.bf16 %v439_v61, %v437_v27 }
  0x47   : > { %5166 = vmatmul.mubr.msk.bf16.vlgmr.msra.gmra.mrb[0].mxu0 %vm525_vm3, %v2401_v50  ;;  %v2402_v8 = vpack.c.bf16 %v2302_v11, %v2300_v45  ;;  %v440_v14 = vrot.slane %v277_v4, 1  ;;  %v441_v33 = vrot.slane %v7488_v63, 1  ;;  %v443_v0 = vrot.slane %v7487_v55, 1  ;;  %v6110_v4 = vld [vmem:[%s5742_s27 + $0xa4] sm:$0x1] }
  0x48   : > { %5198 = vmatpush3.bf16.msra.mxu0 %v2810_v36  ;;  %v2303_v23 = vrot.slane %v2259_v30, 2  ;;  %v2304_v5 = vrot.slane %v4767_v53, 2  ;;  %v2306_v62 = vrot.slane %v1778_v54, 2  ;;  %5015 = vmatprep.mubr.msk.bf16.mxu1 %vm525_vm3, %v507_v24  ;;  %v279_v36 = vunpack.c.l.bf16 %v6079_v10  ;;  %v6107_v54 = vld [vmem:[%s5742_s27 + $0x9c] sm:$0xff]   ;;  %v4502_v24 = vld [vmem:[%s5742_s27 + $0x48] sm:$0xe] }
  0x49   : > { %5169 = vmatprep.mubr.msk.bf16.mxu0 %vm525_vm3, %v2402_v8  ;;  %v442_v50 = vsel %vm384_vm2, %v440_v14, %v441_v33  ;;  %v7486_v22 = vunpack.c.h.bf16 %v6079_v10  ;;  %v7477_v1 = vunpack.c.l.bf16 %v6085_v9  ;;  %v444_v27 = vsel %vm384_vm2, %v441_v33, %v443_v0  ;;  %v6247_v55 = vld [vmem:[%s5742_s27 + $0xa4] sm:$0x1]  ;;  %v4509_v63 = vld [vmem:[%s5742_s27 + $0x9c] sm:$0xe] }
  0x4a   : > { %v2305_v28 = vsel %vm1002_vm4, %v2303_v23, %v2304_v5  ;;  %v2307_v39 = vsel %vm1002_vm4, %v2304_v5, %v2306_v62  ;;  %v2260_v53 = vunpack.c.l.bf16 %v4501_v19  ;;  %v508_v61 = vpack.c.bf16 %v444_v27, %v442_v50  ;;  %v6130_v27 = vld [vmem:[%s5742_s27 + $0xa8] sm:$0xff]   ;;  %7552 = vst [vmem:[#allocation12_spill] sm:$0xff] %v6247_v55 }
  0x4b   : > { %v2403_v45 = vpack.c.bf16 %v2307_v39, %v2305_v28  ;;  %v445_v11 = vrot.slane %v279_v36, 1  ;;  %v446_v30 = vrot.slane %v7486_v22, 1  ;;  %v448_v8 = vrot.slane %v7477_v1, 1  ;;  %v6133_v28 = vld [vmem:[%s5742_s27 + $0xb0] sm:$0x1]  ;;  %v6146_v1 = vld [vmem:[%s5742_s27 + $0xb4] sm:$0xff]  }
  0x4c   : > { %v2308_v14 = vrot.slane %v2260_v53, 2  ;;  %v2309_v19 = vrot.slane %v1780_v25, 2  ;;  %v7536_v33 = vunpack.c.l.bf16 %v5875_v3  ;;  %v281_v5 = vunpack.c.l.bf16 %v6107_v54  ;;  %7539 = vst [vmem:[#allocation3_spill] sm:$0xff] %v6146_v1 }
  0x4d   : > { %5016 = vmatmul.mubr.msk.bf16.gmra.mrb[20].mxu1 %vm525_vm3, %v508_v61  ;;  %v447_v23 = vsel %vm384_vm2, %v445_v11, %v446_v30  ;;  %v7479_v62 = vunpack.c.h.bf16 %v6107_v54  ;;  %v7478_v50 = vunpack.c.l.bf16 %v6110_v4  ;;  %v449_v36 = vsel %vm384_vm2, %v446_v30, %v448_v8  ;;  %v4503_v30 = vld [vmem:[%s5742_s27 + $0x54] sm:$0xe] }
  0x4e   : > { %v2311_v0 = vrot.slane %v7536_v33, 2  ;;  %v2310_v58 = vsel %vm1002_vm4, %v2308_v14, %v2309_v19  ;;  %v2261_v25 = vunpack.c.l.bf16 %v4502_v24  ;;  %v509_v39 = vpack.c.bf16 %v449_v36, %v447_v23 }
  0x4f   : > { %5170 = vmatmul.mubr.msk.bf16.gmra.mrb[4].mxu0 %vm525_vm3, %v2403_v45  ;;  %v450_v61 = vrot.slane %v281_v5, 1  ;;  %v451_v11 = vrot.slane %v7479_v62, 1  ;;  %v453_v8 = vrot.slane %v7478_v50, 1  ;;  %v7537_v24 = vunpack.c.h.bf16 %v5899_v41  ;;  %v6149_v45 = vld [vmem:[%s5742_s27 + $0xbc] sm:$0x1] }
  0x50   : > { %v2312_v3 = vsel %vm1002_vm4, %v2309_v19, %v2311_v0  ;;  %v2313_v14 = vrot.slane %v2261_v25, 2  ;;  %v7538_v33 = vunpack.c.l.bf16 %v5911_v56  ;;  %7540 = vst [vmem:[#allocation4_spill] sm:$0xff] %v6149_v45  ;;  %5019 = vmatprep.mubr.msk.bf16.mxu1 %vm525_vm3, %v509_v39  ;;  %v283_v5 = vunpack.c.l.bf16 %v6130_v27 }
  0x51   : > { %v2404_v53 = vpack.c.bf16 %v2312_v3, %v2310_v58  ;;  %v2314_v19 = vrot.slane %v7537_v24, 2  ;;  %v452_v23 = vsel %vm384_vm2, %v450_v61, %v451_v11  ;;  %v7483_v36 = vunpack.c.h.bf16 %v6130_v27  ;;  %v4504_v58 = vld [vmem:[%s5742_s27 + $0x60] sm:$0xe] }
  0x52   : > { %v2316_v0 = vrot.slane %v7538_v33, 2  ;;  %v7480_v41 = vunpack.c.l.bf16 %v6133_v28  ;;  %v454_v56 = vsel %vm384_vm2, %v451_v11, %v453_v8  ;;  %v2262_v24 = vunpack.c.l.bf16 %v4503_v30  ;;  %v5589_v61 = vld [vmem:[%s7447_s1] sm:$0x18]  }
  0x53   : > { %5173 = vmatprep.mubr.msk.bf16.mxu0 %vm525_vm3, %v2404_v53  ;;  %v2315_v3 = vsel %vm1002_vm4, %v2313_v14, %v2314_v19  ;;  %v510_v33 = vpack.c.bf16 %v454_v56, %v452_v23  ;;  %v455_v50 = vrot.slane %v283_v5, 1  ;;  %v456_v53 = vrot.slane %v7483_v36, 1 }
  0x54   : > { %v2317_v25 = vsel %vm1002_vm4, %v2314_v19, %v2316_v0  ;;  %v458_v62 = vrot.slane %v7480_v41, 1  ;;  %v2318_v11 = vrot.slane %v2262_v24, 2  ;;  %v7541_v8 = vunpack.c.h.bf16 %v5932_v43  ;;  %v6181_v24 = vld [vmem:[%s5742_s27 + $0x70] ss:$24 sps:$4 sm:$0xff]   ;;  %v6187_v41 = vld [vmem:[%s5742_s27 + $0x74] sm:$0x1] }
  0x55   : > { %v2405_v39 = vpack.c.bf16 %v2317_v25, %v2315_v3  ;;  %v7542_v30 = vunpack.c.l.bf16 %v5946_v20  ;;  %5020 = vmatmul.mubr.msk.bf16.gmra.mrb[24].mxu1 %vm525_vm3, %v510_v33  ;;  %v457_v0 = vsel %vm384_vm2, %v455_v50, %v456_v53  ;;  %v285_v23 = vunpack.c.l.bf16 %v6146_v1  ;;  %7543 = vst [vmem:[#allocation5_spill] sm:$0xff] %v6181_v24  ;;  %7544 = vst [vmem:[#allocation6_spill] sm:$0xff] %v6187_v41 }
  0x56   : > { %v2319_v14 = vrot.slane %v7541_v8, 2  ;;  %v7482_v5 = vunpack.c.h.bf16 %v6146_v1  ;;  %v7481_v56 = vunpack.c.l.bf16 %v6149_v45  ;;  %v459_v3 = vsel %vm384_vm2, %v456_v53, %v458_v62  ;;  %v4505_v62 = vld [vmem:[%s5742_s27 + $0x6c] sm:$0xe]  ;;  %v5619_v45 = vld [vmem:[%s5742_s27 + $0xb4] sm:$0xff]  }
  0x57   : > { %v2321_v19 = vrot.slane %v7542_v30, 2  ;;  %v2263_v25 = vunpack.c.l.bf16 %v4504_v58  ;;  %5174 = vmatmul.mubr.msk.bf16.gmra.mrb[8].mxu0 %vm525_vm3, %v2405_v39  ;;  %v511_v50 = vpack.c.bf16 %v459_v3, %v457_v0  ;;  %v460_v8 = vrot.slane %v285_v23, 1  ;;  %v6197_v0 = vld [vmem:[%s5742_s27 + $0x80] sm:$0x1]  ;;  %v4506_v23 = vld [vmem:[%s5742_s27 + $0x78] sm:$0xe] }
  0x58   : > { %v2320_v43 = vsel %vm1002_vm4, %v2318_v11, %v2319_v14  ;;  %v461_v30 = vrot.slane %v7482_v5, 1  ;;  %v463_v53 = vrot.slane %v7481_v56, 1  ;;  %v7545_v58 = vunpack.c.h.bf16 %v5963_v47 }
  0x59   : > { %v2322_v20 = vsel %vm1002_vm4, %v2319_v14, %v2321_v19  ;;  %v2323_v11 = vrot.slane %v2263_v25, 2  ;;  %v7546_v19 = vunpack.c.l.bf16 %v5969_v46  ;;  %5023 = vmatprep.mubr.msk.bf16.mxu1 %vm525_vm3, %v511_v50  ;;  %v6205_v25 = vld [vmem:[%s5742_s27 + $0x78] sm:$0xff]   ;;  %vm4153_vm5 = vcmask 519168  }
  0x5a   : > { %v2406_v33 = vpack.c.bf16 %v2322_v20, %v2320_v43  ;;  %v2324_v14 = vrot.slane %v7545_v58, 2  ;;  %v462_v3 = vsel %vm384_vm2, %v460_v8, %v461_v30  ;;  %v1138_v43 = vrot.slane %v5589_v61, 3  ;;  %v6213_v61 = vld [vmem:[%s5742_s27 + $0x8c] sm:$0x1]  ;;  %v4507_v8 = vld [vmem:[%s5742_s27 + $0x84] sm:$0xe] }
  0x5b   : > { %v2326_v39 = vrot.slane %v7546_v19, 2  ;;  %v7485_v20 = vunpack.c.l.bf16 %v6181_v24  ;;  %v464_v47 = vsel %vm384_vm2, %v461_v30, %v463_v53  ;;  %v7484_v19 = vunpack.c.l.bf16 %v6187_v41  ;;  %7547 = vst [vmem:[#allocation7_spill] sm:$0xff] %v6213_v61 }
  0x5c   : > { %5177 = vmatprep.mubr.msk.bf16.mxu0 %vm525_vm3, %v2406_v33  ;;  %v2325_v46 = vsel %vm1002_vm4, %v2323_v11, %v2324_v14  ;;  %v512_v56 = vpack.c.bf16 %v464_v47, %v462_v3  ;;  %v1188_v50 = vand.u32 %v1138_v43, %v5725_v6  ;;  %v2264_v33 = vunpack.c.l.bf16 %v4505_v62  ;;  %v6231_v43 = vld [vmem:[%s5742_s27 + $0x90] sm:$0xff]   ;;  %v6234_v47 = vld [vmem:[%s5742_s27 + $0x98] sm:$0x1] }
  0x5d   : > { %v2327_v58 = vsel %vm1002_vm4, %v2324_v14, %v2326_v39  ;;  %v2329_v36 = vrot.slane %v7485_v20, 2  ;;  %v2331_v30 = vrot.slane %v7484_v19, 2  ;;  %v7495_v53 = vunpack.c.h.bf16 %v6205_v25  ;;  %7549 = vst [vmem:[#allocation9_spill] sm:$0xff] %v6231_v43  ;;  %7550 = vst [vmem:[#allocation10_spill] sm:$0xff] %v6234_v47 }
  0x5e   : > { %v2407_v5 = vpack.c.bf16 %v2327_v58, %v2325_v46  ;;  %5024 = vmatmul.mubr.msk.bf16.gmra.mrb[28].mxu1 %vm525_vm3, %v512_v56  ;;  %5061 = vmatprep.subr.bf16.mxu1 %v1188_v50  ;;  %v2328_v11 = vrot.slane %v2264_v33, 2  ;;  %v7492_v14 = vunpack.c.l.bf16 %v6197_v0  ;;  %v2265_v62 = vunpack.c.l.bf16 %v4506_v23  ;;  %v4508_v58 = vld [vmem:[%s5742_s27 + $0x90] sm:$0xe]  ;;  %v6242_v33 = vld [vmem:[%s5742_s27 + $0xa0] ss:$24 sps:$4 sm:$0xff]  }
  0x5f   : > { %5029 = vmatprep.mubr.msk.bf16.mxu1 %vm525_vm3, %v5747_v17  ;;  %v2332_v39 = vsel %vm1002_vm4, %v2329_v36, %v2331_v30  ;;  %v6228_v3 = vrot.slane %v7495_v53, 2  ;;  %7551 = vst [vmem:[#allocation11_spill] sm:$0xff] %v6242_v33  ;;  %v7491_v19 = vunpack.c.h.bf16 %v6181_v24  ;;  %v7493_v20 = vunpack.c.l.bf16 %v6213_v61 }
  0x60   : > { %5178 = vmatmul.mubr.msk.bf16.gmra.mrb[12].mxu0 %vm525_vm3, %v2407_v5  ;;  %v2330_v56 = vsel %vm1002_vm4, %v2328_v11, %v2329_v36  ;;  %v2333_v23 = vrot.slane %v2265_v62, 2  ;;  %v2336_v46 = vrot.slane %v7492_v14, 2  ;;  %v2266_v22 = vunpack.c.l.bf16 %v4507_v8 }
  0x61   : > { %7548 = vst [vmem:[#allocation8_spill] sm:$0xff] %v6228_v3  ;;  %v2408_v30 = vpack.c.bf16 %v2332_v39, %v2330_v56  ;;  %v7494_v11 = vunpack.c.h.bf16 %v6231_v43  ;;  %v2339_v39 = vrot.slane %v7491_v19, 2  ;;  %v2341_v8 = vrot.slane %v7493_v20, 2  ;;  %v6273_v20 = vld [vmem:[%s5742_s27 + $0xb0] sm:$0x1] }
  0x62   : > { %v2335_v36 = vsel %vm1002_vm4, %v2333_v23, %v6228_v3  ;;  %v2337_v5 = vsel %vm1002_vm4, %v6228_v3, %v2336_v46  ;;  %v2338_v62 = vrot.slane %v2266_v22, 2  ;;  %v7498_v34 = vunpack.c.l.bf16 %v6234_v47  ;;  %v6266_v46 = vld [vmem:[%s5742_s27 + $0xa8] sm:$0xff]   ;;  %7555 = vst [vmem:[#allocation15_spill] sm:$0xff] %v6273_v20 }
  0x63   : > { %5181 = vmatprep.mubr.msk.bf16.mxu0 %vm525_vm3, %v2408_v30  ;;  %v2409_v56 = vpack.c.bf16 %v2337_v5, %v2335_v36  ;;  %v2267_v23 = vunpack.c.l.bf16 %v4508_v58  ;;  %v6263_v15 = vrot.slane %v7494_v11, 2  ;;  %7554 = vst [vmem:[#allocation14_spill] sm:$0xff] %v6266_v46  ;;  %v2342_v22 = vsel %vm1002_vm4, %v2339_v39, %v2341_v8 }
  0x64   : > { %v2340_v30 = vsel %vm1002_vm4, %v2338_v62, %v2339_v39  ;;  %v7497_v19 = vunpack.c.l.bf16 %v6242_v33  ;;  %v7496_v14 = vunpack.c.l.bf16 %v6247_v55  ;;  %v2346_v5 = vrot.slane %v7498_v34, 2  ;;  %v4510_v62 = vld [vmem:[%s5742_s27 + $0xa8] sm:$0xe] }
  0x65   : > { %7553 = vst [vmem:[#allocation13_spill] sm:$0xff] %v6263_v15  ;;  %v2410_v58 = vpack.c.bf16 %v2342_v22, %v2340_v30  ;;  %v2343_v36 = vrot.slane %v2267_v23, 2  ;;  %v2268_v11 = vunpack.c.l.bf16 %v4509_v63  ;;  %v7503_v53 = vunpack.c.h.bf16 %v6266_v46  ;;  %v6290_v22 = vld [vmem:[%s5742_s27 + $0xbc] sm:$0x1]  ;;  %v4511_v63 = vld [vmem:[%s5742_s27 + $0xb4] sm:$0xe] }
  0x66   : > { %5030 = vmatmul.mubr.msk.bf16.vlgmr.msra.gmra.mrb[0].mxu1 %vm525_vm3, %v5772_v37  ;;  %v2349_v39 = vrot.slane %v7497_v19, 2  ;;  %v2351_v8 = vrot.slane %v7496_v14, 2  ;;  %v7502_v30 = vunpack.c.l.bf16 %v6273_v20  ;;  %7556 = vst [vmem:[#allocation16_spill] sm:$0xff] %v6290_v22  ;;  %v2347_v14 = vsel %vm1002_vm4, %v6263_v15, %v2346_v5  ;;  %v5598_v5 = vld [vmem:[%s7447_s1 + $0x8] ss:$0 sps:$4 sm:$0xcc]  }
  0x67   : > { %5062 = vmatpush3.bf16.msra.mxu1 %v1188_v50  ;;  %5033 = vmatprep.mubr.msk.bf16.mxu1 %vm525_vm3, %v5795_v59  ;;  %v2348_v23 = vrot.slane %v2268_v11, 2  ;;  %v2345_v50 = vsel %vm1002_vm4, %v2343_v36, %v6263_v15  ;;  %v2269_v34 = vunpack.c.l.bf16 %v4510_v62  ;;  %v7509_v36 = vunpack.c.l.bf16 %v6290_v22 }
  0x68   : > { %5182 = vmatmul.mubr.msk.bf16.gmra.mrb[16].mxu0 %vm525_vm3, %v2409_v56  ;;  %v2352_v19 = vsel %vm1002_vm4, %v2349_v39, %v2351_v8  ;;  %v6302_v56 = vrot.slane %v7503_v53, 2  ;;  %v2356_v55 = vrot.slane %v7502_v30, 2  ;;  %v2270_v61 = vunpack.c.l.bf16 %v4511_v63  ;;  %v6314_v8 = vld [vmem:[%s5742_s27 + $0xc0] sm:$0xff]  }
  0x69   : > { %5185 = vmatprep.mubr.msk.bf16.mxu0 %vm525_vm3, %v2410_v58  ;;  %v2350_v11 = vsel %vm1002_vm4, %v2348_v23, %v2349_v39  ;;  %v7510_v58 = vunpack.c.h.bf16 %v6242_v33  ;;  %v2353_v47 = vrot.slane %v2269_v34, 2  ;;  %v2411_v62 = vpack.c.bf16 %v2347_v14, %v2345_v50  ;;  %7558 = vst [vmem:[#allocation18_spill] sm:$0xff] %v6314_v8  ;;  %v6317_v23 = vld [vmem:[%s5742_s27 + $0xc8] sm:$0x1]  ;;  %v4512_v50 = vld [vmem:[%s5742_s27 + $0xc0] sm:$0xe] }
  0x6a   : > { %7557 = vst [vmem:[#allocation17_spill] sm:$0xff] %v6302_v56  ;;  %7559 = vst [vmem:[#allocation19_spill] sm:$0xff] %v6317_v23  ;;  %v2412_v30 = vpack.c.bf16 %v2352_v19, %v2350_v11  ;;  %v2358_v53 = vrot.slane %v2270_v61, 2  ;;  %v2361_v34 = vrot.slane %v7509_v36, 2  ;;  %v7560_v63 = vunpack.c.h.bf16 %v5747_v17  ;;  %v955_v33 = vld [vmem:[%s5742_s27 + $0xc] sm:$0xe] }
  0x6b   : > { %v2359_v39 = vrot.slane %v7510_v58, 2  ;;  %v7561_v15 = vunpack.c.l.bf16 %v5750_v18  ;;  %v2357_v14 = vsel %vm1002_vm4, %v6302_v56, %v2356_v55  ;;  %v2355_v19 = vsel %vm1002_vm4, %v2353_v47, %v6302_v56  ;;  %v5613_v36 = vld [vmem:[%s7447_s1 + $0x4] ss:$0 sps:$4 sm:$0x33]  }
  0x6c   : > { %v1004_v20 = vrot.slane %v7560_v63, 2  ;;  %v3282_v18 = vshrl.u32 %v5598_v5, 16  ;;  %v3285_v55 = vshll.u32 %v5598_v5, 16  ;;  %v954_v63 = vld [vmem:[%s5742_s27] sm:$0xe]  ;;  %v7562_v47 = vunpack.c.h.bf16 %v5772_v37 }
  0x6d   : > { %v1006_v3 = vrot.slane %v7561_v15, 2  ;;  %v2360_v15 = vsel %vm1002_vm4, %v2358_v53, %v2359_v39  ;;  %v2362_v11 = vsel %vm1002_vm4, %v2359_v39, %v2361_v34  ;;  %v7563_v61 = vunpack.c.l.bf16 %v5777_v40 }
  0x6e   : > { %5034 = vmatmul.mubr.msk.bf16.gmra.mrb[4].mxu1 %vm525_vm3, %v5820_v12  ;;  %v1009_v58 = vrot.slane %v7562_v47, 2  ;;  %v2271_v17 = vunpack.c.l.bf16 %v4512_v50  ;;  %v2413_v56 = vpack.c.bf16 %v2357_v14, %v2355_v19  ;;  %v3287_v53 = vrot.slane %v3285_v55, 3  ;;  %v5615_v55 = vld [vmem:[%s5742_s27 + $0x84] sm:$0xff]  }
  0x6f   : > { %5037 = vmatprep.mubr.msk.bf16.mxu1 %vm525_vm3, %v5854_v44  ;;  %v1011_v22 = vrot.slane %v7563_v61, 2  ;;  %v2414_v39 = vpack.c.bf16 %v2362_v11, %v2360_v15  ;;  %v7564_v5 = vunpack.c.h.bf16 %v6314_v8  ;;  %v7566_v41 = vunpack.c.l.bf16 %v6317_v23  ;;  %v5616_v23 = vld [vmem:[%s5742_s27 + $0x90] sm:$0xff]  }
  0x70   : > { %5186 = vmatmul.mubr.msk.bf16.gmra.mrb[20].mxu0 %vm525_vm3, %v2411_v62  ;;  %v3284_v62 = vrot.slane %v3282_v18, 2  ;;  %v970_v37 = vunpack.c.l.bf16 %v954_v63  ;;  %v6356_v40 = vsel %vm1002_vm4, %v1004_v20, %v1006_v3  ;;  %v1469_v61 = vshrl.u32 %v5613_v36, 16 }
  0x71   : > { %5189 = vmatprep.mubr.msk.bf16.mxu0 %vm525_vm3, %v2412_v30  ;;  %v6351_v34 = vrot.slane %v7564_v5, 2  ;;  %v2366_v24 = vrot.slane %v7566_v41, 2  ;;  %v1471_v30 = vshll.u32 %v5613_v36, 16  ;;  %v2363_v50 = vrot.slane %v2271_v17, 2  ;;  %v5604_v5 = vld [vmem:[%s5742_s27 + $0x3c] sm:$0xff]  }
  0x72   : > { %v3288_v47 = vor.u32 %v3287_v53, %v3284_v62  ;;  %v1003_v18 = vrot.slane %v970_v37, 2  ;;  %v971_v14 = vunpack.c.l.bf16 %v955_v33  ;;  %v6359_v19 = vsel %vm1002_vm4, %v1009_v58, %v1011_v22  ;;  %v5597_v62 = vld [vmem:[%s5742_s27 + $0x18] sm:$0xff]   ;;  %v5602_v53 = vld [vmem:[%s5742_s27 + $0x30] sm:$0xff]   ;;  %v5606_v37 = vld [vmem:[%s5742_s27 + $0x48] sm:$0xff]  }
  0x73   : > { %7565 = vst [vmem:[#allocation20_spill] sm:$0xff] %v6351_v34  ;;  %v1473_v11 = vrot.slane %v1471_v30, 1  ;;  %v2365_v36 = vsel %vm1002_vm4, %v2363_v50, %v6351_v34  ;;  %v2367_v17 = vsel %vm1002_vm4, %v6351_v34, %v2366_v24  ;;  %v3709_v24 = vld [vmem:[%s7447_s1 + $0xc] sm:$0x3]  ;;  %v7585_v34 = vunpack.c.l.bf16 %v6002_v42 }
  0x74   : > { %v3338_v15 = vand.u32 %v3288_v47, %v5725_v6  ;;  %v6367_v41 = vsel %vm1002_vm4, %v1003_v18, %v1004_v20  ;;  %v1008_v3 = vrot.slane %v971_v14, 2  ;;  %v2415_v63 = vpack.c.bf16 %v2367_v17, %v2365_v36  ;;  %v957_v47 = vld [vmem:[%s5742_s27 + $0x24] sm:$0xe]  ;;  %v5608_v18 = vld [vmem:[%s5742_s27 + $0x54] sm:$0xff]   ;;  %v959_v17 = vld [vmem:[%s5742_s27 + $0x3c] sm:$0xe] }
  0x75   : > { %v1115_v33 = vpack.c.bf16 %v6356_v40, %v6367_v41  ;;  %v1474_v22 = vor.u32 %v1473_v11, %v1469_v61  ;;  %v958_v61 = vld [vmem:[%s5742_s27 + $0x30] sm:$0xe]  ;;  %v973_v50 = vunpack.c.l.bf16 %v957_v47  ;;  %v5610_v14 = vld [vmem:[%s5742_s27 + $0x60] sm:$0xff]   ;;  %v7567_v11 = vunpack.c.h.bf16 %v5795_v59 }
  0x76   : > { %5038 = vmatmul.mubr.msk.bf16.gmra.mrb[8].mxu1 %vm525_vm3, %v5887_v26  ;;  %5231 = vmatprep.subr.bf16.mxu0 %v3338_v15  ;;  %v6378_v20 = vsel %vm1002_vm4, %v1008_v3, %v1009_v58  ;;  %v5600_v58 = vld [vmem:[%s5742_s27 + $0x24] sm:$0xff]   ;;  %v7571_v59 = vunpack.c.h.bf16 %v5854_v44  ;;  %v1051_v8 = vrot.slane %v7585_v34, 2  ;;  %v7589_v42 = vunpack.c.h.bf16 %v6029_v16 }
  0x77   : > { %5041 = vmatprep.mubr.msk.bf16.mxu1 %vm525_vm3, %v5919_v7  ;;  %v1014_v3 = vrot.slane %v7567_v11, 2  ;;  %v962_v11 = vld [vmem:[%s5742_s27 + $0x60] sm:$0xe] }
  0x78   : > { %5190 = vmatmul.mubr.msk.bf16.gmra.mrb[24].mxu0 %vm525_vm3, %v2413_v56  ;;  %v6381_v56 = vand.u32 %v1474_v22, %v5725_v6  ;;  %v7568_v22 = vunpack.c.l.bf16 %v5798_v60  ;;  %v1024_v47 = vrot.slane %v7571_v59, 2  ;;  %v7572_v60 = vunpack.c.l.bf16 %v5865_v57 }
  0x79   : > { %5193 = vmatprep.mubr.msk.bf16.mxu0 %vm525_vm3, %v2414_v39  ;;  %v6401_v39 = vand.u32 %v3709_v24, %v5725_v6  ;;  %v956_v6 = vld [vmem:[%s5742_s27 + $0x18] sm:$0xe]  ;;  %v1018_v24 = vrot.slane %v973_v50, 2  ;;  %v975_v50 = vunpack.c.l.bf16 %v959_v17  ;;  %v7573_v17 = vunpack.c.h.bf16 %v5887_v26 }
  0x7a   : > { %5095 = vmatprep.subr.bf16.mxu1 %v6381_v56  ;;  %v972_v30 = vunpack.c.l.bf16 %v956_v6  ;;  %v1016_v36 = vrot.slane %v7568_v22, 2  ;;  %v961_v6 = vld [vmem:[%s5742_s27 + $0x54] sm:$0xe]  ;;  %v7576_v26 = vunpack.c.l.bf16 %v5925_v29  ;;  %v1054_v34 = vrot.slane %v7589_v42, 2 }
  0x7c   : > { %v6444_v22 = vsel %vm1002_vm4, %v1014_v3, %v1016_v36 }
  0x7e   : > { %5042 = vmatmul.mubr.msk.bf16.gmra.mrb[12].mxu1 %vm525_vm3, %v5952_v32 }
  0x7f   : > { %5045 = vmatprep.mubr.msk.bf16.mxu1 %vm525_vm3, %v5985_v38 }
  0x80   : > { %5194 = vmatmul.mubr.msk.bf16.gmra.mrb[28].mxu0 %vm525_vm3, %v2415_v63  ;;  %v960_v63 = vld [vmem:[%s5742_s27 + $0x48] sm:$0xe] }
  0x81   : > { %5199 = vmatprep.mubr.msk.bf16.mxu0 %vm525_vm3, %v5597_v62  ;;  %v1013_v62 = vrot.slane %v972_v30, 2 }
  0x83   : > { %v6448_v44 = vsel %vm1002_vm4, %v1013_v62, %v1014_v3  ;;  %v978_v62 = vunpack.c.l.bf16 %v962_v11  ;;  %v7578_v11 = vunpack.c.h.bf16 %v5952_v32  ;;  %v6494_v32 = vld [vmem:[%s5742_s27 + $0x20] sm:$0x1] }
  0x84   : > { %v1117_v29 = vpack.c.bf16 %v6444_v22, %v6448_v44  ;;  %v7581_v22 = vunpack.c.h.bf16 %v5985_v38 }
  0x86   : > { %5046 = vmatmul.mubr.msk.bf16.gmra.mrb[16].mxu1 %vm525_vm3, %v6010_v52  ;;  %v1044_v44 = vrot.slane %v7581_v22, 2 }
  0x87   : > { %5049 = vmatprep.mubr.msk.bf16.mxu1 %vm525_vm3, %v6029_v16  ;;  %v7593_v16 = vunpack.c.h.bf16 %v6062_v48 }
  0x88   : > { %5200 = vmatmul.mubr.msk.bf16.vlgmr.msra.gmra.mrb[0].mxu0 %vm525_vm3, %v5600_v58  ;;  %v7569_v58 = vunpack.c.h.bf16 %v5820_v12  ;;  %v976_v12 = vunpack.c.l.bf16 %v960_v63  ;;  %v7574_v63 = vunpack.c.l.bf16 %v5896_v35 }
  0x89   : > { %5232 = vmatpush3.bf16.msra.mxu0 %v3338_v15  ;;  %5203 = vmatprep.mubr.msk.bf16.mxu0 %vm525_vm3, %v5602_v53  ;;  %v974_v15 = vunpack.c.l.bf16 %v958_v61  ;;  %v1026_v61 = vrot.slane %v7572_v60, 2  ;;  %v7577_v60 = vunpack.c.h.bf16 %v6205_v25 }
  0x8a   : > { %5265 = vmatprep.subr.bf16.mxu0 %v6401_v39  ;;  %v1019_v53 = vrot.slane %v7569_v58, 2  ;;  %v977_v58 = vunpack.c.l.bf16 %v961_v6  ;;  %v1036_v6 = vrot.slane %v7576_v26, 2  ;;  %v963_v26 = vld [vmem:[%s5742_s27 + $0x6c] sm:$0xe] }
  0x8b   : > { %v1023_v30 = vrot.slane %v974_v15, 2  ;;  %v6459_v36 = vsel %vm1002_vm4, %v1024_v47, %v1026_v61  ;;  %v6474_v35 = vrot.slane %v7577_v60, 1  ;;  %v6506_v60 = vld [vmem:[%s5742_s27 + $0x24] sm:$0xff]  }
  0x8c   : > { %v6451_v57 = vsel %vm1002_vm4, %v1018_v24, %v1019_v53  ;;  %v1038_v61 = vrot.slane %v977_v58, 2  ;;  %v6491_v58 = vld [vmem:[%s5742_s27 + $0x18] sm:$0xff]  }
  0x8d   : > { %v6466_v24 = vsel %vm1002_vm4, %v1023_v30, %v1024_v47  ;;  %v7579_v47 = vunpack.c.l.bf16 %v6197_v0  ;;  %v4794_v41 = vunpack.c.l.bf16 %v6491_v58 }
  0x8e   : > { %5050 = vmatmul.mubr.msk.bf16.gmra.mrb[20].mxu1 %vm525_vm3, %v6062_v48 }
  0x8f   : > { %5053 = vmatprep.mubr.msk.bf16.mxu1 %vm525_vm3, %v6079_v10  ;;  %v6481_v30 = vrot.slane %v7579_v47, 1  ;;  %v6525_v47 = vld [vmem:[%s5742_s27 + $0x2c] sm:$0x1] }
  0x90   : > { %5204 = vmatmul.mubr.msk.bf16.gmra.mrb[4].mxu0 %vm525_vm3, %v5604_v5  ;;  %v7570_v5 = vunpack.c.l.bf16 %v5826_v21  ;;  %v4778_v21 = vunpack.c.l.bf16 %v6205_v25 }
  0x91   : > { %5207 = vmatprep.mubr.msk.bf16.mxu0 %vm525_vm3, %v5606_v37 }
  0x92   : > { %v1021_v37 = vrot.slane %v7570_v5, 2  ;;  %v1031_v5 = vrot.slane %v7574_v63, 2  ;;  %v6470_v59 = vrot.slane %v4778_v21, 1  ;;  %v1043_v63 = vrot.slane %v978_v62, 2 }
  0x94   : > { %v6454_v15 = vsel %vm1002_vm4, %v1019_v53, %v1021_v37  ;;  %v1028_v53 = vrot.slane %v975_v50, 2  ;;  %v1033_v37 = vrot.slane %v976_v12, 2  ;;  %v5614_v50 = vld [vmem:[%s5742_s27 + $0x78] sm:$0xff]   ;;  %v7580_v12 = vunpack.c.l.bf16 %v5955_v51 }
  0x95   : > { %v6549_v22 = vsel %vm1002_vm4, %v1043_v63, %v1044_v44 }
  0x96   : > { %5054 = vmatmul.mubr.msk.bf16.gmra.mrb[24].mxu1 %vm525_vm3, %v6107_v54  ;;  %v1041_v21 = vrot.slane %v7580_v12, 2  ;;  %v964_v12 = vld [vmem:[%s5742_s27 + $0x78] sm:$0xe] }
  0x97   : > { %5057 = vmatprep.mubr.msk.bf16.mxu1 %vm525_vm3, %v6130_v27  ;;  %v980_v25 = vunpack.c.l.bf16 %v964_v12 }
  0x98   : > { %5208 = vmatmul.mubr.msk.bf16.gmra.mrb[8].mxu0 %vm525_vm3, %v5608_v18  ;;  %v1029_v18 = vrot.slane %v7573_v17, 2  ;;  %v1039_v17 = vrot.slane %v7578_v11, 2 }
  0x99   : > { %5211 = vmatprep.mubr.msk.bf16.mxu0 %vm525_vm3, %v5610_v14  ;;  %v7575_v14 = vunpack.c.h.bf16 %v5919_v7  ;;  %v5612_v7 = vld [vmem:[%s5742_s27 + $0x6c] sm:$0xff]  }
  0x9a   : > { %v6513_v11 = vsel %vm1002_vm4, %v1028_v53, %v1029_v18  ;;  %v6516_v38 = vsel %vm1002_vm4, %v1029_v18, %v1031_v5  ;;  %v6530_v40 = vsel %vm1002_vm4, %v1038_v61, %v1039_v17  ;;  %v6536_v5 = vld [vmem:[%s5742_s27 + $0x30] sm:$0xff]   ;;  %v6539_v53 = vld [vmem:[%s5742_s27 + $0x38] sm:$0x1]  ;;  %v3149_v18 = vrot.slane %v4794_v41, 1  ;;  %v6571_v41 = vld [vmem:[%s5742_s27 + $0x3c] sm:$0xff]  }
  0x9b   : > { %v1034_v3 = vrot.slane %v7575_v14, 2  ;;  %v7582_v14 = vunpack.c.l.bf16 %v5977_v2  ;;  %v7583_v61 = vunpack.c.l.bf16 %v6494_v32 }
  0x9d   : > { %v1046_v51 = vrot.slane %v7582_v14, 2  ;;  %v6519_v2 = vsel %vm1002_vm4, %v1033_v37, %v1034_v3  ;;  %v6522_v62 = vsel %vm1002_vm4, %v1034_v3, %v1036_v6  ;;  %v965_v3 = vld [vmem:[%s5742_s27 + $0x84] sm:$0xe]  ;;  %v6544_v37 = vsel %vm1002_vm4, %v1039_v17, %v1041_v21 }
  0x9e   : > { %5058 = vmatmul.mubr.msk.bf16.gmra.mrb[28].mxu1 %vm525_vm3, %v6146_v1  ;;  %v979_v6 = vunpack.c.l.bf16 %v963_v26  ;;  %v981_v26 = vunpack.c.l.bf16 %v965_v3  ;;  %v7586_v21 = vunpack.c.h.bf16 %v6506_v60 }
  0x9f   : > { %5063 = vmatprep.mubr.msk.bf16.mxu1 %vm525_vm3, %v1115_v33  ;;  %v7524_v33 = vunpack.c.h.bf16 %v6491_v58  ;;  %v6552_v14 = vsel %vm1002_vm4, %v1044_v44, %v1046_v51  ;;  %v3152_v44 = vrot.slane %v7583_v61, 1  ;;  %v7584_v51 = vunpack.c.h.bf16 %v6010_v52 }
  0xa0   : > { %5212 = vmatmul.mubr.msk.bf16.gmra.mrb[12].mxu0 %vm525_vm3, %v5612_v7  ;;  %v3056_v7 = vunpack.c.l.bf16 %v6506_v60  ;;  %v1048_v12 = vrot.slane %v979_v6, 2  ;;  %v3155_v3 = vrot.slane %v7586_v21, 1  ;;  %v7588_v52 = vunpack.c.l.bf16 %v6525_v47 }
  0xa1   : > { %5215 = vmatprep.mubr.msk.bf16.mxu0 %vm525_vm3, %v5614_v50  ;;  %v4798_v50 = vunpack.c.l.bf16 %v6536_v5  ;;  %v3150_v63 = vrot.slane %v7524_v33, 1  ;;  %v1049_v0 = vrot.slane %v7584_v51, 2  ;;  %v7587_v33 = vpack.c.bf16 %v6359_v19, %v6378_v20 }
  0xa2   : > { %v3154_v17 = vrot.slane %v3056_v7, 1  ;;  %v3157_v61 = vrot.slane %v7588_v52, 1  ;;  %v1053_v6 = vrot.slane %v980_v25, 2  ;;  %v7590_v7 = vunpack.c.l.bf16 %v6036_v49 }
  0xa3   : > { %v3159_v21 = vrot.slane %v4798_v50, 1  ;;  %v7591_v19 = vunpack.c.h.bf16 %v6536_v5  ;;  %v1058_v52 = vrot.slane %v981_v26, 2  ;;  %v1059_v25 = vrot.slane %v7593_v16, 2  ;;  %v966_v50 = vld [vmem:[%s5742_s27 + $0x90] sm:$0xe] }
  0xa4   : > { %v1056_v51 = vrot.slane %v7590_v7, 2  ;;  %v7594_v49 = vunpack.c.l.bf16 %v6054_v31  ;;  %v6595_v7 = vld [vmem:[%s5742_s27 + $0x44] sm:$0x1]  ;;  %v6606_v48 = vsel %vm384_vm2, %v3150_v63, %v3152_v44  ;;  %v6609_v31 = vsel %vm1002_vm4, %v1048_v12, %v1049_v0 }
  0xa5   : > { %v3160_v20 = vrot.slane %v7591_v19, 1  ;;  %v6612_v26 = vsel %vm1002_vm4, %v1049_v0, %v1051_v8  ;;  %v6615_v19 = vsel %vm384_vm2, %v3154_v17, %v3155_v3  ;;  %v7526_v8 = vunpack.c.l.bf16 %v6595_v7  ;;  %v5617_v17 = vld [vmem:[%s5742_s27 + $0x9c] sm:$0xff]  }
  0xa6   : > { %5064 = vmatmul.mubr.msk.bf16.vlgmr.msra.gmra.mrb[0].mxu1 %vm525_vm3, %v7587_v33  ;;  %v7592_v33 = vunpack.c.l.bf16 %v6539_v53  ;;  %v1061_v42 = vrot.slane %v7594_v49, 2  ;;  %v982_v0 = vunpack.c.l.bf16 %v966_v50  ;;  %v6635_v12 = vsel %vm1002_vm4, %v1058_v52, %v1059_v25  ;;  %v6654_v52 = vld [vmem:[%s5742_s27 + $0x48] sm:$0xff]   ;;  %v4660_v49 = vld [vmem:[%s5742_s27 + $0x18] sm:$0xe] }
  0xa7   : > { %5096 = vmatpush3.bf16.msra.mxu1 %v6381_v56  ;;  %5067 = vmatprep.mubr.msk.bf16.mxu1 %vm525_vm3, %v1117_v29  ;;  %v3062_v56 = vunpack.c.l.bf16 %v6571_v41  ;;  %v7527_v29 = vunpack.c.h.bf16 %v6571_v41  ;;  %7595 = vst [vmem:[#allocation21_spill] sm:$0xff] %v6635_v12  ;;  %v7596_v16 = vpack.c.bf16 %v6454_v15, %v6451_v57  ;;  %v7597_v57 = vpack.c.bf16 %v6459_v36, %v6466_v24  ;;  %v6690_v36 = vld [vmem:[%s5742_s27 + $0x5c] sm:$0x1]  ;;  %v6693_v24 = vld [vmem:[%s5742_s27 + $0x60] sm:$0xff]  }
  0xa8   : > { %v3162_v46 = vrot.slane %v7592_v33, 1  ;;  %5216 = vmatmul.mubr.msk.bf16.gmra.mrb[16].mxu0 %vm525_vm3, %v5615_v55  ;;  %5299 = vmatprep.subr.bf16.mxu1 %v5737_v13  ;;  %v6603_v55 = vsel %vm384_vm2, %v3149_v18, %v3150_v63  ;;  %v6618_v33 = vsel %vm384_vm2, %v3155_v3, %v3157_v61  ;;  %v6624_v18 = vsel %vm1002_vm4, %v1054_v34, %v1056_v51 }
  0xa9   : > { %5219 = vmatprep.mubr.msk.bf16.mxu0 %vm525_vm3, %v5616_v23  ;;  %v6621_v23 = vsel %vm1002_vm4, %v1053_v6, %v1054_v34  ;;  %v6627_v63 = vsel %vm384_vm2, %v3159_v21, %v3160_v20  ;;  %v6638_v3 = vsel %vm1002_vm4, %v1059_v25, %v1061_v42  ;;  %v3164_v61 = vrot.slane %v3062_v56, 1  ;;  %v5618_v34 = vld [vmem:[%s5742_s27 + $0xa8] sm:$0xff]   ;;  %v6669_v25 = vld [vmem:[%s5742_s27 + $0x50] sm:$0x1] }
  0xaa   : > { %v6630_v44 = vsel %vm384_vm2, %v3160_v20, %v3162_v46  ;;  %v6642_v6 = vrot.slane %v7527_v29, 1  ;;  %v1120_v46 = vpack.c.bf16 %v6516_v38, %v6513_v11  ;;  %v1121_v51 = vpack.c.bf16 %v6522_v62, %v6519_v2  ;;  %v4661_v38 = vld [vmem:[%s5742_s27 + $0x24] sm:$0xe]  ;;  %v6714_v11 = vld [vmem:[%s5742_s27 + $0x68] sm:$0x1] }
  0xab   : > { %v6682_v56 = vrot.slane %v7526_v8, 1  ;;  %v6684_v50 = vrot.slane %v982_v0, 2  ;;  %v7598_v42 = vunpack.c.h.bf16 %v6079_v10  ;;  %v7599_v0 = vunpack.c.l.bf16 %v6085_v9  ;;  %v6717_v10 = vld [vmem:[%s5742_s27 + $0x6c] sm:$0xff]  }
  0xac   : > { %v7600_v20 = vunpack.c.h.bf16 %v6491_v58  ;;  %v7602_v58 = vunpack.c.h.bf16 %v6506_v60  ;;  %v7603_v13 = vunpack.c.l.bf16 %v6525_v47  ;;  %v4664_v47 = vld [vmem:[%s5742_s27 + $0x48] sm:$0xe] }
  0xad   : > { %v6702_v15 = vrot.slane %v7598_v42, 2  ;;  %v6706_v2 = vrot.slane %v7599_v0, 2  ;;  %v3549_v42 = vunpack.c.l.bf16 %v4660_v49  ;;  %v4662_v0 = vld [vmem:[%s5742_s27 + $0x30] sm:$0xe]  ;;  %v3550_v49 = vunpack.c.l.bf16 %v4661_v38 }
  0xae   : > { %5068 = vmatmul.mubr.msk.bf16.gmra.mrb[4].mxu1 %vm525_vm3, %v7596_v16  ;;  %v6687_v16 = vld [vmem:[%s5742_s27 + $0x54] sm:$0xff]   ;;  %v3582_v9 = vrot.slane %v7600_v20, 2  ;;  %v3587_v20 = vrot.slane %v7602_v58, 2  ;;  %v3589_v43 = vrot.slane %v7603_v13, 2  ;;  %v3551_v1 = vunpack.c.l.bf16 %v4662_v0 }
  0xaf   : > { %5071 = vmatprep.mubr.msk.bf16.mxu1 %vm525_vm3, %v7597_v57  ;;  %v6698_v57 = vsel %vm384_vm2, %v3164_v61, %v6642_v6  ;;  %v7601_v61 = vunpack.c.l.bf16 %v6494_v32  ;;  %v3581_v29 = vrot.slane %v3549_v42, 2  ;;  %v4663_v32 = vld [vmem:[%s5742_s27 + $0x3c] sm:$0xe]  ;;  %v3586_v42 = vrot.slane %v3550_v49, 2 }
  0xb0   : > { %5220 = vmatmul.mubr.msk.bf16.gmra.mrb[20].mxu0 %vm525_vm3, %v5617_v17  ;;  %v6726_v17 = vld [vmem:[%s5742_s27 + $0x74] sm:$0x1]  ;;  %v6747_v13 = vsel %vm1002_vm4, %v3587_v20, %v3589_v43  ;;  %v3591_v0 = vrot.slane %v3551_v1, 2  ;;  %v7604_v58 = vunpack.c.h.bf16 %v6536_v5  ;;  %v7605_v38 = vunpack.c.l.bf16 %v6539_v53 }
  0xb1   : > { %5223 = vmatprep.mubr.msk.bf16.mxu0 %vm525_vm3, %v5618_v34  ;;  %v3584_v8 = vrot.slane %v7601_v61, 2  ;;  %v5620_v61 = vld [vmem:[%s5742_s27 + $0xc0] sm:$0xff]   ;;  %v6744_v60 = vsel %vm1002_vm4, %v3581_v29, %v3582_v9  ;;  %v6759_v29 = vsel %vm1002_vm4, %v3586_v42, %v3587_v20  ;;  %v3552_v43 = vunpack.c.l.bf16 %v4663_v32 }
  0xb2   : > { %v3592_v34 = vrot.slane %v7604_v58, 2  ;;  %v3594_v62 = vrot.slane %v7605_v38, 2  ;;  %v7607_v49 = vunpack.c.l.bf16 %v6595_v7  ;;  %v7608_v32 = vunpack.c.h.bf16 %v6654_v52 }
  0xb3   : > { %v6738_v21 = vsel %vm1002_vm4, %v3582_v9, %v3584_v8  ;;  %v7606_v9 = vunpack.c.h.bf16 %v6571_v41  ;;  %v4665_v8 = vld [vmem:[%s5742_s27 + $0x54] sm:$0xe]  ;;  %v4666_v41 = vld [vmem:[%s5742_s27 + $0x60] sm:$0xe]  ;;  %v3596_v20 = vrot.slane %v3552_v43, 2  ;;  %v7611_v43 = vunpack.c.l.bf16 %v6690_v36 }
  0xb4   : > { %v3599_v12 = vrot.slane %v7607_v49, 2  ;;  %v6770_v5 = vsel %vm1002_vm4, %v3591_v0, %v3592_v34  ;;  %v6773_v53 = vsel %vm1002_vm4, %v3592_v34, %v3594_v62  ;;  %v3602_v38 = vrot.slane %v7608_v32, 2  ;;  %v4667_v32 = vld [vmem:[%s5742_s27 + $0x6c] sm:$0xe] }
  0xb5   : > { %v7609_v62 = vunpack.c.l.bf16 %v6669_v25  ;;  %v3554_v0 = vunpack.c.l.bf16 %v4665_v8  ;;  %v7612_v49 = vunpack.c.h.bf16 %v6693_v24 }
  0xb6   : > { %5072 = vmatmul.mubr.msk.bf16.gmra.mrb[8].mxu1 %vm525_vm3, %v1120_v46  ;;  %v3597_v46 = vrot.slane %v7606_v9, 2  ;;  %v3609_v9 = vrot.slane %v7611_v43, 2 }
  0xb7   : > { %5075 = vmatprep.mubr.msk.bf16.mxu1 %vm525_vm3, %v1121_v51  ;;  %v3553_v51 = vunpack.c.l.bf16 %v4664_v47  ;;  %v3604_v34 = vrot.slane %v7609_v62, 2  ;;  %v7610_v47 = vunpack.c.h.bf16 %v6687_v16  ;;  %v3612_v7 = vrot.slane %v7612_v49, 2 }
  0xb8   : > { %5224 = vmatmul.mubr.msk.bf16.gmra.mrb[24].mxu0 %vm525_vm3, %v5619_v45  ;;  %v6780_v45 = vsel %vm1002_vm4, %v3597_v46, %v3599_v12  ;;  %v3555_v12 = vunpack.c.l.bf16 %v4666_v41  ;;  %v7614_v49 = vunpack.c.l.bf16 %v6714_v11  ;;  %v7617_v62 = vunpack.c.l.bf16 %v6726_v17 }
  0xb9   : > { %5227 = vmatprep.mubr.msk.bf16.mxu0 %vm525_vm3, %v5620_v61  ;;  %v3601_v42 = vrot.slane %v3553_v51, 2  ;;  %v3607_v58 = vrot.slane %v7610_v47, 2  ;;  %v6789_v61 = vsel %vm1002_vm4, %v3596_v20, %v3597_v46  ;;  %v5621_v51 = vld [vmem:[%s5742_s27 + $0xcc] sm:$0xff]   ;;  %v6803_v47 = vsel %vm1002_vm4, %v3602_v38, %v3604_v34 }
  0xba   : > { %v3606_v46 = vrot.slane %v3554_v0, 2  ;;  %v3611_v43 = vrot.slane %v3555_v12, 2  ;;  %v3614_v1 = vrot.slane %v7614_v49, 2  ;;  %v3556_v0 = vunpack.c.l.bf16 %v4667_v32  ;;  %v968_v49 = vld [vmem:[%s5742_s27 + $0xa8] sm:$0xe] }
  0xbb   : > { %v6800_v8 = vsel %vm1002_vm4, %v3601_v42, %v3602_v38  ;;  %v6808_v41 = vsel %vm1002_vm4, %v3607_v58, %v3609_v9  ;;  %v7615_v42 = vpack.c.bf16 %v6544_v37, %v6530_v40  ;;  %v967_v38 = vld [vmem:[%s5742_s27 + $0x9c] sm:$0xe]  ;;  %v7616_v20 = vunpack.c.h.bf16 %v6717_v10 }
  0xbc   : > { %7613 = vst [vmem:[#allocation22_spill] sm:$0xff] %v6800_v8  ;;  %v6818_v34 = vsel %vm1002_vm4, %v3606_v46, %v3607_v58  ;;  %v3619_v12 = vrot.slane %v7617_v62, 2  ;;  %v7618_v8 = vpack.c.bf16 %v6552_v14, %v6549_v22  ;;  %v6831_v40 = vsel %vm384_vm2, %v6642_v6, %v6682_v56  ;;  %v6848_v14 = vld [vmem:[%s5742_s27 + $0x84] sm:$0xff]   ;;  %v6851_v6 = vld [vmem:[%s5742_s27 + $0x8c] sm:$0x1] }
  0xbd   : > { %v3617_v9 = vrot.slane %v7616_v20, 2  ;;  %v6836_v58 = vsel %vm1002_vm4, %v3611_v43, %v3612_v7  ;;  %v6839_v32 = vsel %vm1002_vm4, %v3612_v7, %v3614_v1  ;;  %v6845_v22 = vsel %vm1002_vm4, %v6684_v50, %v6702_v15  ;;  %v6916_v56 = vld [vmem:[%s5742_s27 + $0xa4] sm:$0x1] }
  0xbe   : > { %5076 = vmatmul.mubr.msk.bf16.gmra.mrb[12].mxu1 %vm525_vm3, %v7615_v42  ;;  %v3616_v62 = vrot.slane %v3556_v0, 2  ;;  %v7619_v1 = vpack.c.bf16 %v6606_v48, %v6603_v55  ;;  %v6865_v50 = vsel %vm1002_vm4, %v6702_v15, %v6706_v2  ;;  %v7620_v7 = vunpack.c.l.bf16 %v6654_v52  ;;  %v4669_v42 = vld [vmem:[%s5742_s27 + $0x84] sm:$0xe] }
  0xbf   : > { %5079 = vmatprep.mubr.msk.bf16.mxu1 %vm525_vm3, %v7618_v8  ;;  %v6856_v8 = vsel %vm1002_vm4, %v3617_v9, %v3619_v12  ;;  %v7621_v46 = vunpack.c.h.bf16 %v6654_v52  ;;  %v983_v43 = vunpack.c.l.bf16 %v967_v38  ;;  %v7622_v0 = vunpack.c.l.bf16 %v6669_v25 }
  0xc0   : > { %5228 = vmatmul.mubr.msk.bf16.gmra.mrb[28].mxu0 %vm525_vm3, %v5621_v51  ;;  %v3169_v51 = vrot.slane %v7620_v7, 1  ;;  %v6876_v55 = vsel %vm1002_vm4, %v3616_v62, %v3617_v9  ;;  %v6881_v48 = vsel %vm384_vm2, %v6470_v59, %v6474_v35  ;;  %v6886_v2 = vsel %vm384_vm2, %v6474_v35, %v6481_v30 }
  0xc1   : > { %5233 = vmatprep.mubr.msk.bf16.mxu0 %vm525_vm3, %v7619_v1  ;;  %v3170_v20 = vrot.slane %v7621_v46, 1  ;;  %v3172_v12 = vrot.slane %v7622_v0, 1  ;;  %v3068_v52 = vunpack.c.l.bf16 %v6687_v16  ;;  %v3081_v15 = vunpack.c.h.bf16 %v6848_v14 }
  0xc2   : > { %v7534_v25 = vunpack.c.l.bf16 %v6851_v6  ;;  %v3264_v59 = vpack.c.bf16 %v6831_v40, %v6698_v57  ;;  %v984_v9 = vunpack.c.l.bf16 %v968_v49  ;;  %v3558_v30 = vunpack.c.l.bf16 %v4669_v42  ;;  %v7008_v57 = vld [vmem:[%s5742_s27 + $0xcc] sm:$0xff]   ;;  %v7011_v40 = vld [vmem:[%s5742_s27 + $0xd4] sm:$0x1] }
  0xc3   : > { %v1127_v1 = vpack.c.bf16 %v6865_v50, %v6845_v22  ;;  %v1068_v7 = vrot.slane %v983_v43, 2  ;;  %v3627_v46 = vrot.slane %v3081_v15, 2  ;;  %v7623_v38 = vpack.c.bf16 %v6612_v26, %v6609_v31  ;;  %v6913_v43 = vld [vmem:[%s5742_s27 + $0x9c] sm:$0xff]  }
  0xc4   : > { %v3629_v0 = vrot.slane %v7534_v25, 2  ;;  %v3171_v49 = vsel %vm384_vm2, %v3169_v51, %v3170_v20  ;;  %v7624_v42 = vunpack.c.h.bf16 %v6107_v54  ;;  %v7625_v22 = vunpack.c.l.bf16 %v6110_v4  ;;  %v969_v54 = vld [vmem:[%s5742_s27 + $0xb4] sm:$0xe]  ;;  %v4671_v4 = vld [vmem:[%s5742_s27 + $0x9c] sm:$0xe] }
  0xc5   : > { %v3626_v37 = vrot.slane %v3558_v30, 2  ;;  %v7626_v25 = vpack.c.bf16 %v6624_v18, %v6621_v23  ;;  %v3173_v31 = vsel %vm384_vm2, %v3170_v20, %v3172_v12  ;;  %v3174_v26 = vrot.slane %v3068_v52, 1 }
  0xc6   : > { %5080 = vmatmul.mubr.msk.bf16.gmra.mrb[16].mxu1 %vm525_vm3, %v7623_v38  ;;  %v1069_v62 = vrot.slane %v7624_v42, 2  ;;  %v1071_v50 = vrot.slane %v7625_v22, 2  ;;  %v4806_v51 = vunpack.c.l.bf16 %v6693_v24  ;;  %v6926_v38 = vsel %vm1002_vm4, %v3627_v46, %v3629_v0 }
  0xc7   : > { %5083 = vmatprep.mubr.msk.bf16.mxu1 %vm525_vm3, %v7626_v25  ;;  %v7627_v42 = vpack.c.bf16 %v6618_v33, %v6615_v19  ;;  %v7628_v30 = vunpack.c.h.bf16 %v6687_v16  ;;  %v7629_v18 = vunpack.c.l.bf16 %v6690_v36  ;;  %v1073_v20 = vrot.slane %v984_v9, 2 }
  0xc8   : > { %v6938_v12 = vsel %vm1002_vm4, %v3626_v37, %v3627_v46  ;;  %v7630_v52 = vpack.c.bf16 %v6630_v44, %v6627_v63  ;;  %v7631_v19 = vunpack.c.h.bf16 %v6130_v27  ;;  %v3087_v16 = vunpack.c.h.bf16 %v6913_v43 }
  0xc9   : > { %5234 = vmatmul.mubr.msk.bf16.vlgmr.msra.gmra.mrb[0].mxu0 %vm525_vm3, %v7627_v42  ;;  %v3175_v23 = vrot.slane %v7628_v30, 1  ;;  %v3177_v25 = vrot.slane %v7629_v18, 1  ;;  %v3088_v36 = vunpack.c.l.bf16 %v6916_v56  ;;  %v3702_v9 = vpack.c.bf16 %v6926_v38, %v6938_v12  ;;  %v7677_v38 = vld [vmem:[#allocation15_spill] sm:$0xff] }
  0xca   : > { %5266 = vmatpush3.bf16.msra.mxu0 %v6401_v39  ;;  %5237 = vmatprep.mubr.msk.bf16.mxu0 %vm525_vm3, %v7630_v52  ;;  %v1074_v33 = vrot.slane %v7631_v19, 2  ;;  %v1070_v37 = vsel %vm1002_vm4, %v1068_v7, %v1069_v62  ;;  %v7632_v39 = vunpack.c.l.bf16 %v6133_v28  ;;  %v985_v63 = vunpack.c.l.bf16 %v969_v54  ;;  %v6964_v19 = vld [vmem:[%s5742_s27 + $0xb4] sm:$0xff]  }
  0xcb   : > { %v3560_v44 = vunpack.c.l.bf16 %v4671_v4  ;;  %v3179_v0 = vrot.slane %v4806_v51, 1  ;;  %v7633_v27 = vunpack.c.h.bf16 %v6693_v24  ;;  %v3637_v42 = vrot.slane %v3087_v16, 2 }
  0xcc   : > { %v1076_v46 = vrot.slane %v7632_v39, 2  ;;  %v3639_v30 = vrot.slane %v3088_v36, 2  ;;  %v3265_v18 = vpack.c.bf16 %v3173_v31, %v3171_v49  ;;  %v1072_v7 = vsel %vm1002_vm4, %v1069_v62, %v1071_v50  ;;  %v6970_v39 = vld [vmem:[%s5742_s27 + $0xbc] sm:$0x1]  ;;  %v4673_v49 = vld [vmem:[%s5742_s27 + $0xb4] sm:$0xe] }
  0xcd   : > { %v3180_v22 = vrot.slane %v7633_v27, 1  ;;  %v7634_v28 = vunpack.c.l.bf16 %v6714_v11  ;;  %v3636_v54 = vrot.slane %v3560_v44, 2  ;;  %v3176_v51 = vsel %vm384_vm2, %v3174_v26, %v3175_v23  ;;  %v7635_v62 = vld [vmem:[#allocation21_spill] sm:$0xff]  ;;  %v7637_v44 = vld [vmem:[#allocation3_spill] sm:$0xff] }
  0xce   : > { %v3178_v24 = vsel %vm384_vm2, %v3175_v23, %v3177_v25  ;;  %v1075_v4 = vsel %vm1002_vm4, %v1073_v20, %v1074_v33  ;;  %v6973_v27 = vsel %vm1002_vm4, %v3637_v42, %v3639_v30  ;;  %v7636_v11 = vpack.c.bf16 %v6638_v3, %v7635_v62  ;;  %v7639_v20 = vld [vmem:[#allocation4_spill] sm:$0xff]  ;;  %v6991_v62 = vld [vmem:[%s5742_s27 + $0x80] sm:$0x1] }
  0xcf   : > { %v3182_v52 = vrot.slane %v7634_v28, 1  ;;  %v1077_v50 = vsel %vm1002_vm4, %v1074_v33, %v1076_v46  ;;  %v1078_v31 = vrot.slane %v985_v63, 2  ;;  %v7638_v26 = vunpack.c.h.bf16 %v7637_v44 }
  0xd0   : > { %5084 = vmatmul.mubr.msk.bf16.gmra.mrb[20].mxu1 %vm525_vm3, %v7636_v11  ;;  %v6984_v23 = vsel %vm1002_vm4, %v3636_v54, %v3637_v42  ;;  %v3181_v25 = vsel %vm384_vm2, %v3179_v0, %v3180_v22  ;;  %v7640_v30 = vunpack.c.l.bf16 %v7639_v20  ;;  %v3093_v33 = vunpack.c.h.bf16 %v6964_v19 }
  0xd1   : > { %v1079_v28 = vrot.slane %v7638_v26, 2  ;;  %5087 = vmatprep.mubr.msk.bf16.mxu1 %vm525_vm3, %v1127_v1  ;;  %5238 = vmatmul.mubr.msk.bf16.gmra.mrb[4].mxu0 %vm525_vm3, %v3264_v59  ;;  %v3183_v1 = vsel %vm384_vm2, %v3180_v22, %v3182_v52  ;;  %v3074_v63 = vunpack.c.l.bf16 %v6717_v10  ;;  %v3094_v0 = vunpack.c.l.bf16 %v6970_v39 }
  0xd2   : > { %v1081_v3 = vrot.slane %v7640_v30, 2  ;;  %v3562_v42 = vunpack.c.l.bf16 %v4673_v49  ;;  %5241 = vmatprep.mubr.msk.bf16.mxu0 %vm525_vm3, %v3265_v18  ;;  %v1128_v54 = vpack.c.bf16 %v1072_v7, %v1070_v37  ;;  %v3647_v11 = vrot.slane %v3093_v33, 2  ;;  %v4675_v7 = vld [vmem:[%s5742_s27 + $0xcc] sm:$0xe] }
  0xd3   : > { %v3266_v44 = vpack.c.bf16 %v3178_v24, %v3176_v51  ;;  %v3079_v26 = vunpack.c.l.bf16 %v6991_v62  ;;  %v3649_v22 = vrot.slane %v3094_v0, 2  ;;  %v1129_v52 = vpack.c.bf16 %v1077_v50, %v1075_v4  ;;  %v5637_v62 = vld [vmem:[%s5742_s27 + $0xc0] sm:$0xff]  }
  0xd4   : > { %v3646_v59 = vrot.slane %v3562_v42, 2  ;;  %v3267_v20 = vpack.c.bf16 %v3183_v1, %v3181_v25  ;;  %v1080_v18 = vsel %vm1002_vm4, %v1078_v31, %v1079_v28  ;;  %v1082_v37 = vsel %vm1002_vm4, %v1079_v28, %v1081_v3  ;;  %v7037_v3 = vld [vmem:[%s5742_s27 + $0x98] sm:$0x1] }
  0xd5   : > { %v3184_v49 = vrot.slane %v3074_v63, 1  ;;  %v7641_v51 = vunpack.c.h.bf16 %v6717_v10  ;;  %v7024_v42 = vsel %vm1002_vm4, %v3647_v11, %v3649_v22  ;;  %v7642_v46 = vunpack.c.l.bf16 %v6726_v17 }
  0xd6   : > { %v7021_v30 = vsel %vm1002_vm4, %v3646_v59, %v3647_v11  ;;  %v3099_v50 = vunpack.c.h.bf16 %v7008_v57  ;;  %v3100_v31 = vunpack.c.l.bf16 %v7011_v40  ;;  %v3192_v10 = vrot.slane %v3079_v26, 1 }
  0xd7   : > { %v3185_v24 = vrot.slane %v7641_v51, 1  ;;  %v3187_v4 = vrot.slane %v7642_v46, 1  ;;  %v3706_v28 = vpack.c.bf16 %v7024_v42, %v7021_v30  ;;  %v3564_v25 = vunpack.c.l.bf16 %v4675_v7  ;;  %v5654_v7 = vld [vmem:[%s5742_s27 + $0x90] sm:$0xff]  }
  0xd8   : > { %5088 = vmatmul.mubr.msk.bf16.gmra.mrb[24].mxu1 %vm525_vm3, %v1128_v54  ;;  %v3657_v17 = vrot.slane %v3099_v50, 2  ;;  %v3659_v46 = vrot.slane %v3100_v31, 2  ;;  %v1130_v1 = vpack.c.bf16 %v1082_v37, %v1080_v18  ;;  %v3080_v63 = vunpack.c.l.bf16 %v6848_v14  ;;  %v5622_v18 = vld [vmem:[%s5742_s27 + $0xc] sm:$0xff]  }
  0xd9   : > { %5091 = vmatprep.mubr.msk.bf16.mxu1 %vm525_vm3, %v1129_v52  ;;  %5242 = vmatmul.mubr.msk.bf16.gmra.mrb[8].mxu0 %vm525_vm3, %v3266_v44  ;;  %v3186_v54 = vsel %vm384_vm2, %v3184_v49, %v3185_v24  ;;  %v3188_v11 = vsel %vm384_vm2, %v3185_v24, %v3187_v4  ;;  %v3656_v59 = vrot.slane %v3564_v25, 2  ;;  %v3193_v52 = vsel %vm384_vm2, %v6474_v35, %v3192_v10 }
  0xda   : > { %5245 = vmatprep.mubr.msk.bf16.mxu0 %vm525_vm3, %v3267_v20  ;;  %v7049_v22 = vsel %vm1002_vm4, %v3657_v17, %v3659_v46  ;;  %v4814_v51 = vunpack.c.l.bf16 %v5654_v7  ;;  %v3085_v44 = vunpack.c.l.bf16 %v7037_v3  ;;  %v3268_v20 = vpack.c.bf16 %v3188_v11, %v3186_v54 }
  0xdb   : > { %v7057_v37 = vsel %vm1002_vm4, %v3656_v59, %v3657_v17  ;;  %v3269_v24 = vpack.c.bf16 %v3193_v52, %v6881_v48  ;;  %v3194_v4 = vrot.slane %v3080_v63, 1  ;;  %v3195_v35 = vrot.slane %v3081_v15, 1  ;;  %v7644_v17 = vld [vmem:[#allocation9_spill] sm:$0xff]  ;;  %v7075_v63 = vld [vmem:[%s5742_s27 + $0xb0] sm:$0x1] }
  0xdc   : > { %v3708_v49 = vpack.c.bf16 %v7049_v22, %v7057_v37  ;;  %v7643_v10 = vunpack.c.l.bf16 %v6851_v6  ;;  %v3199_v46 = vrot.slane %v4814_v51, 1  ;;  %v7645_v59 = vunpack.c.h.bf16 %v7644_v17  ;;  %v5655_v51 = vld [vmem:[%s5742_s27 + $0xa8] sm:$0xff]  }
  0xdd   : > { %v3202_v11 = vrot.slane %v3085_v44, 1  ;;  %v3196_v14 = vsel %vm384_vm2, %v3194_v4, %v3195_v35  ;;  %v3086_v15 = vunpack.c.l.bf16 %v6913_v43  ;;  %v7107_v43 = vld [vmem:[%s5742_s27 + $0xc8] sm:$0x1]  ;;  %v7678_v12 = vunpack.c.l.bf16 %v7677_v38 }
  0xde   : > { %v3197_v25 = vrot.slane %v7643_v10, 1  ;;  %v7069_v54 = vrot.slane %v7645_v59, 1  ;;  %v7646_v59 = vld [vmem:[#allocation14_spill] sm:$0xff] }
  0xe0   : > { %5092 = vmatmul.mubr.msk.bf16.gmra.mrb[28].mxu1 %vm525_vm3, %v1130_v1  ;;  %v3198_v6 = vsel %vm384_vm2, %v3195_v35, %v3197_v25  ;;  %v5623_v1 = vld [vmem:[%s5742_s27 + $0x18] sm:$0xff]   ;;  %v7085_v52 = vsel %vm384_vm2, %v3199_v46, %v7069_v54  ;;  %v3203_v7 = vsel %vm384_vm2, %v7069_v54, %v3202_v11  ;;  %v3204_v35 = vrot.slane %v3086_v15, 1  ;;  %v5625_v15 = vld [vmem:[%s5742_s27 + $0x30] sm:$0xff]  }
  0xe1   : > { %5097 = vmatprep.mubr.msk.bf16.mxu1 %vm525_vm3, %v5622_v18  ;;  %5246 = vmatmul.mubr.msk.bf16.gmra.mrb[12].mxu0 %vm525_vm3, %v3268_v20  ;;  %v4818_v18 = vunpack.c.l.bf16 %v5655_v51  ;;  %v3091_v20 = vunpack.c.l.bf16 %v7075_v63  ;;  %v3270_v10 = vpack.c.bf16 %v3198_v6, %v3196_v14  ;;  %v3271_v4 = vpack.c.bf16 %v3203_v7, %v7085_v52  ;;  %v7648_v6 = vld [vmem:[#allocation2_spill] sm:$0xff] }
  0xe2   : > { %5249 = vmatprep.mubr.msk.bf16.mxu0 %vm525_vm3, %v3269_v24  ;;  %v5624_v24 = vld [vmem:[%s5742_s27 + $0x24] sm:$0xff]   ;;  %v3205_v25 = vrot.slane %v3087_v16, 1  ;;  %v3207_v46 = vrot.slane %v3088_v36, 1  ;;  %v7647_v11 = vunpack.c.h.bf16 %v7646_v59  ;;  %v3092_v36 = vunpack.c.l.bf16 %v6964_v19  ;;  %v5626_v59 = vld [vmem:[%s5742_s27 + $0x3c] sm:$0xff]  }
  0xe3   : > { %v3209_v17 = vrot.slane %v4818_v18, 1  ;;  %v3212_v14 = vrot.slane %v3091_v20, 1  ;;  %v7649_v18 = vld [vmem:[#allocation18_spill] sm:$0xff] }
  0xe4   : > { %v7100_v51 = vrot.slane %v7647_v11, 1  ;;  %v3206_v56 = vsel %vm384_vm2, %v3204_v35, %v3205_v25  ;;  %v3208_v16 = vsel %vm384_vm2, %v3205_v25, %v3207_v46  ;;  %v3214_v25 = vrot.slane %v3092_v36, 1 }
  0xe5   : > { %v3215_v46 = vrot.slane %v3093_v33, 1  ;;  %v3098_v33 = vunpack.c.l.bf16 %v7008_v57 }
  0xe6   : > { %v3213_v7 = vsel %vm384_vm2, %v7100_v51, %v3212_v14  ;;  %v7650_v14 = vunpack.c.h.bf16 %v7649_v18 }
  0xe7   : > { %v3216_v19 = vsel %vm384_vm2, %v3214_v25, %v3215_v46  ;;  %v5630_v25 = vld [vmem:[%s5742_s27 + $0x6c] sm:$0xff]  }
  0xe8   : > { %5098 = vmatmul.mubr.msk.bf16.vlgmr.msra.gmra.mrb[0].mxu1 %vm525_vm3, %v5623_v1  ;;  %v7117_v1 = vsel %vm384_vm2, %v3209_v17, %v7100_v51  ;;  %v3217_v17 = vrot.slane %v3094_v0, 1  ;;  %v5627_v0 = vld [vmem:[%s5742_s27 + $0x48] sm:$0xff]  }
  0xe9   : > { %5300 = vmatpush3.bf16.msra.mxu1 %v7648_v6  ;;  %5101 = vmatprep.mubr.msk.bf16.mxu1 %vm525_vm3, %v5624_v24  ;;  %v4822_v24 = vunpack.c.l.bf16 %v7649_v18  ;;  %v3273_v35 = vpack.c.bf16 %v3213_v7, %v7117_v1  ;;  %v7132_v6 = vrot.slane %v7650_v14, 1  ;;  %v7653_v14 = vpack.c.bf16 %v6773_v53, %v6770_v5  ;;  %v5635_v53 = vld [vmem:[%s5742_s27 + $0xa8] sm:$0xff]  }
  0xea   : > { %5250 = vmatmul.mubr.msk.bf16.gmra.mrb[16].mxu0 %vm525_vm3, %v3270_v10  ;;  %v3097_v10 = vunpack.c.l.bf16 %v7107_v43  ;;  %v3218_v39 = vsel %vm384_vm2, %v3215_v46, %v3217_v17  ;;  %v5631_v46 = vld [vmem:[%s5742_s27 + $0x78] sm:$0xff]   ;;  %v5632_v17 = vld [vmem:[%s5742_s27 + $0x84] sm:$0xff]   ;;  %v7683_v43 = vld [vmem:[#allocation20_spill] sm:$0xff] }
  0xeb   : > { %5253 = vmatprep.mubr.msk.bf16.mxu0 %vm525_vm3, %v3271_v4  ;;  %v3272_v4 = vpack.c.bf16 %v3208_v16, %v3206_v56  ;;  %v3219_v11 = vrot.slane %v4822_v24, 1  ;;  %v3274_v7 = vpack.c.bf16 %v3218_v39, %v3216_v19  ;;  %v3224_v24 = vrot.slane %v3098_v33, 1  ;;  %v4668_v19 = vld [vmem:[%s5742_s27 + $0x78] sm:$0xe] }
  0xec   : > { %v3222_v56 = vrot.slane %v3097_v10, 1  ;;  %v7654_v39 = vpack.c.bf16 %v6780_v45, %v6789_v61  ;;  %v3557_v33 = vunpack.c.l.bf16 %v4668_v19  ;;  %v3624_v61 = vrot.slane %v3079_v26, 2  ;;  %v7663_v26 = vld [vmem:[#allocation8_spill] sm:$0xff] }
  0xed   : > { %v7145_v16 = vsel %vm384_vm2, %v3219_v11, %v7132_v6  ;;  %v7652_v11 = vpack.c.bf16 %v6747_v13, %v6759_v29  ;;  %v7655_v29 = vld [vmem:[#allocation22_spill] sm:$0xff] }
  0xee   : > { %v3223_v36 = vsel %vm384_vm2, %v7132_v6, %v3222_v56  ;;  %v4456_v56 = vld [vmem:[%s5742_s27 + $0x6c] ss:$24 sps:$4 sm:$0xff]   ;;  %v7656_v5 = vpack.c.bf16 %v6803_v47, %v7655_v29  ;;  %v3621_v45 = vrot.slane %v3557_v33, 2  ;;  %v4670_v47 = vld [vmem:[%s5742_s27 + $0x90] sm:$0xe]  ;;  %v7667_v29 = vpack.c.bf16 %v6856_v8, %v6876_v55 }
  0xef   : > { %v3275_v18 = vpack.c.bf16 %v3223_v36, %v7145_v16  ;;  %v1791_v13 = vunpack.c.l.bf16 %v4456_v56 }
  0xf0   : > { %5102 = vmatmul.mubr.msk.bf16.gmra.mrb[4].mxu1 %vm525_vm3, %v5625_v15  ;;  %v5628_v15 = vld [vmem:[%s5742_s27 + $0x54] sm:$0xff]  }
  0xf1   : > { %5105 = vmatprep.mubr.msk.bf16.mxu1 %vm525_vm3, %v5626_v59  ;;  %v3225_v59 = vrot.slane %v3099_v50, 1  ;;  %v5629_v50 = vld [vmem:[%s5742_s27 + $0x60] sm:$0xff]   ;;  %v1903_v36 = vrot.slane %v1791_v13, 1  ;;  %v4672_v13 = vld [vmem:[%s5742_s27 + $0xa8] sm:$0xe] }
  0xf2   : > { %5254 = vmatmul.mubr.msk.bf16.gmra.mrb[20].mxu0 %vm525_vm3, %v3272_v4  ;;  %v3227_v4 = vrot.slane %v3100_v31, 1  ;;  %v7651_v31 = vpack.c.bf16 %v6738_v21, %v6744_v60  ;;  %v5633_v21 = vld [vmem:[%s5742_s27 + $0x90] sm:$0xff]   ;;  %v5634_v60 = vld [vmem:[%s5742_s27 + $0x9c] sm:$0xff]  }
  0xf3   : > { %5257 = vmatprep.mubr.msk.bf16.mxu0 %vm525_vm3, %v3273_v35  ;;  %v3226_v35 = vsel %vm384_vm2, %v3224_v24, %v3225_v59  ;;  %v7659_v24 = vld [vmem:[#allocation6_spill] sm:$0xff] }
  0xf4   : > { %v3228_v57 = vsel %vm384_vm2, %v3225_v59, %v3227_v4  ;;  %v7660_v59 = vunpack.c.l.bf16 %v7659_v24  ;;  %v7671_v24 = vld [vmem:[#allocation11_spill] sm:$0xff] }
  0xf5   : > { %v3276_v40 = vpack.c.bf16 %v3228_v57, %v3226_v35  ;;  %v7661_v35 = vpack.c.bf16 %v6808_v41, %v6818_v34  ;;  %v3625_v41 = vsel %vm1002_vm4, %v7663_v26, %v3624_v61  ;;  %v3559_v34 = vunpack.c.l.bf16 %v4670_v47 }
  0xf6   : > { %v1906_v4 = vrot.slane %v7660_v59, 1  ;;  %v7672_v59 = vunpack.c.l.bf16 %v7671_v24 }
  0xf7   : > { %v3631_v19 = vrot.slane %v3559_v34, 2 }
  0xf8   : > { %5106 = vmatmul.mubr.msk.bf16.gmra.mrb[8].mxu1 %vm525_vm3, %v5627_v0  ;;  %v5636_v0 = vld [vmem:[%s5742_s27 + $0xb4] sm:$0xff]  }
  0xf9   : > { %5109 = vmatprep.mubr.msk.bf16.mxu1 %vm525_vm3, %v5628_v15  ;;  %v7657_v15 = vld [vmem:[#allocation5_spill] sm:$0xff] }
  0xfa   : > { %5258 = vmatmul.mubr.msk.bf16.gmra.mrb[24].mxu0 %vm525_vm3, %v3274_v7  ;;  %v7658_v7 = vunpack.c.l.bf16 %v7657_v15 }
  0xfb   : > { %5261 = vmatprep.mubr.msk.bf16.mxu0 %vm525_vm3, %v3275_v18 }
  0xfc   : > { %v1904_v18 = vrot.slane %v7658_v7, 1  ;;  %v7669_v7 = vld [vmem:[#allocation10_spill] sm:$0xff] }
  0xfd   : > { %v7670_v8 = vunpack.c.l.bf16 %v7669_v7 }
  0xfe   : > { %v1905_v57 = vsel %vm384_vm2, %v1903_v36, %v1904_v18  ;;  %v3561_v36 = vunpack.c.l.bf16 %v4672_v13 }
  0xff   : > { %v1921_v55 = vrot.slane %v7670_v8, 1 }
 0x100   : > { %5110 = vmatmul.mubr.msk.bf16.gmra.mrb[12].mxu1 %vm525_vm3, %v5629_v50  ;;  %v1907_v50 = vsel %vm384_vm2, %v1904_v18, %v1906_v4  ;;  %v1924_v4 = vrot.slane %v7672_v59, 1  ;;  %v7327_v59 = vld [vmem:[%s7448_s2] ss:$0 sm:$0xff] }
 0x101   : > { %5113 = vmatprep.mubr.msk.bf16.mxu1 %vm525_vm3, %v5630_v25  ;;  %v1797_v25 = vunpack.c.h.bf16 %v4456_v56 }
 0x102   : > { %5262 = vmatmul.mubr.msk.bf16.gmra.mrb[28].mxu0 %vm525_vm3, %v3276_v40  ;;  %v7662_v40 = vpack.c.bf16 %v6839_v32, %v6836_v58  ;;  %v4468_v32 = vld [vmem:[%s5742_s27 + $0x9c] ss:$24 sps:$4 sm:$0xff]  }
 0x103   : > { %5267 = vmatprep.mubr.msk.bf16.mxu0 %vm525_vm3, %v7651_v31  ;;  %v3623_v31 = vsel %vm1002_vm4, %v3621_v45, %v7663_v26  ;;  %v1803_v33 = vunpack.c.l.bf16 %v4468_v32  ;;  %v7673_v45 = vld [vmem:[#allocation12_spill] sm:$0xff] }
 0x104   : > { %v3701_v58 = vpack.c.bf16 %v3625_v41, %v3623_v31  ;;  %v7674_v61 = vunpack.c.l.bf16 %v7673_v45 }
 0x105   : > { %v1923_v18 = vrot.slane %v1803_v33, 1 }
 0x106   : > { %v1926_v47 = vrot.slane %v7674_v61, 1 }
 0x107   : > { %v1925_v26 = vsel %vm384_vm2, %v1923_v18, %v1924_v4 }
 0x108   : > { %5114 = vmatmul.mubr.msk.bf16.gmra.mrb[16].mxu1 %vm525_vm3, %v5631_v46  ;;  %v1983_v46 = vpack.c.bf16 %v1907_v50, %v1905_v57  ;;  %v7675_v57 = vpack.c.bf16 %v6886_v2, %v6881_v48  ;;  %v3641_v50 = vrot.slane %v3561_v36, 2  ;;  %v1927_v48 = vsel %vm384_vm2, %v1924_v4, %v1926_v47 }
 0x109   : > { %5117 = vmatprep.mubr.msk.bf16.mxu1 %vm525_vm3, %v5632_v17  ;;  %v1913_v17 = vrot.slane %v1797_v25, 1  ;;  %v3644_v25 = vrot.slane %v3091_v20, 2  ;;  %v1809_v2 = vunpack.c.h.bf16 %v4468_v32  ;;  %v7676_v20 = vld [vmem:[#allocation17_spill] sm:$0xff]  ;;  %v1987_v34 = vpack.c.bf16 %v1927_v48, %v1925_v26 }
 0x10a   : > { %5268 = vmatmul.mubr.msk.bf16.vlgmr.msra.gmra.mrb[0].mxu0 %vm525_vm3, %v7652_v11  ;;  %v7664_v11 = vunpack.c.h.bf16 %v7657_v15  ;;  %v3643_v31 = vsel %vm1002_vm4, %v3641_v50, %v7676_v20 }
 0x10b   : > { %5271 = vmatprep.mubr.msk.bf16.mxu0 %vm525_vm3, %v7653_v14 }
 0x10c   : > { %v1914_v14 = vrot.slane %v7664_v11, 1 }
 0x110   : > { %5118 = vmatmul.mubr.msk.bf16.gmra.mrb[20].mxu1 %vm525_vm3, %v5633_v21  ;;  %v7665_v21 = vld [vmem:[#allocation7_spill] sm:$0xff] }
 0x111   : > { %5121 = vmatprep.mubr.msk.bf16.mxu1 %vm525_vm3, %v5634_v60  ;;  %v7666_v60 = vunpack.c.l.bf16 %v7665_v21 }
 0x112   : > { %5272 = vmatmul.mubr.msk.bf16.gmra.mrb[4].mxu0 %vm525_vm3, %v7654_v39  ;;  %v3634_v39 = vrot.slane %v3085_v44, 2 }
 0x113   : > { %5275 = vmatprep.mubr.msk.bf16.mxu0 %vm525_vm3, %v7656_v5  ;;  %v1916_v56 = vrot.slane %v7666_v60, 1  ;;  %v1915_v5 = vsel %vm384_vm2, %v1913_v17, %v1914_v14  ;;  %v7679_v17 = vunpack.c.h.bf16 %v7671_v24 }
 0x115   : > { %v1934_v11 = vrot.slane %v7679_v17, 1 }
 0x118   : > { %5122 = vmatmul.mubr.msk.bf16.gmra.mrb[24].mxu1 %vm525_vm3, %v5635_v53  ;;  %v1917_v53 = vsel %vm384_vm2, %v1914_v14, %v1916_v56  ;;  %v7680_v14 = vld [vmem:[#allocation16_spill] sm:$0xff] }
 0x119   : > { %5125 = vmatprep.mubr.msk.bf16.mxu1 %vm525_vm3, %v5636_v0  ;;  %v7668_v0 = vld [vmem:[#allocation13_spill] sm:$0xff]  ;;  %v1985_v15 = vpack.c.bf16 %v1917_v53, %v1915_v5  ;;  %v7681_v21 = vunpack.c.l.bf16 %v7680_v14  ;;  %v7684_v53 = vld [vmem:[#allocation19_spill] sm:$0xff] }
 0x11a   : > { %5276 = vmatmul.mubr.msk.bf16.gmra.mrb[8].mxu0 %vm525_vm3, %v7661_v35  ;;  %v3633_v3 = vsel %vm1002_vm4, %v3631_v19, %v7668_v0  ;;  %v3635_v44 = vsel %vm1002_vm4, %v7668_v0, %v3634_v39  ;;  %v7682_v19 = vpack.c.bf16 %v6973_v27, %v6984_v23  ;;  %v7685_v33 = vunpack.c.l.bf16 %v7684_v53 }
 0x11b   : > { %5279 = vmatprep.mubr.msk.bf16.mxu0 %vm525_vm3, %v7662_v40  ;;  %v3703_v35 = vpack.c.bf16 %v3635_v44, %v3633_v3  ;;  %v1922_v40 = vsel %vm384_vm2, %v7069_v54, %v1921_v55  ;;  %v3645_v54 = vsel %vm1002_vm4, %v7676_v20, %v3644_v25  ;;  %v1936_v60 = vrot.slane %v7681_v21, 1 }
 0x11c   : > { %v1986_v63 = vpack.c.bf16 %v1922_v40, %v7085_v52  ;;  %v3705_v56 = vpack.c.bf16 %v3645_v54, %v3643_v31  ;;  %v1941_v27 = vrot.slane %v7685_v33, 1 }
 0x11d   : > { %v1937_v13 = vsel %vm384_vm2, %v1934_v11, %v1936_v60 }
 0x11e   : > { %v1942_v0 = vsel %vm384_vm2, %v7132_v6, %v1941_v27 }
 0x120   : > { %5126 = vmatmul.mubr.msk.bf16.gmra.mrb[28].mxu1 %vm525_vm3, %v5637_v62  ;;  %v4674_v62 = vld [vmem:[%s5742_s27 + $0xc0] sm:$0xe] }
 0x121   : > { %5147 = vmatprep.mubr.msk.bf16.mxu1 %vm525_vm3, %v1983_v46  ;;  %v3563_v41 = vunpack.c.l.bf16 %v4674_v62  ;;  %v1933_v46 = vrot.slane %v1809_v2, 1 }
 0x122   : > { %5280 = vmatmul.mubr.msk.bf16.gmra.mrb[12].mxu0 %vm525_vm3, %v7667_v29 }
 0x123   : > { %5283 = vmatprep.mubr.msk.bf16.mxu0 %vm525_vm3, %v3701_v58  ;;  %v3651_v52 = vrot.slane %v3563_v41, 2  ;;  %v3654_v58 = vrot.slane %v3097_v10, 2  ;;  %v1935_v39 = vsel %vm384_vm2, %v1933_v46, %v1934_v11 }
 0x125   : > { %v3653_v10 = vsel %vm1002_vm4, %v3651_v52, %v7683_v43  ;;  %v3655_v5 = vsel %vm1002_vm4, %v7683_v43, %v3654_v58 }
 0x126   : > { %v3707_v23 = vpack.c.bf16 %v3655_v5, %v3653_v10 }
 0x128   : > { %5148 = vmatmul.mubr.msk.bf16.vlgmr.msra.gmra.mrb[16].mxu1 %vm525_vm3, %v7675_v57 }
 0x129   : > { %5151 = vmatprep.mubr.msk.bf16.mxu1 %vm525_vm3, %v1985_v15 }
 0x12a   : > { %5284 = vmatmul.mubr.msk.bf16.gmra.mrb[16].mxu0 %vm525_vm3, %v3702_v9  ;;  %v1931_v9 = vrot.slane %v7678_v12, 1 }
 0x12b   : > { %5287 = vmatprep.mubr.msk.bf16.mxu0 %vm525_vm3, %v3703_v35 }
 0x12c   : > { %v1932_v32 = vsel %vm384_vm2, %v7100_v51, %v1931_v9  ;;  %v1989_v51 = vpack.c.bf16 %v1937_v13, %v1935_v39 }
 0x12d   : > { %v1988_v29 = vpack.c.bf16 %v1932_v32, %v7117_v1  ;;  %v1990_v1 = vpack.c.bf16 %v1942_v0, %v7145_v16 }
 0x130   : > { %5152 = vmatmul.mubr.msk.bf16.gmra.mrb[20].mxu1 %vm525_vm3, %v1986_v63 }
 0x131   : > { %5155 = vmatprep.mubr.msk.bf16.mxu1 %vm525_vm3, %v1987_v34 }
 0x132   : > { %5288 = vmatmul.mubr.msk.bf16.gmra.mrb[20].mxu0 %vm525_vm3, %v7682_v19 }
 0x133   : > { %5291 = vmatprep.mubr.msk.bf16.mxu0 %vm525_vm3, %v3705_v56 }
 0x138   : > { %5156 = vmatmul.mubr.msk.bf16.gmra.mrb[24].mxu1 %vm525_vm3, %v1988_v29 }
 0x139   : > { %5159 = vmatprep.mubr.msk.bf16.mxu1 %vm525_vm3, %v1989_v51 }
 0x13a   : > { %5292 = vmatmul.mubr.msk.bf16.gmra.mrb[24].mxu0 %vm525_vm3, %v3706_v28 }
 0x13b   : > { %5295 = vmatprep.mubr.msk.bf16.mxu0 %vm525_vm3, %v3707_v23 }
 0x140   : > { %5160 = vmatmul.mubr.msk.bf16.gmra.mrb[28].mxu1 %vm525_vm3, %v1990_v1 }
 0x142   : > { %5296 = vmatmul.mubr.msk.bf16.gmra.mrb[28].mxu0 %vm525_vm3, %v3708_v49 }
 0x1bb   : > { %v5099_v3 = vpop.f32.mrb[0].mxu1 }
 0x1bc   : > { %v1560_v44 = vpop.f32.mrb[1].mxu1 }
 0x1bd   : > { %v5100_v36 = vpop.f32.mrb[2].mxu1 }
 0x1be   : > { %v1563_v6 = vpop.f32.mrb[3].mxu1 }
 0x1c3   : > { %v5103_v15 = vpop.f32.mrb[4].mxu1 }
 0x1c4   : > { %v1576_v7 = vpop.f32.mrb[5].mxu1 }
 0x1c5   : > { %v5104_v30 = vpop.f32.mrb[6].mxu1 }
 0x1c6   : > { %v1579_v42 = vpop.f32.mrb[7].mxu1 }
 0x1cb   : > { %v5107_v28 = vpop.f32.mrb[8].mxu1 }
 0x1cc   : > { %v1592_v8 = vpop.f32.mrb[9].mxu1 }
 0x1cd   : > { %v7312_v55 = vpop.f32.mrb[10].mxu1 }
 0x1ce   : > { %v7314_v16 = vpop.f32.mrb[11].mxu1 }
 0x1d3   : > { %v7316_v18 = vpop.f32.mrb[12].mxu1 }
 0x1d4   : > { %v7318_v22 = vpop.f32.mrb[13].mxu1 }
 0x1d5   : > { %v7320_v37 = vpop.f32.mrb[14].mxu1 }
 0x1d6   : > { %v7322_v49 = vpop.f32.mrb[15].mxu1 }
 0x1dd   : > { %v5269_v24 = vpop.f32.mrb[0].mxu0 }
 0x1de   : > { %v5301_v4 = vadd.f32 %v5269_v24, %v5099_v3  ;;  %v3795_v45 = vpop.f32.mrb[1].mxu0 }
 0x1df   : > { %v5302_v61 = vadd.f32 %v3795_v45, %v1560_v44  ;;  %v5270_v47 = vpop.f32.mrb[2].mxu0 }
 0x1e0   : > { %v3963_v35 = vadd.f32 %v5301_v4, %v7327_v59  ;;  %v5303_v57 = vadd.f32 %v5270_v47, %v5100_v36  ;;  %v3798_v50 = vpop.f32.mrb[3].mxu0 }
 0x1e1   : > { %v3961_v25 = vadd.f32 %v5302_v61, %v7327_v59  ;;  %v5304_v40 = vadd.f32 %v3798_v50, %v1563_v6 }
 0x1e2   : > { %v3995_v62 = vmax.f32 %v3963_v35, 0.0  ;;  %v3964_v26 = vadd.f32 %v5303_v57, %v7327_v59 }
 0x1e3   : > { %v3993_v48 = vmax.f32 %v3961_v25, 0.0  ;;  %v3962_v2 = vadd.f32 %v5304_v40, %v7327_v59 }
 0x1e4   : > { %v4730_v63 = vpack.c.bf16 %v3995_v62, %v3995_v62  ;;  %v3996_v20 = vmax.f32 %v3964_v26, 0.0 }
 0x1e5   : > { %v4728_v31 = vpack.c.bf16 %v3993_v48, %v3993_v48  ;;  %v3994_v54 = vmax.f32 %v3962_v2, 0.0  ;;  %v5273_v41 = vpop.f32.mrb[4].mxu0 }
 0x1e6   : > { %4156 = vst.msk [vmem:[%s7336_s20 + $0x8] sm:$0xf] %vm4153_vm5, %v4730_v63  ;;  %v4731_v34 = vpack.c.bf16 %v3996_v20, %v3996_v20  ;;  %v5305_v38 = vadd.f32 %v5273_v41, %v5103_v15  ;;  %v3811_v12 = vpop.f32.mrb[5].mxu0 }
 0x1e7   : > { %4154 = vst.msk [vmem:[%s7336_s20] sm:$0xf] %vm4153_vm5, %v4728_v31  ;;  %v4729_v9 = vpack.c.bf16 %v3994_v54, %v3994_v54  ;;  %v5306_v46 = vadd.f32 %v3811_v12, %v1576_v7  ;;  %v5274_v17 = vpop.f32.mrb[6].mxu0 }
 0x1e8   : > { %4157 = vst.msk [vmem:[%s7336_s20 + $0xc] sm:$0xf] %vm4153_vm5, %v4731_v34  ;;  %v3967_v11 = vadd.f32 %v5305_v38, %v7327_v59  ;;  %v5307_v14 = vadd.f32 %v5274_v17, %v5104_v30  ;;  %v3814_v21 = vpop.f32.mrb[7].mxu0 }
 0x1e9   : > { %4155 = vst.msk [vmem:[%s7336_s20 + $0x4] sm:$0xf] %vm4153_vm5, %v4729_v9  ;;  %v3965_v60 = vadd.f32 %v5306_v46, %v7327_v59  ;;  %v5308_v56 = vadd.f32 %v3814_v21, %v1579_v42 }
 0x1ea   : > { %v3999_v52 = vmax.f32 %v3967_v11, 0.0  ;;  %v3968_v58 = vadd.f32 %v5307_v14, %v7327_v59 }
 0x1eb   : > { %v3997_v32 = vmax.f32 %v3965_v60, 0.0  ;;  %v3966_v19 = vadd.f32 %v5308_v56, %v7327_v59 }
 0x1ec   : > { %v4734_v39 = vpack.c.bf16 %v3999_v52, %v3999_v52  ;;  %v4000_v13 = vmax.f32 %v3968_v58, 0.0 }
 0x1ed   : > { %v4732_v29 = vpack.c.bf16 %v3997_v32, %v3997_v32  ;;  %v3998_v43 = vmax.f32 %v3966_v19, 0.0  ;;  %v5277_v10 = vpop.f32.mrb[8].mxu0 }
 0x1ee   : > { %4160 = vst.msk [vmem:[%s7336_s20 + $0x18] sm:$0xf] %vm4153_vm5, %v4734_v39  ;;  %v4735_v5 = vpack.c.bf16 %v4000_v13, %v4000_v13  ;;  %v5309_v51 = vadd.f32 %v5277_v10, %v5107_v28  ;;  %v3827_v53 = vpop.f32.mrb[9].mxu0 }
 0x1ef   : > { %4158 = vst.msk [vmem:[%s7336_s20 + $0x10] sm:$0xf] %vm4153_vm5, %v4732_v29  ;;  %v4733_v33 = vpack.c.bf16 %v3998_v43, %v3998_v43  ;;  %v5310_v27 = vadd.f32 %v3827_v53, %v1592_v8  ;;  %v5278_v23 = vpop.f32.mrb[10].mxu0 }
 0x1f0   : > { %4161 = vst.msk [vmem:[%s7336_s20 + $0x1c] sm:$0xf] %vm4153_vm5, %v4735_v5  ;;  %v3971_v0 = vadd.f32 %v5309_v51, %v7327_v59  ;;  %v5311_v1 = vadd.f32 %v5278_v23, %v7312_v55  ;;  %v3830_v3 = vpop.f32.mrb[11].mxu0 }
 0x1f1   : > { %4159 = vst.msk [vmem:[%s7336_s20 + $0x14] sm:$0xf] %vm4153_vm5, %v4733_v33  ;;  %v3969_v44 = vadd.f32 %v5310_v27, %v7327_v59  ;;  %v5312_v36 = vadd.f32 %v3830_v3, %v7314_v16 }
 0x1f2   : > { %v4003_v6 = vmax.f32 %v3971_v0, 0.0  ;;  %v3972_v15 = vadd.f32 %v5311_v1, %v7327_v59 }
 0x1f3   : > { %v4001_v7 = vmax.f32 %v3969_v44, 0.0  ;;  %v3970_v30 = vadd.f32 %v5312_v36, %v7327_v59 }
 0x1f4   : > { %v4738_v42 = vpack.c.bf16 %v4003_v6, %v4003_v6  ;;  %v4004_v28 = vmax.f32 %v3972_v15, 0.0 }
 0x1f5   : > { %v4736_v8 = vpack.c.bf16 %v4001_v7, %v4001_v7  ;;  %v4002_v55 = vmax.f32 %v3970_v30, 0.0  ;;  %v5281_v24 = vpop.f32.mrb[12].mxu0 }
 0x1f6   : > { %4164 = vst.msk [vmem:[%s7336_s20 + $0x28] sm:$0xf] %vm4153_vm5, %v4738_v42  ;;  %v4739_v4 = vpack.c.bf16 %v4004_v28, %v4004_v28  ;;  %v5313_v45 = vadd.f32 %v5281_v24, %v7316_v18  ;;  %v3843_v61 = vpop.f32.mrb[13].mxu0 }
 0x1f7   : > { %4162 = vst.msk [vmem:[%s7336_s20 + $0x20] sm:$0xf] %vm4153_vm5, %v4736_v8  ;;  %v4737_v16 = vpack.c.bf16 %v4002_v55, %v4002_v55  ;;  %v5314_v47 = vadd.f32 %v3843_v61, %v7318_v22  ;;  %v5282_v35 = vpop.f32.mrb[14].mxu0 }
 0x1f8   : > { %4165 = vst.msk [vmem:[%s7336_s20 + $0x2c] sm:$0xf] %vm4153_vm5, %v4739_v4  ;;  %v3975_v57 = vadd.f32 %v5313_v45, %v7327_v59  ;;  %v5315_v50 = vadd.f32 %v5282_v35, %v7320_v37  ;;  %v3846_v25 = vpop.f32.mrb[15].mxu0 }
 0x1f9   : > { %4163 = vst.msk [vmem:[%s7336_s20 + $0x24] sm:$0xf] %vm4153_vm5, %v4737_v16  ;;  %v3973_v40 = vadd.f32 %v5314_v47, %v7327_v59  ;;  %v5316_v18 = vadd.f32 %v3846_v25, %v7322_v49 }
 0x1fa   : > { %v4007_v62 = vmax.f32 %v3975_v57, 0.0  ;;  %v3976_v26 = vadd.f32 %v5315_v50, %v7327_v59 }
 0x1fb   : > { %v4005_v22 = vmax.f32 %v3973_v40, 0.0  ;;  %v3974_v48 = vadd.f32 %v5316_v18, %v7327_v59  ;;  %v5149_v2 = vpop.f32.mrb[16].mxu1 }
 0x1fc   : > { %v4742_v63 = vpack.c.bf16 %v4007_v62, %v4007_v62  ;;  %v4008_v20 = vmax.f32 %v3976_v26, 0.0  ;;  %v2145_v37 = vpop.f32.mrb[17].mxu1 }
 0x1fd   : > { %v4740_v31 = vpack.c.bf16 %v4005_v22, %v4005_v22  ;;  %v4006_v54 = vmax.f32 %v3974_v48, 0.0  ;;  %v5285_v41 = vpop.f32.mrb[16].mxu0  ;;  %v5150_v34 = vpop.f32.mrb[18].mxu1 }
 0x1fe   : > { %4168 = vst.msk [vmem:[%s7336_s20 + $0x38] sm:$0xf] %vm4153_vm5, %v4742_v63  ;;  %v4743_v49 = vpack.c.bf16 %v4008_v20, %v4008_v20  ;;  %v5317_v38 = vadd.f32 %v5285_v41, %v5149_v2  ;;  %v3859_v12 = vpop.f32.mrb[17].mxu0  ;;  %v2148_v9 = vpop.f32.mrb[19].mxu1 }
 0x1ff   : > { %4166 = vst.msk [vmem:[%s7336_s20 + $0x30] sm:$0xf] %vm4153_vm5, %v4740_v31  ;;  %v4741_v46 = vpack.c.bf16 %v4006_v54, %v4006_v54  ;;  %v5318_v17 = vadd.f32 %v3859_v12, %v2145_v37  ;;  %v5286_v11 = vpop.f32.mrb[18].mxu0 }
 0x200   : > { %4169 = vst.msk [vmem:[%s7336_s20 + $0x3c] sm:$0xf] %vm4153_vm5, %v4743_v49  ;;  %v3979_v14 = vadd.f32 %v5317_v38, %v7327_v59  ;;  %v5319_v21 = vadd.f32 %v5286_v11, %v5150_v34  ;;  %v3862_v60 = vpop.f32.mrb[19].mxu0 }
 0x201   : > { %4167 = vst.msk [vmem:[%s7336_s20 + $0x34] sm:$0xf] %vm4153_vm5, %v4741_v46  ;;  %v3977_v56 = vadd.f32 %v5318_v17, %v7327_v59  ;;  %v5320_v52 = vadd.f32 %v3862_v60, %v2148_v9 }
 0x202   : > { %v4011_v58 = vmax.f32 %v3979_v14, 0.0  ;;  %v3980_v32 = vadd.f32 %v5319_v21, %v7327_v59 }
 0x203   : > { %v4009_v19 = vmax.f32 %v3977_v56, 0.0  ;;  %v3978_v39 = vadd.f32 %v5320_v52, %v7327_v59  ;;  %v5153_v13 = vpop.f32.mrb[20].mxu1 }
 0x204   : > { %v4746_v29 = vpack.c.bf16 %v4011_v58, %v4011_v58  ;;  %v4012_v43 = vmax.f32 %v3980_v32, 0.0  ;;  %v2161_v10 = vpop.f32.mrb[21].mxu1 }
 0x205   : > { %v4744_v5 = vpack.c.bf16 %v4009_v19, %v4009_v19  ;;  %v4010_v51 = vmax.f32 %v3978_v39, 0.0  ;;  %v5289_v53 = vpop.f32.mrb[20].mxu0  ;;  %v5154_v33 = vpop.f32.mrb[22].mxu1 }
 0x206   : > { %4172 = vst.msk [vmem:[%s7336_s20 + $0x48] sm:$0xf] %vm4153_vm5, %v4746_v29  ;;  %v4747_v27 = vpack.c.bf16 %v4012_v43, %v4012_v43  ;;  %v5321_v23 = vadd.f32 %v5289_v53, %v5153_v13  ;;  %v3875_v0 = vpop.f32.mrb[21].mxu0  ;;  %v2164_v1 = vpop.f32.mrb[23].mxu1 }
 0x207   : > { %4170 = vst.msk [vmem:[%s7336_s20 + $0x40] sm:$0xf] %vm4153_vm5, %v4744_v5  ;;  %v4745_v3 = vpack.c.bf16 %v4010_v51, %v4010_v51  ;;  %v5322_v44 = vadd.f32 %v3875_v0, %v2161_v10  ;;  %v5290_v36 = vpop.f32.mrb[22].mxu0 }
 0x208   : > { %4173 = vst.msk [vmem:[%s7336_s20 + $0x4c] sm:$0xf] %vm4153_vm5, %v4747_v27  ;;  %v3983_v6 = vadd.f32 %v5321_v23, %v7327_v59  ;;  %v5323_v15 = vadd.f32 %v5290_v36, %v5154_v33  ;;  %v3878_v7 = vpop.f32.mrb[23].mxu0 }
 0x209   : > { %4171 = vst.msk [vmem:[%s7336_s20 + $0x44] sm:$0xf] %vm4153_vm5, %v4745_v3  ;;  %v3981_v30 = vadd.f32 %v5322_v44, %v7327_v59  ;;  %v5324_v42 = vadd.f32 %v3878_v7, %v2164_v1 }
 0x20a   : > { %v4015_v28 = vmax.f32 %v3983_v6, 0.0  ;;  %v3984_v8 = vadd.f32 %v5323_v15, %v7327_v59 }
 0x20b   : > { %v4013_v55 = vmax.f32 %v3981_v30, 0.0  ;;  %v3982_v24 = vadd.f32 %v5324_v42, %v7327_v59  ;;  %v5157_v4 = vpop.f32.mrb[24].mxu1 }
 0x20c   : > { %v4750_v45 = vpack.c.bf16 %v4015_v28, %v4015_v28  ;;  %v4016_v61 = vmax.f32 %v3984_v8, 0.0  ;;  %v2177_v16 = vpop.f32.mrb[25].mxu1 }
 0x20d   : > { %v4748_v47 = vpack.c.bf16 %v4013_v55, %v4013_v55  ;;  %v4014_v35 = vmax.f32 %v3982_v24, 0.0  ;;  %v5293_v57 = vpop.f32.mrb[24].mxu0  ;;  %v5158_v50 = vpop.f32.mrb[26].mxu1 }
 0x20e   : > { %4176 = vst.msk [vmem:[%s7336_s20 + $0x58] sm:$0xf] %vm4153_vm5, %v4750_v45  ;;  %v4751_v25 = vpack.c.bf16 %v4016_v61, %v4016_v61  ;;  %v5325_v40 = vadd.f32 %v5293_v57, %v5157_v4  ;;  %v3891_v18 = vpop.f32.mrb[25].mxu0  ;;  %v2180_v62 = vpop.f32.mrb[27].mxu1 }
 0x20f   : > { %4174 = vst.msk [vmem:[%s7336_s20 + $0x50] sm:$0xf] %vm4153_vm5, %v4748_v47  ;;  %v4749_v26 = vpack.c.bf16 %v4014_v35, %v4014_v35  ;;  %v5326_v22 = vadd.f32 %v3891_v18, %v2177_v16  ;;  %v5294_v48 = vpop.f32.mrb[26].mxu0 }
 0x210   : > { %4177 = vst.msk [vmem:[%s7336_s20 + $0x5c] sm:$0xf] %vm4153_vm5, %v4751_v25  ;;  %v3987_v2 = vadd.f32 %v5325_v40, %v7327_v59  ;;  %v5327_v63 = vadd.f32 %v5294_v48, %v5158_v50  ;;  %v3894_v20 = vpop.f32.mrb[27].mxu0 }
 0x211   : > { %4175 = vst.msk [vmem:[%s7336_s20 + $0x54] sm:$0xf] %vm4153_vm5, %v4749_v26  ;;  %v3985_v37 = vadd.f32 %v5326_v22, %v7327_v59  ;;  %v5328_v31 = vadd.f32 %v3894_v20, %v2180_v62 }
 0x212   : > { %v4019_v54 = vmax.f32 %v3987_v2, 0.0  ;;  %v3988_v41 = vadd.f32 %v5327_v63, %v7327_v59 }
 0x213   : > { %v4017_v34 = vmax.f32 %v3985_v37, 0.0  ;;  %v3986_v49 = vadd.f32 %v5328_v31, %v7327_v59  ;;  %v5161_v38 = vpop.f32.mrb[28].mxu1 }
 0x214   : > { %v4754_v12 = vpack.c.bf16 %v4019_v54, %v4019_v54  ;;  %v4020_v9 = vmax.f32 %v3988_v41, 0.0  ;;  %v2193_v46 = vpop.f32.mrb[29].mxu1 }
 0x215   : > { %v4752_v17 = vpack.c.bf16 %v4017_v34, %v4017_v34  ;;  %v4018_v11 = vmax.f32 %v3986_v49, 0.0  ;;  %v5297_v14 = vpop.f32.mrb[28].mxu0  ;;  %v5162_v21 = vpop.f32.mrb[30].mxu1 }
 0x216   : > { %4180 = vst.msk [vmem:[%s7336_s20 + $0x68] sm:$0xf] %vm4153_vm5, %v4754_v12  ;;  %v4755_v60 = vpack.c.bf16 %v4020_v9, %v4020_v9  ;;  %v5329_v56 = vadd.f32 %v5297_v14, %v5161_v38  ;;  %v3907_v52 = vpop.f32.mrb[29].mxu0  ;;  %v2196_v58 = vpop.f32.mrb[31].mxu1 }
 0x217   : > { %4178 = vst.msk [vmem:[%s7336_s20 + $0x60] sm:$0xf] %vm4153_vm5, %v4752_v17  ;;  %v4753_v32 = vpack.c.bf16 %v4018_v11, %v4018_v11  ;;  %v5330_v19 = vadd.f32 %v3907_v52, %v2193_v46  ;;  %v5298_v39 = vpop.f32.mrb[30].mxu0 }
 0x218   : > { %4181 = vst.msk [vmem:[%s7336_s20 + $0x6c] sm:$0xf] %vm4153_vm5, %v4755_v60  ;;  %v3991_v13 = vadd.f32 %v5329_v56, %v7327_v59  ;;  %v5331_v29 = vadd.f32 %v5298_v39, %v5162_v21  ;;  %v3910_v43 = vpop.f32.mrb[31].mxu0 }
 0x219   : > { %4179 = vst.msk [vmem:[%s7336_s20 + $0x64] sm:$0xf] %vm4153_vm5, %v4753_v32  ;;  %v3989_v10 = vadd.f32 %v5330_v19, %v7327_v59  ;;  %v5332_v5 = vadd.f32 %v3910_v43, %v2196_v58 }
 0x21a   : > { %v4023_v51 = vmax.f32 %v3991_v13, 0.0  ;;  %v3992_v53 = vadd.f32 %v5331_v29, %v7327_v59 }
 0x21b   : > { %v4021_v33 = vmax.f32 %v3989_v10, 0.0  ;;  %v3990_v27 = vadd.f32 %v5332_v5, %v7327_v59 }
 0x21c   : > { %v4758_v23 = vpack.c.bf16 %v4023_v51, %v4023_v51  ;;  %v4024_v0 = vmax.f32 %v3992_v53, 0.0 }
 0x21d   : > { %v4756_v1 = vpack.c.bf16 %v4021_v33, %v4021_v33  ;;  %v4022_v3 = vmax.f32 %v3990_v27, 0.0 }
 0x21e   : > { %4184 = vst.msk [vmem:[%s7336_s20 + $0x78] sm:$0xf] %vm4153_vm5, %v4758_v23  ;;  %v4759_v44 = vpack.c.bf16 %v4024_v0, %v4024_v0 }
 0x21f   : > { %4182 = vst.msk [vmem:[%s7336_s20 + $0x70] sm:$0xf] %vm4153_vm5, %v4756_v1  ;;  %v4757_v36 = vpack.c.bf16 %v4022_v3, %v4022_v3 }
 0x220   : > { %4185 = vst.msk [vmem:[%s7336_s20 + $0x7c] sm:$0xf] %vm4153_vm5, %v4759_v44 }
 0x221   : > { %4183 = vst.msk [vmem:[%s7336_s20 + $0x74] sm:$0xf] %vm4153_vm5, %v4757_v36 }
 0x222 PF: > { %s13_s14 = sadd.s32 1, %s5678_s14   ;;  %s7686_s12 = smov %s5674_s13 }
 0x223   : > { %p10_p5 = scmp.ge.s32.totalorder %s13_s14, 4   ;;  %s7687_s13 = smov %s7689_s15 }
 0x225   :  { %12 = sbr.rel (!%p10_p5) target bundleno = 2 (0x2), region = 70 }

// kernel: tpu_custom_call.1
= control target key start
LH: loop header
LB: loop body
LE: loop exit
PB: predicated region body
PF: predicated region fallthrough
CT: control target
= control target key end

     0   :  { %s1130_s12 = smov 0   ;;  %s1132_s13 = smov 0   ;;  %s1313_s0 = inlined_call_operand.vmem [shape: bf16[512,27], index: 0, kind: input, shape index: {}]   ;;  %s1314_s1 = inlined_call_operand.vmem [shape: bf16[27,64], index: 1, kind: input, shape index: {}]   ;;  %s1315_s2 = inlined_call_operand.vmem [shape: f32[1,64], index: 2, kind: input, shape index: {}]   ;;  %s1316_s3 = inlined_call_operand.vmem [shape: bf16[512,64], index: 3, kind: output, shape index: {}]  }
   0x1   :  { %s1134_s14 = smov 0  }
   0x2 LB: > { %s22_s15 = sadd.s32 1, %s1103_s13  ;;  %p878_p0 = scmp.ge.s32.totalorder %s1107_s14, 1  ;;  %s1107_s14 = sphi %s1134_s14, %s13_s14   ;;  %s1103_s13 = sphi %s1132_s13, %s1318_s13   ;;  %s1099_s12 = sphi %s1130_s12, %s1317_s12  }
   0x3   : > { %p23_p1 = scmp.ge.s32.totalorder %s22_s15, 2  ;;  %p169_p2 = scmp.lt.s32.totalorder %s1107_s14, 3 }
   0x5   : > { %s1320_s15 = smov (%p23_p1, %s22_s15), 0  ;;  %p170_p3 = pnand %p878_p0, %p169_p2 }
   0x6   : > { %v1067_v0 = vld [vmem:[%s1314_s1] sm:$0xff] (!%p170_p3)   ;;  %vm409_vm0 = vcmask (!%p170_p3), 1044480   ;;  %v1068_v1 = vld [vmem:[%s1314_s1 + $0x8] sm:$0x3f] (!%p170_p3)   ;;  %vm410_vm1 = vcmask (!%p170_p3), 1045504   ;;  %s879_s20 = sshll.u32 (!%p170_p3), %s1099_s12, 5 }
   0x7   : > { %173 = sbr.rel (%p170_p3) target bundleno = 266 (0x10a), region = 32  ;;  %1002 = vmatprep.subr.bf16.mxu0 (!%p170_p3), %v1067_v0  ;;  %1038 = vmatprep.subr.bf16.mxu1 (!%p170_p3), %v1067_v0  ;;  %v1109_v2 = vmov (!%p170_p3), 65535   ;;  %p204_p4 = scmp.lt.s32.totalorder (!%p170_p3), %s879_s20, 63  ;;  %vm360_vm2 = vcmask (!%p170_p3), 220160   ;;  %v1199_v22 = vld [vmem:[%s1315_s2] ss:$0 sm:$0xff] (!%p170_p3) }
   0x8   : > { %1003 = vmatpush3.bf16.msra.mxu0 (!%p170_p3), %v1067_v0  ;;  %1040 = vmatpush3.bf16.msra.mxu1 (!%p170_p3), %v1067_v0  ;;  %v411_v3 = vsel (!%p170_p3), %vm409_vm0, 4294967295, %v1109_v2  ;;  %vm737_vm3 = vcmask (!%p170_p3), 519168  }
   0x9   : > { %v412_v4 = vsel (!%p170_p3), %vm410_vm1, %v411_v3, 0 }
   0xa   : > { %v414_v5 = vand.u32 (!%p170_p3), %v1068_v1, %v412_v4 }
   0xc   : > { %1004 = vmatprep.subr.bf16.mxu0 (!%p170_p3), %v414_v5  ;;  %1039 = vmatprep.subr.bf16.mxu1 (!%p170_p3), %v414_v5 }
   0xd   : > { %1005 = vmatpush3.bf16.msra.mxu0 (!%p170_p3), %v414_v5  ;;  %1041 = vmatpush3.bf16.msra.mxu1 (!%p170_p3), %v414_v5 }
   0xe   : > { %s1322_s20 = smov (!%p204_p4, %s879_s20), 63 }
   0xf   : > { %s880_s21 = sshll.u32 %s1322_s20, 2 }
  0x10   : > { %s1162_s24 = scalar_lea.vmem %s1313_s0, %s880_s21  ;;  %s1211_s29 = scalar_lea.vmem %s1316_s3, %s880_s21 }
  0x11   : > { %v1069_v6 = vld [vmem:[%s1162_s24] sm:$0xff]   ;;  %v1071_v8 = vld [vmem:[%s1162_s24 + $0x8] sm:$0xff]   ;;  %v1073_v10 = vld [vmem:[%s1162_s24 + $0x10] sm:$0xff]  }
  0x12   : > { %v1070_v7 = vld [vmem:[%s1162_s24 + $0x40] sm:$0xff]   ;;  %1006 = vmatprep.mubr.msk.bf16.mxu0 %vm360_vm2, %v1069_v6  ;;  %v1072_v9 = vld [vmem:[%s1162_s24 + $0x48] sm:$0xff]   ;;  %v1074_v11 = vld [vmem:[%s1162_s24 + $0x50] sm:$0xff]  }
  0x13   : > { %1022 = vmatprep.mubr.msk.bf16.mxu1 %vm360_vm2, %v1070_v7  ;;  %1007 = vmatmul.mubr.msk.bf16.vlgmr.msra.gmra.mrb[0].mxu0 %vm360_vm2, %v1071_v8  ;;  %v1075_v12 = vld [vmem:[%s1162_s24 + $0x18] sm:$0xff]   ;;  %v1077_v14 = vld [vmem:[%s1162_s24 + $0x20] sm:$0xff]   ;;  %v1079_v16 = vld [vmem:[%s1162_s24 + $0x28] sm:$0xff]  }
  0x14   : > { %1023 = vmatmul.mubr.msk.bf16.vlgmr.msra.gmra.mrb[0].mxu1 %vm360_vm2, %v1072_v9  ;;  %1010 = vmatprep.mubr.msk.bf16.mxu0 %vm360_vm2, %v1073_v10  ;;  %v1076_v13 = vld [vmem:[%s1162_s24 + $0x58] sm:$0xff]   ;;  %v1078_v15 = vld [vmem:[%s1162_s24 + $0x60] sm:$0xff]   ;;  %v1080_v17 = vld [vmem:[%s1162_s24 + $0x68] sm:$0xff]  }
  0x15   : > { %1026 = vmatprep.mubr.msk.bf16.mxu1 %vm360_vm2, %v1074_v11  ;;  %v1081_v18 = vld [vmem:[%s1162_s24 + $0x30] sm:$0xff]   ;;  %v1083_v20 = vld [vmem:[%s1162_s24 + $0x38] sm:$0xff]  }
  0x16   : > { %v1082_v19 = vld [vmem:[%s1162_s24 + $0x70] sm:$0xff]   ;;  %v1084_v21 = vld [vmem:[%s1162_s24 + $0x78] sm:$0xff]  }
  0x1b   : > { %1011 = vmatmul.mubr.msk.bf16.gmra.mrb[4].mxu0 %vm360_vm2, %v1075_v12 }
  0x1c   : > { %1027 = vmatmul.mubr.msk.bf16.gmra.mrb[4].mxu1 %vm360_vm2, %v1076_v13  ;;  %1014 = vmatprep.mubr.msk.bf16.mxu0 %vm360_vm2, %v1077_v14 }
  0x1d   : > { %1030 = vmatprep.mubr.msk.bf16.mxu1 %vm360_vm2, %v1078_v15 }
  0x23   : > { %1015 = vmatmul.mubr.msk.bf16.gmra.mrb[8].mxu0 %vm360_vm2, %v1079_v16 }
  0x24   : > { %1031 = vmatmul.mubr.msk.bf16.gmra.mrb[8].mxu1 %vm360_vm2, %v1080_v17  ;;  %1018 = vmatprep.mubr.msk.bf16.mxu0 %vm360_vm2, %v1081_v18 }
  0x25   : > { %1034 = vmatprep.mubr.msk.bf16.mxu1 %vm360_vm2, %v1082_v19 }
  0x2b   : > { %1019 = vmatmul.mubr.msk.bf16.gmra.mrb[12].mxu0 %vm360_vm2, %v1083_v20 }
  0x2c   : > { %1035 = vmatmul.mubr.msk.bf16.gmra.mrb[12].mxu1 %vm360_vm2, %v1084_v21 }
  0xe6   : > { %v1008_v23 = vpop.f32.mrb[0].mxu0 }
  0xe7   : > { %v459_v24 = vadd.f32 %v1008_v23, %v1199_v22  ;;  %v1024_v25 = vpop.f32.mrb[0].mxu1  ;;  %v450_v26 = vpop.f32.mrb[1].mxu0 }
  0xe8   : > { %v523_v27 = vadd.f32 %v1024_v25, %v1199_v22  ;;  %v451_v28 = vadd.f32 %v1199_v22, %v450_v26  ;;  %v514_v29 = vpop.f32.mrb[1].mxu1  ;;  %v1009_v30 = vpop.f32.mrb[2].mxu0 }
  0xe9   : > { %v579_v31 = vmax.f32 %v459_v24, 0.0  ;;  %v515_v32 = vadd.f32 %v1199_v22, %v514_v29  ;;  %v462_v33 = vadd.f32 %v1009_v30, %v1199_v22  ;;  %v1025_v34 = vpop.f32.mrb[2].mxu1  ;;  %v453_v35 = vpop.f32.mrb[3].mxu0 }
  0xea   : > { %v595_v36 = vmax.f32 %v523_v27, 0.0  ;;  %v577_v37 = vmax.f32 %v451_v28, 0.0  ;;  %v526_v38 = vadd.f32 %v1025_v34, %v1199_v22  ;;  %v454_v39 = vadd.f32 %v1199_v22, %v453_v35  ;;  %v517_v40 = vpop.f32.mrb[3].mxu1 }
  0xeb   : > { %v954_v41 = vpack.c.bf16 %v579_v31, %v579_v31  ;;  %v593_v42 = vmax.f32 %v515_v32, 0.0  ;;  %v580_v43 = vmax.f32 %v462_v33, 0.0  ;;  %v518_v44 = vadd.f32 %v1199_v22, %v517_v40 }
  0xec   : > { %v970_v45 = vpack.c.bf16 %v595_v36, %v595_v36  ;;  %v952_v46 = vpack.c.bf16 %v577_v37, %v577_v37  ;;  %v596_v47 = vmax.f32 %v526_v38, 0.0  ;;  %v578_v48 = vmax.f32 %v454_v39, 0.0 }
  0xed   : > { %740 = vst.msk [vmem:[%s1211_s29 + $0x8] sm:$0xf] %vm737_vm3, %v954_v41  ;;  %v968_v49 = vpack.c.bf16 %v593_v42, %v593_v42  ;;  %v955_v50 = vpack.c.bf16 %v580_v43, %v580_v43  ;;  %v594_v51 = vmax.f32 %v518_v44, 0.0 }
  0xee   : > { %756 = vst.msk [vmem:[%s1211_s29 + $0x48] sm:$0xf] %vm737_vm3, %v970_v45  ;;  %738 = vst.msk [vmem:[%s1211_s29] sm:$0xf] %vm737_vm3, %v952_v46  ;;  %v971_v52 = vpack.c.bf16 %v596_v47, %v596_v47  ;;  %v953_v53 = vpack.c.bf16 %v578_v48, %v578_v48  ;;  %v1012_v54 = vpop.f32.mrb[4].mxu0 }
  0xef   : > { %754 = vst.msk [vmem:[%s1211_s29 + $0x40] sm:$0xf] %vm737_vm3, %v968_v49  ;;  %741 = vst.msk [vmem:[%s1211_s29 + $0xc] sm:$0xf] %vm737_vm3, %v955_v50  ;;  %v969_v55 = vpack.c.bf16 %v594_v51, %v594_v51  ;;  %v475_v56 = vadd.f32 %v1012_v54, %v1199_v22  ;;  %v1028_v57 = vpop.f32.mrb[4].mxu1  ;;  %v466_v58 = vpop.f32.mrb[5].mxu0 }
  0xf0   : > { %757 = vst.msk [vmem:[%s1211_s29 + $0x4c] sm:$0xf] %vm737_vm3, %v971_v52  ;;  %739 = vst.msk [vmem:[%s1211_s29 + $0x4] sm:$0xf] %vm737_vm3, %v953_v53  ;;  %v539_v59 = vadd.f32 %v1028_v57, %v1199_v22  ;;  %v467_v60 = vadd.f32 %v1199_v22, %v466_v58  ;;  %v530_v61 = vpop.f32.mrb[5].mxu1  ;;  %v1013_v62 = vpop.f32.mrb[6].mxu0 }
  0xf1   : > { %755 = vst.msk [vmem:[%s1211_s29 + $0x44] sm:$0xf] %vm737_vm3, %v969_v55  ;;  %v583_v63 = vmax.f32 %v475_v56, 0.0  ;;  %v531_v0 = vadd.f32 %v1199_v22, %v530_v61  ;;  %v478_v1 = vadd.f32 %v1013_v62, %v1199_v22  ;;  %v1029_v2 = vpop.f32.mrb[6].mxu1  ;;  %v469_v3 = vpop.f32.mrb[7].mxu0 }
  0xf2   : > { %v599_v4 = vmax.f32 %v539_v59, 0.0  ;;  %v581_v5 = vmax.f32 %v467_v60, 0.0  ;;  %v542_v6 = vadd.f32 %v1029_v2, %v1199_v22  ;;  %v470_v7 = vadd.f32 %v1199_v22, %v469_v3  ;;  %v533_v8 = vpop.f32.mrb[7].mxu1 }
  0xf3   : > { %v958_v9 = vpack.c.bf16 %v583_v63, %v583_v63  ;;  %v597_v10 = vmax.f32 %v531_v0, 0.0  ;;  %v584_v11 = vmax.f32 %v478_v1, 0.0  ;;  %v534_v12 = vadd.f32 %v1199_v22, %v533_v8 }
  0xf4   : > { %v974_v13 = vpack.c.bf16 %v599_v4, %v599_v4  ;;  %v956_v14 = vpack.c.bf16 %v581_v5, %v581_v5  ;;  %v600_v15 = vmax.f32 %v542_v6, 0.0  ;;  %v582_v16 = vmax.f32 %v470_v7, 0.0 }
  0xf5   : > { %744 = vst.msk [vmem:[%s1211_s29 + $0x18] sm:$0xf] %vm737_vm3, %v958_v9  ;;  %v972_v17 = vpack.c.bf16 %v597_v10, %v597_v10  ;;  %v959_v18 = vpack.c.bf16 %v584_v11, %v584_v11  ;;  %v598_v19 = vmax.f32 %v534_v12, 0.0 }
  0xf6   : > { %760 = vst.msk [vmem:[%s1211_s29 + $0x58] sm:$0xf] %vm737_vm3, %v974_v13  ;;  %742 = vst.msk [vmem:[%s1211_s29 + $0x10] sm:$0xf] %vm737_vm3, %v956_v14  ;;  %v975_v20 = vpack.c.bf16 %v600_v15, %v600_v15  ;;  %v957_v21 = vpack.c.bf16 %v582_v16, %v582_v16  ;;  %v1016_v23 = vpop.f32.mrb[8].mxu0 }
  0xf7   : > { %758 = vst.msk [vmem:[%s1211_s29 + $0x50] sm:$0xf] %vm737_vm3, %v972_v17  ;;  %745 = vst.msk [vmem:[%s1211_s29 + $0x1c] sm:$0xf] %vm737_vm3, %v959_v18  ;;  %v973_v24 = vpack.c.bf16 %v598_v19, %v598_v19  ;;  %v491_v25 = vadd.f32 %v1016_v23, %v1199_v22  ;;  %v1032_v26 = vpop.f32.mrb[8].mxu1  ;;  %v482_v27 = vpop.f32.mrb[9].mxu0 }
  0xf8   : > { %761 = vst.msk [vmem:[%s1211_s29 + $0x5c] sm:$0xf] %vm737_vm3, %v975_v20  ;;  %743 = vst.msk [vmem:[%s1211_s29 + $0x14] sm:$0xf] %vm737_vm3, %v957_v21  ;;  %v555_v28 = vadd.f32 %v1032_v26, %v1199_v22  ;;  %v483_v29 = vadd.f32 %v1199_v22, %v482_v27  ;;  %v546_v30 = vpop.f32.mrb[9].mxu1  ;;  %v1017_v31 = vpop.f32.mrb[10].mxu0 }
  0xf9   : > { %759 = vst.msk [vmem:[%s1211_s29 + $0x54] sm:$0xf] %vm737_vm3, %v973_v24  ;;  %v587_v32 = vmax.f32 %v491_v25, 0.0  ;;  %v547_v33 = vadd.f32 %v1199_v22, %v546_v30  ;;  %v494_v34 = vadd.f32 %v1017_v31, %v1199_v22  ;;  %v1033_v35 = vpop.f32.mrb[10].mxu1  ;;  %v485_v36 = vpop.f32.mrb[11].mxu0 }
  0xfa   : > { %v603_v37 = vmax.f32 %v555_v28, 0.0  ;;  %v585_v38 = vmax.f32 %v483_v29, 0.0  ;;  %v558_v39 = vadd.f32 %v1033_v35, %v1199_v22  ;;  %v486_v40 = vadd.f32 %v1199_v22, %v485_v36  ;;  %v549_v41 = vpop.f32.mrb[11].mxu1 }
  0xfb   : > { %v962_v42 = vpack.c.bf16 %v587_v32, %v587_v32  ;;  %v601_v43 = vmax.f32 %v547_v33, 0.0  ;;  %v588_v44 = vmax.f32 %v494_v34, 0.0  ;;  %v550_v45 = vadd.f32 %v1199_v22, %v549_v41 }
  0xfc   : > { %v978_v46 = vpack.c.bf16 %v603_v37, %v603_v37  ;;  %v960_v47 = vpack.c.bf16 %v585_v38, %v585_v38  ;;  %v604_v48 = vmax.f32 %v558_v39, 0.0  ;;  %v586_v49 = vmax.f32 %v486_v40, 0.0 }
  0xfd   : > { %748 = vst.msk [vmem:[%s1211_s29 + $0x28] sm:$0xf] %vm737_vm3, %v962_v42  ;;  %v976_v50 = vpack.c.bf16 %v601_v43, %v601_v43  ;;  %v963_v51 = vpack.c.bf16 %v588_v44, %v588_v44  ;;  %v602_v52 = vmax.f32 %v550_v45, 0.0 }
  0xfe   : > { %764 = vst.msk [vmem:[%s1211_s29 + $0x68] sm:$0xf] %vm737_vm3, %v978_v46  ;;  %746 = vst.msk [vmem:[%s1211_s29 + $0x20] sm:$0xf] %vm737_vm3, %v960_v47  ;;  %v979_v53 = vpack.c.bf16 %v604_v48, %v604_v48  ;;  %v961_v54 = vpack.c.bf16 %v586_v49, %v586_v49  ;;  %v1020_v55 = vpop.f32.mrb[12].mxu0 }
  0xff   : > { %762 = vst.msk [vmem:[%s1211_s29 + $0x60] sm:$0xf] %vm737_vm3, %v976_v50  ;;  %749 = vst.msk [vmem:[%s1211_s29 + $0x2c] sm:$0xf] %vm737_vm3, %v963_v51  ;;  %v977_v56 = vpack.c.bf16 %v602_v52, %v602_v52  ;;  %v507_v57 = vadd.f32 %v1020_v55, %v1199_v22  ;;  %v1036_v58 = vpop.f32.mrb[12].mxu1  ;;  %v498_v59 = vpop.f32.mrb[13].mxu0 }
 0x100   : > { %765 = vst.msk [vmem:[%s1211_s29 + $0x6c] sm:$0xf] %vm737_vm3, %v979_v53  ;;  %747 = vst.msk [vmem:[%s1211_s29 + $0x24] sm:$0xf] %vm737_vm3, %v961_v54  ;;  %v571_v60 = vadd.f32 %v1036_v58, %v1199_v22  ;;  %v499_v61 = vadd.f32 %v1199_v22, %v498_v59  ;;  %v562_v62 = vpop.f32.mrb[13].mxu1  ;;  %v1021_v63 = vpop.f32.mrb[14].mxu0 }
 0x101   : > { %763 = vst.msk [vmem:[%s1211_s29 + $0x64] sm:$0xf] %vm737_vm3, %v977_v56  ;;  %v591_v0 = vmax.f32 %v507_v57, 0.0  ;;  %v563_v1 = vadd.f32 %v1199_v22, %v562_v62  ;;  %v510_v2 = vadd.f32 %v1021_v63, %v1199_v22  ;;  %v1037_v3 = vpop.f32.mrb[14].mxu1  ;;  %v501_v4 = vpop.f32.mrb[15].mxu0 }
 0x102   : > { %v607_v5 = vmax.f32 %v571_v60, 0.0  ;;  %v589_v6 = vmax.f32 %v499_v61, 0.0  ;;  %v574_v7 = vadd.f32 %v1037_v3, %v1199_v22  ;;  %v502_v8 = vadd.f32 %v1199_v22, %v501_v4  ;;  %v565_v9 = vpop.f32.mrb[15].mxu1 }
 0x103   : > { %v966_v10 = vpack.c.bf16 %v591_v0, %v591_v0  ;;  %v605_v11 = vmax.f32 %v563_v1, 0.0  ;;  %v592_v12 = vmax.f32 %v510_v2, 0.0  ;;  %v566_v13 = vadd.f32 %v1199_v22, %v565_v9 }
 0x104   : > { %v982_v14 = vpack.c.bf16 %v607_v5, %v607_v5  ;;  %v964_v15 = vpack.c.bf16 %v589_v6, %v589_v6  ;;  %v608_v16 = vmax.f32 %v574_v7, 0.0  ;;  %v590_v17 = vmax.f32 %v502_v8, 0.0 }
 0x105   : > { %752 = vst.msk [vmem:[%s1211_s29 + $0x38] sm:$0xf] %vm737_vm3, %v966_v10  ;;  %v980_v18 = vpack.c.bf16 %v605_v11, %v605_v11  ;;  %v967_v19 = vpack.c.bf16 %v592_v12, %v592_v12  ;;  %v606_v20 = vmax.f32 %v566_v13, 0.0 }
 0x106   : > { %768 = vst.msk [vmem:[%s1211_s29 + $0x78] sm:$0xf] %vm737_vm3, %v982_v14  ;;  %750 = vst.msk [vmem:[%s1211_s29 + $0x30] sm:$0xf] %vm737_vm3, %v964_v15  ;;  %v983_v21 = vpack.c.bf16 %v608_v16, %v608_v16  ;;  %v965_v23 = vpack.c.bf16 %v590_v17, %v590_v17 }
 0x107   : > { %766 = vst.msk [vmem:[%s1211_s29 + $0x70] sm:$0xf] %vm737_vm3, %v980_v18  ;;  %753 = vst.msk [vmem:[%s1211_s29 + $0x3c] sm:$0xf] %vm737_vm3, %v967_v19  ;;  %v981_v22 = vpack.c.bf16 %v606_v20, %v606_v20 }
 0x108   : > { %769 = vst.msk [vmem:[%s1211_s29 + $0x7c] sm:$0xf] %vm737_vm3, %v983_v21  ;;  %751 = vst.msk [vmem:[%s1211_s29 + $0x34] sm:$0xf] %vm737_vm3, %v965_v23 }
 0x109   : > { %767 = vst.msk [vmem:[%s1211_s29 + $0x74] sm:$0xf] %vm737_vm3, %v981_v22 }
 0x10a PF: > { %s13_s14 = sadd.s32 1, %s1107_s14   ;;  %s1317_s12 = smov %s1103_s13 }
 0x10b   : > { %p10_p5 = scmp.ge.s32.totalorder %s13_s14, 4   ;;  %s1318_s13 = smov %s1320_s15 }
 0x10d   :  { %12 = sbr.rel (!%p10_p5) target bundleno = 2 (0x2), region = 68 }

</bundles_post_ra>
